<compile_context>
chip_gen: v5e
topology: v5e:2x2
jax: 0.10.0
libtpu: 0.0.40
codegen_flags: <defaults>
</compile_context>

<pallas_src>
import jax
import jax.numpy as jnp
from jax.experimental import pallas as pl
from jax.experimental.pallas import tpu as pltpu

# ----------------------------------------------------------------------------
# Model hyper-parameters (consistent with the PyTorch module)
# ----------------------------------------------------------------------------
INPUT_SIZE = 128        # LSTM input_size (unused by forward, used for shapes)
HIDDEN_SIZE = 32        # TODO(synk): BatchNorm1d / LSTM / fc are dead code in forward
NUM_LAYERS = 2          # unused by forward
NUM_CLASSES = 10
FLAT_FEATURES = 84480   # fc2 = nn.Linear(84480, num_classes)

# Input shape chosen so that numel == 84480 (required by fc2):
#   batch=2, seq=330, input_size=128  ->  2*330*128 = 84480
BATCH, SEQ = 2, 330

# ----------------------------------------------------------------------------
# Generation-dependent structure (per perf review):
#  * v5e / v6e (1 TC): 2 big lane-dense K splits, reduction ("arbitrary") axis,
#    bias + softmax fused in-kernel.
#  * v7x (2 TCs): 4 splits on a "parallel" axis (2 pipelined steps per core)
#    + a tiny XLA epilogue combining the per-split partial logits.
# ----------------------------------------------------------------------------
_DEVICE_KIND = jax.devices()[0].device_kind.lower()
_MULTI_TC = ("v7" in _DEVICE_KIND) or ("7x" in _DEVICE_KIND)

NUM_SPLITS = 4 if _MULTI_TC else 2
K_SPLIT = FLAT_FEATURES // NUM_SPLITS          # 21120 / 42240, multiples of 128
assert K_SPLIT * NUM_SPLITS == FLAT_FEATURES and K_SPLIT % 128 == 0

# Inner chunking of the lane (K) axis: bounds vreg live ranges so the bf16
# weight stream is consumed vreg-by-vreg (no spill of a multi-MB product slab).
LANES_PER_CHUNK = 1920                         # 15 lane-tiles of 128
assert K_SPLIT % LANES_PER_CHUNK == 0


def _partial_logits(x_ref, w_ref):
    """(NUM_CLASSES, 1) f32 partial logits for one K split.

    x_ref: (1, K_SPLIT) f32; w_ref: (NUM_CLASSES, K_SPLIT) bf16 (or f32),
    native PyTorch Linear layout (no transpose anywhere).
    Pure VPU multiply + per-chunk lane reduction; stays hidden under the
    weight HBM stream on v5e/v6e/v7x.
    """
    acc = jnp.zeros((NUM_CLASSES, 1), jnp.float32)
    for c in range(K_SPLIT // LANES_PER_CHUNK):       # small static unroll
        lo, hi = c * LANES_PER_CHUNK, (c + 1) * LANES_PER_CHUNK
        w_chunk = w_ref[:, lo:hi].astype(jnp.float32)  # (NC, CHUNK), f32 acc
        x_chunk = x_ref[:, lo:hi]                      # (1, CHUNK), broadcast
        acc = acc + jnp.sum(w_chunk * x_chunk, axis=-1, keepdims=True)
    return acc


def _fused_head_kernel(x_ref, w_ref, b_ref, o_ref):
    """Single-TC path: accumulate across splits, then bias + softmax in-kernel."""
    s = pl.program_id(0)

    @pl.when(s == 0)
    def _init():
        o_ref[...] = jnp.zeros_like(o_ref)

    o_ref[...] += _partial_logits(x_ref, w_ref)

    @pl.when(s == pl.num_programs(0) - 1)
    def _finalize():
        # TODO(synk): nn.Softmax(dim=1) is invalid on the 1-D flattened output;
        # we apply softmax over the only (class) axis.
        logits = o_ref[...] + b_ref[...]                 # (NC, 1)
        m = jnp.max(logits, axis=0, keepdims=True)
        e = jnp.exp(logits - m)                          # EUP (free slot)
        o_ref[...] = e / jnp.sum(e, axis=0, keepdims=True)


def _partial_head_kernel(x_ref, w_ref, o_ref):
    """Multi-TC (v7x) path: per-split partial logits only."""
    o_ref[...] = _partial_logits(x_ref, w_ref)


@jax.jit
def lstm_forward(x, w_fc2, b_fc2):
    """Pallas implementation of LSTM.forward.

    x:      any f32 array with numel == FLAT_FEATURES
    w_fc2:  (NUM_CLASSES, FLAT_FEATURES), native PyTorch Linear layout.
            Pre-cast ONCE to bfloat16 at parameter-load time (outside this
            jit) to halve the dominant HBM stream; f32 is also accepted.
    b_fc2:  (NUM_CLASSES,) f32
    returns (NUM_CLASSES,) softmax probabilities
    """
    x_flat = x.reshape(1, FLAT_FEATURES)

    w_bytes = jnp.dtype(w_fc2.dtype).itemsize * FLAT_FEATURES * NUM_CLASSES
    cost = pl.CostEstimate(
        flops=2 * FLAT_FEATURES * NUM_CLASSES,
        transcendentals=NUM_CLASSES,
        bytes_accessed=4 * FLAT_FEATURES + w_bytes + 4 * NUM_CLASSES * NUM_SPLITS,
    )
    params = pltpu.CompilerParams(
        dimension_semantics=("parallel",) if _MULTI_TC else ("arbitrary",),
        vmem_limit_bytes=32 * 1024 * 1024,
    )

    if not _MULTI_TC:
        # v5e / v6e: single TensorCore -> fully fused reduction + bias + softmax.
        b_col = b_fc2.reshape(NUM_CLASSES, 1).astype(jnp.float32)
        probs = pl.pallas_call(
            _fused_head_kernel,
            out_shape=jax.ShapeDtypeStruct((NUM_CLASSES, 1), jnp.float32),
            grid_spec=pltpu.PrefetchScalarGridSpec(
                num_scalar_prefetch=0,
                grid=(NUM_SPLITS,),
                in_specs=[
                    # activation slice: lane-dense (1, K_SPLIT)
                    pl.BlockSpec((1, K_SPLIT), lambda s: (0, s)),
                    # weight slice: native layout, lane-dense (10, K_SPLIT)
                    pl.BlockSpec((NUM_CLASSES, K_SPLIT), lambda s: (0, s)),
                    # bias: constant block index -> fetched once
                    pl.BlockSpec((NUM_CLASSES, 1), lambda s: (0, 0)),
                ],
                # output resident across the reduction axis (accumulator)
                out_specs=pl.BlockSpec((NUM_CLASSES, 1), lambda s: (0, 0)),
            ),
            compiler_params=params,
            cost_estimate=cost,
        )(x_flat, w_fc2, b_col)
        return probs.reshape(NUM_CLASSES)

    # v7x: shard K splits across the 2 TensorCores; tiny XLA epilogue.
    partials = pl.pallas_call(
        _partial_head_kernel,
        out_shape=jax.ShapeDtypeStruct((NUM_SPLITS, NUM_CLASSES, 1), jnp.float32),
        grid_spec=pltpu.PrefetchScalarGridSpec(
            num_scalar_prefetch=0,
            grid=(NUM_SPLITS,),
            in_specs=[
                pl.BlockSpec((1, K_SPLIT), lambda s: (0, s)),
                pl.BlockSpec((NUM_CLASSES, K_SPLIT), lambda s: (0, s)),
            ],
            out_specs=pl.BlockSpec((None, NUM_CLASSES, 1), lambda s: (s, 0, 0)),
        ),
        compiler_params=params,
        cost_estimate=cost,
    )(x_flat, w_fc2)
    logits = jnp.sum(partials.reshape(NUM_SPLITS, NUM_CLASSES), axis=0) + b_fc2
    return jax.nn.softmax(logits, axis=-1)


def _reference(x, w_fc2_f32, b_fc2):
    logits = x.reshape(-1) @ w_fc2_f32.T + b_fc2
    return jax.nn.softmax(logits, axis=-1)


if __name__ == "__main__":
    key = jax.random.PRNGKey(0)
    kx, kw, kb = jax.random.split(key, 3)

    # Deterministic parameter init (mimics PyTorch Linear uniform(-1/sqrt(K), 1/sqrt(K)))
    bound = 1.0 / (FLAT_FEATURES ** 0.5)
    w_fc2 = jax.random.uniform(
        kw, (NUM_CLASSES, FLAT_FEATURES), jnp.float32, minval=-bound, maxval=bound
    )
    b_fc2 = jax.random.uniform(
        kb, (NUM_CLASSES,), jnp.float32, minval=-bound, maxval=bound
    )
    # Pre-cast the streamed weight ONCE, outside the jit (halves the dominant
    # HBM stream without adding a per-call cast pass).
    w_fc2_bf16 = w_fc2.astype(jnp.bfloat16)

    # Example input: (batch, seq, input_size) as implied by batch_first LSTM usage
    x = jax.random.normal(kx, (BATCH, SEQ, INPUT_SIZE), jnp.float32)

    out = jax.block_until_ready(lstm_forward(x, w_fc2_bf16, b_fc2))
    ref = jax.block_until_ready(_reference(x, w_fc2, b_fc2))

    assert out.shape == (NUM_CLASSES,)
    # bf16 weight stream -> ~1e-3 relative error on logits; loosened tolerance.
    assert jnp.allclose(out, ref, atol=5e-3, rtol=5e-2), (out, ref)
    assert jnp.isclose(jnp.sum(out), 1.0, atol=1e-4)
    print("KERNEL_OK")
</pallas_src>

<mosaic_0001>
module attributes {stable_mosaic.version = 11 : i64} {
  func.func @_fused_head_kernel(%arg0: i32, %arg1: memref<1x42240xf32, #tpu.memory_space<vmem>>, %arg2: memref<10x42240xbf16, #tpu.memory_space<vmem>>, %arg3: memref<10x1xf32, #tpu.memory_space<vmem>>, %arg4: memref<10x1xf32, #tpu.memory_space<vmem>>) attributes {dimension_semantics = [#tpu.dimension_semantics<arbitrary>], iteration_bounds = array<i64: 2>, scalar_prefetch = 0 : i64, scratch_operands = 0 : i64, tpu.core_type = #tpu.core_type<tc>, window_params = [{transform_indices = @transform_0, window_bounds = array<i64: 1, 42240>}, {transform_indices = @transform_1, window_bounds = array<i64: 10, 42240>}, {pipeline_mode = #tpu.pipeline_mode<synchronous>, transform_indices = @transform_2, window_bounds = array<i64: 10, 1>}, {pipeline_mode = #tpu.pipeline_mode<synchronous>, transform_indices = @transform_3, window_bounds = array<i64: 10, 1>}]} {
    %c0_i32 = arith.constant 0 : i32
    %0 = arith.cmpi eq, %arg0, %c0_i32 : i32
    %1 = arith.extui %0 : i1 to i32
    %c0_i32_0 = arith.constant 0 : i32
    %2 = arith.cmpi ne, %1, %c0_i32_0 : i32
    scf.if %2 {
      %cst_94 = arith.constant 0.000000e+00 : f32
      %186 = vector.broadcast %cst_94 : f32 to vector<10x1xf32>
      %c0_95 = arith.constant 0 : index
      %c0_96 = arith.constant 0 : index
      %187 = vector.load %arg4[%c0_95, %c0_96] : memref<10x1xf32, #tpu.memory_space<vmem>>, vector<10x1xf32>
      tpu.vector_store %arg4[%c0_95, %c0_96], %186 {strides = array<i32>} : memref<10x1xf32, #tpu.memory_space<vmem>>, vector<10x1xf32>,
    } else {
    }
    %c0 = arith.constant 0 : index
    %c0_1 = arith.constant 0 : index
    %3 = vector.load %arg4[%c0, %c0_1] : memref<10x1xf32, #tpu.memory_space<vmem>>, vector<10x1xf32>
    %cst = arith.constant 0.000000e+00 : f32
    %4 = vector.broadcast %cst : f32 to vector<10x1xf32>
    %c0_2 = arith.constant 0 : index
    %c0_3 = arith.constant 0 : index
    %5 = vector.load %arg2[%c0_2, %c0_3] : memref<10x42240xbf16, #tpu.memory_space<vmem>>, vector<10x1920xbf16>
    %6 = arith.extf %5 : vector<10x1920xbf16> to vector<10x1920xf32>
    %c0_4 = arith.constant 0 : index
    %c0_5 = arith.constant 0 : index
    %7 = vector.load %arg1[%c0_4, %c0_5] : memref<1x42240xf32, #tpu.memory_space<vmem>>, vector<1x1920xf32>
    %8 = vector.broadcast %7 : vector<1x1920xf32> to vector<10x1920xf32>
    %9 = arith.mulf %6, %8 : vector<10x1920xf32>
    %cst_6 = arith.constant dense<0.000000e+00> : vector<10xf32>
    %10 = vector.multi_reduction <add>, %9, %cst_6 [1] : vector<10x1920xf32> to vector<10xf32>
    %11 = vector.shape_cast %10 : vector<10xf32> to vector<10x1xf32>
    %12 = arith.addf %4, %11 : vector<10x1xf32>
    %c0_7 = arith.constant 0 : index
    %c1920 = arith.constant 1920 : index
    %13 = vector.load %arg2[%c0_7, %c1920] : memref<10x42240xbf16, #tpu.memory_space<vmem>>, vector<10x1920xbf16>
    %14 = arith.extf %13 : vector<10x1920xbf16> to vector<10x1920xf32>
    %c0_8 = arith.constant 0 : index
    %c1920_9 = arith.constant 1920 : index
    %15 = vector.load %arg1[%c0_8, %c1920_9] : memref<1x42240xf32, #tpu.memory_space<vmem>>, vector<1x1920xf32>
    %16 = vector.broadcast %15 : vector<1x1920xf32> to vector<10x1920xf32>
    %17 = arith.mulf %14, %16 : vector<10x1920xf32>
    %cst_10 = arith.constant dense<0.000000e+00> : vector<10xf32>
    %18 = vector.multi_reduction <add>, %17, %cst_10 [1] : vector<10x1920xf32> to vector<10xf32>
    %19 = vector.shape_cast %18 : vector<10xf32> to vector<10x1xf32>
    %20 = arith.addf %12, %19 : vector<10x1xf32>
    %c0_11 = arith.constant 0 : index
    %c3840 = arith.constant 3840 : index
    %21 = vector.load %arg2[%c0_11, %c3840] : memref<10x42240xbf16, #tpu.memory_space<vmem>>, vector<10x1920xbf16>
    %22 = arith.extf %21 : vector<10x1920xbf16> to vector<10x1920xf32>
    %c0_12 = arith.constant 0 : index
    %c3840_13 = arith.constant 3840 : index
    %23 = vector.load %arg1[%c0_12, %c3840_13] : memref<1x42240xf32, #tpu.memory_space<vmem>>, vector<1x1920xf32>
    %24 = vector.broadcast %23 : vector<1x1920xf32> to vector<10x1920xf32>
    %25 = arith.mulf %22, %24 : vector<10x1920xf32>
    %cst_14 = arith.constant dense<0.000000e+00> : vector<10xf32>
    %26 = vector.multi_reduction <add>, %25, %cst_14 [1] : vector<10x1920xf32> to vector<10xf32>
    %27 = vector.shape_cast %26 : vector<10xf32> to vector<10x1xf32>
    %28 = arith.addf %20, %27 : vector<10x1xf32>
    %c0_15 = arith.constant 0 : index
    %c5760 = arith.constant 5760 : index
    %29 = vector.load %arg2[%c0_15, %c5760] : memref<10x42240xbf16, #tpu.memory_space<vmem>>, vector<10x1920xbf16>
    %30 = arith.extf %29 : vector<10x1920xbf16> to vector<10x1920xf32>
    %c0_16 = arith.constant 0 : index
    %c5760_17 = arith.constant 5760 : index
    %31 = vector.load %arg1[%c0_16, %c5760_17] : memref<1x42240xf32, #tpu.memory_space<vmem>>, vector<1x1920xf32>
    %32 = vector.broadcast %31 : vector<1x1920xf32> to vector<10x1920xf32>
    %33 = arith.mulf %30, %32 : vector<10x1920xf32>
    %cst_18 = arith.constant dense<0.000000e+00> : vector<10xf32>
    %34 = vector.multi_reduction <add>, %33, %cst_18 [1] : vector<10x1920xf32> to vector<10xf32>
    %35 = vector.shape_cast %34 : vector<10xf32> to vector<10x1xf32>
    %36 = arith.addf %28, %35 : vector<10x1xf32>
    %c0_19 = arith.constant 0 : index
    %c7680 = arith.constant 7680 : index
    %37 = vector.load %arg2[%c0_19, %c7680] : memref<10x42240xbf16, #tpu.memory_space<vmem>>, vector<10x1920xbf16>
    %38 = arith.extf %37 : vector<10x1920xbf16> to vector<10x1920xf32>
    %c0_20 = arith.constant 0 : index
    %c7680_21 = arith.constant 7680 : index
    %39 = vector.load %arg1[%c0_20, %c7680_21] : memref<1x42240xf32, #tpu.memory_space<vmem>>, vector<1x1920xf32>
    %40 = vector.broadcast %39 : vector<1x1920xf32> to vector<10x1920xf32>
    %41 = arith.mulf %38, %40 : vector<10x1920xf32>
    %cst_22 = arith.constant dense<0.000000e+00> : vector<10xf32>
    %42 = vector.multi_reduction <add>, %41, %cst_22 [1] : vector<10x1920xf32> to vector<10xf32>
    %43 = vector.shape_cast %42 : vector<10xf32> to vector<10x1xf32>
    %44 = arith.addf %36, %43 : vector<10x1xf32>
    %c0_23 = arith.constant 0 : index
    %c9600 = arith.constant 9600 : index
    %45 = vector.load %arg2[%c0_23, %c9600] : memref<10x42240xbf16, #tpu.memory_space<vmem>>, vector<10x1920xbf16>
    %46 = arith.extf %45 : vector<10x1920xbf16> to vector<10x1920xf32>
    %c0_24 = arith.constant 0 : index
    %c9600_25 = arith.constant 9600 : index
    %47 = vector.load %arg1[%c0_24, %c9600_25] : memref<1x42240xf32, #tpu.memory_space<vmem>>, vector<1x1920xf32>
    %48 = vector.broadcast %47 : vector<1x1920xf32> to vector<10x1920xf32>
    %49 = arith.mulf %46, %48 : vector<10x1920xf32>
    %cst_26 = arith.constant dense<0.000000e+00> : vector<10xf32>
    %50 = vector.multi_reduction <add>, %49, %cst_26 [1] : vector<10x1920xf32> to vector<10xf32>
    %51 = vector.shape_cast %50 : vector<10xf32> to vector<10x1xf32>
    %52 = arith.addf %44, %51 : vector<10x1xf32>
    %c0_27 = arith.constant 0 : index
    %c11520 = arith.constant 11520 : index
    %53 = vector.load %arg2[%c0_27, %c11520] : memref<10x42240xbf16, #tpu.memory_space<vmem>>, vector<10x1920xbf16>
    %54 = arith.extf %53 : vector<10x1920xbf16> to vector<10x1920xf32>
    %c0_28 = arith.constant 0 : index
    %c11520_29 = arith.constant 11520 : index
    %55 = vector.load %arg1[%c0_28, %c11520_29] : memref<1x42240xf32, #tpu.memory_space<vmem>>, vector<1x1920xf32>
    %56 = vector.broadcast %55 : vector<1x1920xf32> to vector<10x1920xf32>
    %57 = arith.mulf %54, %56 : vector<10x1920xf32>
    %cst_30 = arith.constant dense<0.000000e+00> : vector<10xf32>
    %58 = vector.multi_reduction <add>, %57, %cst_30 [1] : vector<10x1920xf32> to vector<10xf32>
    %59 = vector.shape_cast %58 : vector<10xf32> to vector<10x1xf32>
    %60 = arith.addf %52, %59 : vector<10x1xf32>
    %c0_31 = arith.constant 0 : index
    %c13440 = arith.constant 13440 : index
    %61 = vector.load %arg2[%c0_31, %c13440] : memref<10x42240xbf16, #tpu.memory_space<vmem>>, vector<10x1920xbf16>
    %62 = arith.extf %61 : vector<10x1920xbf16> to vector<10x1920xf32>
    %c0_32 = arith.constant 0 : index
    %c13440_33 = arith.constant 13440 : index
    %63 = vector.load %arg1[%c0_32, %c13440_33] : memref<1x42240xf32, #tpu.memory_space<vmem>>, vector<1x1920xf32>
    %64 = vector.broadcast %63 : vector<1x1920xf32> to vector<10x1920xf32>
    %65 = arith.mulf %62, %64 : vector<10x1920xf32>
    %cst_34 = arith.constant dense<0.000000e+00> : vector<10xf32>
    %66 = vector.multi_reduction <add>, %65, %cst_34 [1] : vector<10x1920xf32> to vector<10xf32>
    %67 = vector.shape_cast %66 : vector<10xf32> to vector<10x1xf32>
    %68 = arith.addf %60, %67 : vector<10x1xf32>
    %c0_35 = arith.constant 0 : index
    %c15360 = arith.constant 15360 : index
    %69 = vector.load %arg2[%c0_35, %c15360] : memref<10x42240xbf16, #tpu.memory_space<vmem>>, vector<10x1920xbf16>
    %70 = arith.extf %69 : vector<10x1920xbf16> to vector<10x1920xf32>
    %c0_36 = arith.constant 0 : index
    %c15360_37 = arith.constant 15360 : index
    %71 = vector.load %arg1[%c0_36, %c15360_37] : memref<1x42240xf32, #tpu.memory_space<vmem>>, vector<1x1920xf32>
    %72 = vector.broadcast %71 : vector<1x1920xf32> to vector<10x1920xf32>
    %73 = arith.mulf %70, %72 : vector<10x1920xf32>
    %cst_38 = arith.constant dense<0.000000e+00> : vector<10xf32>
    %74 = vector.multi_reduction <add>, %73, %cst_38 [1] : vector<10x1920xf32> to vector<10xf32>
    %75 = vector.shape_cast %74 : vector<10xf32> to vector<10x1xf32>
    %76 = arith.addf %68, %75 : vector<10x1xf32>
    %c0_39 = arith.constant 0 : index
    %c17280 = arith.constant 17280 : index
    %77 = vector.load %arg2[%c0_39, %c17280] : memref<10x42240xbf16, #tpu.memory_space<vmem>>, vector<10x1920xbf16>
    %78 = arith.extf %77 : vector<10x1920xbf16> to vector<10x1920xf32>
    %c0_40 = arith.constant 0 : index
    %c17280_41 = arith.constant 17280 : index
    %79 = vector.load %arg1[%c0_40, %c17280_41] : memref<1x42240xf32, #tpu.memory_space<vmem>>, vector<1x1920xf32>
    %80 = vector.broadcast %79 : vector<1x1920xf32> to vector<10x1920xf32>
    %81 = arith.mulf %78, %80 : vector<10x1920xf32>
    %cst_42 = arith.constant dense<0.000000e+00> : vector<10xf32>
    %82 = vector.multi_reduction <add>, %81, %cst_42 [1] : vector<10x1920xf32> to vector<10xf32>
    %83 = vector.shape_cast %82 : vector<10xf32> to vector<10x1xf32>
    %84 = arith.addf %76, %83 : vector<10x1xf32>
    %c0_43 = arith.constant 0 : index
    %c19200 = arith.constant 19200 : index
    %85 = vector.load %arg2[%c0_43, %c19200] : memref<10x42240xbf16, #tpu.memory_space<vmem>>, vector<10x1920xbf16>
    %86 = arith.extf %85 : vector<10x1920xbf16> to vector<10x1920xf32>
    %c0_44 = arith.constant 0 : index
    %c19200_45 = arith.constant 19200 : index
    %87 = vector.load %arg1[%c0_44, %c19200_45] : memref<1x42240xf32, #tpu.memory_space<vmem>>, vector<1x1920xf32>
    %88 = vector.broadcast %87 : vector<1x1920xf32> to vector<10x1920xf32>
    %89 = arith.mulf %86, %88 : vector<10x1920xf32>
    %cst_46 = arith.constant dense<0.000000e+00> : vector<10xf32>
    %90 = vector.multi_reduction <add>, %89, %cst_46 [1] : vector<10x1920xf32> to vector<10xf32>
    %91 = vector.shape_cast %90 : vector<10xf32> to vector<10x1xf32>
    %92 = arith.addf %84, %91 : vector<10x1xf32>
    %c0_47 = arith.constant 0 : index
    %c21120 = arith.constant 21120 : index
    %93 = vector.load %arg2[%c0_47, %c21120] : memref<10x42240xbf16, #tpu.memory_space<vmem>>, vector<10x1920xbf16>
    %94 = arith.extf %93 : vector<10x1920xbf16> to vector<10x1920xf32>
    %c0_48 = arith.constant 0 : index
    %c21120_49 = arith.constant 21120 : index
    %95 = vector.load %arg1[%c0_48, %c21120_49] : memref<1x42240xf32, #tpu.memory_space<vmem>>, vector<1x1920xf32>
    %96 = vector.broadcast %95 : vector<1x1920xf32> to vector<10x1920xf32>
    %97 = arith.mulf %94, %96 : vector<10x1920xf32>
    %cst_50 = arith.constant dense<0.000000e+00> : vector<10xf32>
    %98 = vector.multi_reduction <add>, %97, %cst_50 [1] : vector<10x1920xf32> to vector<10xf32>
    %99 = vector.shape_cast %98 : vector<10xf32> to vector<10x1xf32>
    %100 = arith.addf %92, %99 : vector<10x1xf32>
    %c0_51 = arith.constant 0 : index
    %c23040 = arith.constant 23040 : index
    %101 = vector.load %arg2[%c0_51, %c23040] : memref<10x42240xbf16, #tpu.memory_space<vmem>>, vector<10x1920xbf16>
    %102 = arith.extf %101 : vector<10x1920xbf16> to vector<10x1920xf32>
    %c0_52 = arith.constant 0 : index
    %c23040_53 = arith.constant 23040 : index
    %103 = vector.load %arg1[%c0_52, %c23040_53] : memref<1x42240xf32, #tpu.memory_space<vmem>>, vector<1x1920xf32>
    %104 = vector.broadcast %103 : vector<1x1920xf32> to vector<10x1920xf32>
    %105 = arith.mulf %102, %104 : vector<10x1920xf32>
    %cst_54 = arith.constant dense<0.000000e+00> : vector<10xf32>
    %106 = vector.multi_reduction <add>, %105, %cst_54 [1] : vector<10x1920xf32> to vector<10xf32>
    %107 = vector.shape_cast %106 : vector<10xf32> to vector<10x1xf32>
    %108 = arith.addf %100, %107 : vector<10x1xf32>
    %c0_55 = arith.constant 0 : index
    %c24960 = arith.constant 24960 : index
    %109 = vector.load %arg2[%c0_55, %c24960] : memref<10x42240xbf16, #tpu.memory_space<vmem>>, vector<10x1920xbf16>
    %110 = arith.extf %109 : vector<10x1920xbf16> to vector<10x1920xf32>
    %c0_56 = arith.constant 0 : index
    %c24960_57 = arith.constant 24960 : index
    %111 = vector.load %arg1[%c0_56, %c24960_57] : memref<1x42240xf32, #tpu.memory_space<vmem>>, vector<1x1920xf32>
    %112 = vector.broadcast %111 : vector<1x1920xf32> to vector<10x1920xf32>
    %113 = arith.mulf %110, %112 : vector<10x1920xf32>
    %cst_58 = arith.constant dense<0.000000e+00> : vector<10xf32>
    %114 = vector.multi_reduction <add>, %113, %cst_58 [1] : vector<10x1920xf32> to vector<10xf32>
    %115 = vector.shape_cast %114 : vector<10xf32> to vector<10x1xf32>
    %116 = arith.addf %108, %115 : vector<10x1xf32>
    %c0_59 = arith.constant 0 : index
    %c26880 = arith.constant 26880 : index
    %117 = vector.load %arg2[%c0_59, %c26880] : memref<10x42240xbf16, #tpu.memory_space<vmem>>, vector<10x1920xbf16>
    %118 = arith.extf %117 : vector<10x1920xbf16> to vector<10x1920xf32>
    %c0_60 = arith.constant 0 : index
    %c26880_61 = arith.constant 26880 : index
    %119 = vector.load %arg1[%c0_60, %c26880_61] : memref<1x42240xf32, #tpu.memory_space<vmem>>, vector<1x1920xf32>
    %120 = vector.broadcast %119 : vector<1x1920xf32> to vector<10x1920xf32>
    %121 = arith.mulf %118, %120 : vector<10x1920xf32>
    %cst_62 = arith.constant dense<0.000000e+00> : vector<10xf32>
    %122 = vector.multi_reduction <add>, %121, %cst_62 [1] : vector<10x1920xf32> to vector<10xf32>
    %123 = vector.shape_cast %122 : vector<10xf32> to vector<10x1xf32>
    %124 = arith.addf %116, %123 : vector<10x1xf32>
    %c0_63 = arith.constant 0 : index
    %c28800 = arith.constant 28800 : index
    %125 = vector.load %arg2[%c0_63, %c28800] : memref<10x42240xbf16, #tpu.memory_space<vmem>>, vector<10x1920xbf16>
    %126 = arith.extf %125 : vector<10x1920xbf16> to vector<10x1920xf32>
    %c0_64 = arith.constant 0 : index
    %c28800_65 = arith.constant 28800 : index
    %127 = vector.load %arg1[%c0_64, %c28800_65] : memref<1x42240xf32, #tpu.memory_space<vmem>>, vector<1x1920xf32>
    %128 = vector.broadcast %127 : vector<1x1920xf32> to vector<10x1920xf32>
    %129 = arith.mulf %126, %128 : vector<10x1920xf32>
    %cst_66 = arith.constant dense<0.000000e+00> : vector<10xf32>
    %130 = vector.multi_reduction <add>, %129, %cst_66 [1] : vector<10x1920xf32> to vector<10xf32>
    %131 = vector.shape_cast %130 : vector<10xf32> to vector<10x1xf32>
    %132 = arith.addf %124, %131 : vector<10x1xf32>
    %c0_67 = arith.constant 0 : index
    %c30720 = arith.constant 30720 : index
    %133 = vector.load %arg2[%c0_67, %c30720] : memref<10x42240xbf16, #tpu.memory_space<vmem>>, vector<10x1920xbf16>
    %134 = arith.extf %133 : vector<10x1920xbf16> to vector<10x1920xf32>
    %c0_68 = arith.constant 0 : index
    %c30720_69 = arith.constant 30720 : index
    %135 = vector.load %arg1[%c0_68, %c30720_69] : memref<1x42240xf32, #tpu.memory_space<vmem>>, vector<1x1920xf32>
    %136 = vector.broadcast %135 : vector<1x1920xf32> to vector<10x1920xf32>
    %137 = arith.mulf %134, %136 : vector<10x1920xf32>
    %cst_70 = arith.constant dense<0.000000e+00> : vector<10xf32>
    %138 = vector.multi_reduction <add>, %137, %cst_70 [1] : vector<10x1920xf32> to vector<10xf32>
    %139 = vector.shape_cast %138 : vector<10xf32> to vector<10x1xf32>
    %140 = arith.addf %132, %139 : vector<10x1xf32>
    %c0_71 = arith.constant 0 : index
    %c32640 = arith.constant 32640 : index
    %141 = vector.load %arg2[%c0_71, %c32640] : memref<10x42240xbf16, #tpu.memory_space<vmem>>, vector<10x1920xbf16>
    %142 = arith.extf %141 : vector<10x1920xbf16> to vector<10x1920xf32>
    %c0_72 = arith.constant 0 : index
    %c32640_73 = arith.constant 32640 : index
    %143 = vector.load %arg1[%c0_72, %c32640_73] : memref<1x42240xf32, #tpu.memory_space<vmem>>, vector<1x1920xf32>
    %144 = vector.broadcast %143 : vector<1x1920xf32> to vector<10x1920xf32>
    %145 = arith.mulf %142, %144 : vector<10x1920xf32>
    %cst_74 = arith.constant dense<0.000000e+00> : vector<10xf32>
    %146 = vector.multi_reduction <add>, %145, %cst_74 [1] : vector<10x1920xf32> to vector<10xf32>
    %147 = vector.shape_cast %146 : vector<10xf32> to vector<10x1xf32>
    %148 = arith.addf %140, %147 : vector<10x1xf32>
    %c0_75 = arith.constant 0 : index
    %c34560 = arith.constant 34560 : index
    %149 = vector.load %arg2[%c0_75, %c34560] : memref<10x42240xbf16, #tpu.memory_space<vmem>>, vector<10x1920xbf16>
    %150 = arith.extf %149 : vector<10x1920xbf16> to vector<10x1920xf32>
    %c0_76 = arith.constant 0 : index
    %c34560_77 = arith.constant 34560 : index
    %151 = vector.load %arg1[%c0_76, %c34560_77] : memref<1x42240xf32, #tpu.memory_space<vmem>>, vector<1x1920xf32>
    %152 = vector.broadcast %151 : vector<1x1920xf32> to vector<10x1920xf32>
    %153 = arith.mulf %150, %152 : vector<10x1920xf32>
    %cst_78 = arith.constant dense<0.000000e+00> : vector<10xf32>
    %154 = vector.multi_reduction <add>, %153, %cst_78 [1] : vector<10x1920xf32> to vector<10xf32>
    %155 = vector.shape_cast %154 : vector<10xf32> to vector<10x1xf32>
    %156 = arith.addf %148, %155 : vector<10x1xf32>
    %c0_79 = arith.constant 0 : index
    %c36480 = arith.constant 36480 : index
    %157 = vector.load %arg2[%c0_79, %c36480] : memref<10x42240xbf16, #tpu.memory_space<vmem>>, vector<10x1920xbf16>
    %158 = arith.extf %157 : vector<10x1920xbf16> to vector<10x1920xf32>
    %c0_80 = arith.constant 0 : index
    %c36480_81 = arith.constant 36480 : index
    %159 = vector.load %arg1[%c0_80, %c36480_81] : memref<1x42240xf32, #tpu.memory_space<vmem>>, vector<1x1920xf32>
    %160 = vector.broadcast %159 : vector<1x1920xf32> to vector<10x1920xf32>
    %161 = arith.mulf %158, %160 : vector<10x1920xf32>
    %cst_82 = arith.constant dense<0.000000e+00> : vector<10xf32>
    %162 = vector.multi_reduction <add>, %161, %cst_82 [1] : vector<10x1920xf32> to vector<10xf32>
    %163 = vector.shape_cast %162 : vector<10xf32> to vector<10x1xf32>
    %164 = arith.addf %156, %163 : vector<10x1xf32>
    %c0_83 = arith.constant 0 : index
    %c38400 = arith.constant 38400 : index
    %165 = vector.load %arg2[%c0_83, %c38400] : memref<10x42240xbf16, #tpu.memory_space<vmem>>, vector<10x1920xbf16>
    %166 = arith.extf %165 : vector<10x1920xbf16> to vector<10x1920xf32>
    %c0_84 = arith.constant 0 : index
    %c38400_85 = arith.constant 38400 : index
    %167 = vector.load %arg1[%c0_84, %c38400_85] : memref<1x42240xf32, #tpu.memory_space<vmem>>, vector<1x1920xf32>
    %168 = vector.broadcast %167 : vector<1x1920xf32> to vector<10x1920xf32>
    %169 = arith.mulf %166, %168 : vector<10x1920xf32>
    %cst_86 = arith.constant dense<0.000000e+00> : vector<10xf32>
    %170 = vector.multi_reduction <add>, %169, %cst_86 [1] : vector<10x1920xf32> to vector<10xf32>
    %171 = vector.shape_cast %170 : vector<10xf32> to vector<10x1xf32>
    %172 = arith.addf %164, %171 : vector<10x1xf32>
    %c0_87 = arith.constant 0 : index
    %c40320 = arith.constant 40320 : index
    %173 = vector.load %arg2[%c0_87, %c40320] : memref<10x42240xbf16, #tpu.memory_space<vmem>>, vector<10x1920xbf16>
    %174 = arith.extf %173 : vector<10x1920xbf16> to vector<10x1920xf32>
    %c0_88 = arith.constant 0 : index
    %c40320_89 = arith.constant 40320 : index
    %175 = vector.load %arg1[%c0_88, %c40320_89] : memref<1x42240xf32, #tpu.memory_space<vmem>>, vector<1x1920xf32>
    %176 = vector.broadcast %175 : vector<1x1920xf32> to vector<10x1920xf32>
    %177 = arith.mulf %174, %176 : vector<10x1920xf32>
    %cst_90 = arith.constant dense<0.000000e+00> : vector<10xf32>
    %178 = vector.multi_reduction <add>, %177, %cst_90 [1] : vector<10x1920xf32> to vector<10xf32>
    %179 = vector.shape_cast %178 : vector<10xf32> to vector<10x1xf32>
    %180 = arith.addf %172, %179 : vector<10x1xf32>
    %181 = arith.addf %3, %180 : vector<10x1xf32>
    %c0_91 = arith.constant 0 : index
    %c0_92 = arith.constant 0 : index
    %182 = vector.load %arg4[%c0_91, %c0_92] : memref<10x1xf32, #tpu.memory_space<vmem>>, vector<10x1xf32>
    tpu.vector_store %arg4[%c0_91, %c0_92], %181 {strides = array<i32>} : memref<10x1xf32, #tpu.memory_space<vmem>>, vector<10x1xf32>,
    %c1_i32 = arith.constant 1 : i32
    %183 = arith.cmpi eq, %arg0, %c1_i32 : i32
    %184 = arith.extui %183 : i1 to i32
    %c0_i32_93 = arith.constant 0 : i32
    %185 = arith.cmpi ne, %184, %c0_i32_93 : i32
    scf.if %185 {
      %c0_94 = arith.constant 0 : index
      %c0_95 = arith.constant 0 : index
      %186 = vector.load %arg4[%c0_94, %c0_95] : memref<10x1xf32, #tpu.memory_space<vmem>>, vector<10x1xf32>
      %c0_96 = arith.constant 0 : index
      %c0_97 = arith.constant 0 : index
      %187 = vector.load %arg3[%c0_96, %c0_97] : memref<10x1xf32, #tpu.memory_space<vmem>>, vector<10x1xf32>
      %188 = arith.addf %186, %187 : vector<10x1xf32>
      %cst_98 = arith.constant dense<0xFF800000> : vector<1xf32>
      %189 = vector.multi_reduction <maximumf>, %188, %cst_98 [0] : vector<10x1xf32> to vector<1xf32>
      %190 = vector.shape_cast %189 : vector<1xf32> to vector<1x1xf32>
      %191 = vector.broadcast %190 : vector<1x1xf32> to vector<10x1xf32>
      %192 = arith.subf %188, %191 : vector<10x1xf32>
      %193 = math.exp %192 : vector<10x1xf32>
      %cst_99 = arith.constant dense<0.000000e+00> : vector<1xf32>
      %194 = vector.multi_reduction <add>, %193, %cst_99 [0] : vector<10x1xf32> to vector<1xf32>
      %195 = vector.shape_cast %194 : vector<1xf32> to vector<1x1xf32>
      %196 = vector.broadcast %195 : vector<1x1xf32> to vector<10x1xf32>
      %197 = arith.divf %193, %196 : vector<10x1xf32>
      %c0_100 = arith.constant 0 : index
      %c0_101 = arith.constant 0 : index
      %198 = vector.load %arg4[%c0_100, %c0_101] : memref<10x1xf32, #tpu.memory_space<vmem>>, vector<10x1xf32>
      tpu.vector_store %arg4[%c0_100, %c0_101], %197 {strides = array<i32>} : memref<10x1xf32, #tpu.memory_space<vmem>>, vector<10x1xf32>,
    } else {
    }
    return
  }
  func.func @transform_0(%arg0: i32) -> (i32, i32) {
    %c0_i32 = arith.constant 0 : i32
    %c0_i32_0 = arith.constant 0 : i32
    return %c0_i32, %arg0 : i32, i32
  }
  func.func @transform_1(%arg0: i32) -> (i32, i32) {
    %c0_i32 = arith.constant 0 : i32
    %c0_i32_0 = arith.constant 0 : i32
    return %c0_i32, %arg0 : i32, i32
  }
  func.func @transform_2(%arg0: i32) -> (i32, i32) {
    %c0_i32 = arith.constant 0 : i32
    %c0_i32_0 = arith.constant 0 : i32
    %c0_i32_1 = arith.constant 0 : i32
    return %c0_i32, %c0_i32_0 : i32, i32
  }
  func.func @transform_3(%arg0: i32) -> (i32, i32) {
    %c0_i32 = arith.constant 0 : i32
    %c0_i32_0 = arith.constant 0 : i32
    %c0_i32_1 = arith.constant 0 : i32
    return %c0_i32, %c0_i32_0 : i32, i32
  }
}

</mosaic_0001>

<bundles_post_ra>
// kernel: lstm_forward.1
= control target key start
LH: loop header
LB: loop body
LE: loop exit
PB: predicated region body
PF: predicated region fallthrough
CT: control target
= control target key end

     0   :  { %8 = vsyncpa [#allocation3], 0  ;;  %s6905_s0 = inlined_call_operand.vmem [shape: f32[1,84480], index: 0, kind: input, shape index: {}]   ;;  %s6906_s1 = inlined_call_operand.hbm [shape: bf16[10,84480], index: 1, kind: input, shape index: {}]   ;;  %s6907_s2 = inlined_call_operand.vmem [shape: f32[10,1], index: 2, kind: input, shape index: {}]   ;;  %s6908_s3 = inlined_call_operand.vmem [shape: f32[10,1], index: 3, kind: output, shape index: {}]  }
   0x1   :  { %10 = vsyncpa [#allocation3 + $0x1], 0  ;;  %s3964_s12 = smov 0   ;;  %s3966_s13 = smov 0  }
   0x2   :  { %s3968_s14 = smov 0   ;;  %s3970_s15 = smov 0  }
   0x3 LB: > { %s3983_s16 = sadd.s32 4294967295, %s3938_s15   ;;  %s3986_s17 = sadd.s32 1, %s3938_s15   ;;  %s3938_s15 = sphi %s3970_s15, %s7126_s15   ;;  %s3934_s14 = sphi %s3968_s14, %s7125_s14   ;;  %s3930_s13 = sphi %s3966_s13, %s7124_s13   ;;  %s3926_s12 = sphi %s3964_s12, %s7123_s12  }
   0x4   : > { %s46_s18 = ssub.s32 %s3938_s15, %s3986_s17  ;;  %s49_s19 = sadd.s32 1, %s3934_s14 }
   0x5   : > { %p47_p0 = scmp.eq.s32.totalorder %s46_s18, 0  ;;  %p56_p1 = scmp.ne.s32.totalorder %s3934_s14, %s3930_s13 }
   0x6   : > { %p57_p2 = scmp.eq.s32.totalorder %s3938_s15, 0  ;;  %p62_p3 = scmp.ne.s32.totalorder %s3930_s13, %s3926_s12 }
   0x7   : > { %s3996_s20 = scalar_select %p47_p0, %s3934_s14, %s49_s19  }
   0x8   : > { %p58_p4 = por %p57_p2, %p56_p1  ;;  %p63_p5 = scmp.eq.s32.totalorder %s3983_s16, 0 }
   0x9   : > { %p3831_p6 = scmp.lt.s32.totalorder %s3938_s15, 2  ;;  %s139_s22 = sand.u32 1, %s3934_s14  }
   0xa   : > { %p4000_p7 = por %p63_p5, %p62_p3  ;;  %s3823_s23 = smul.u32 2640, %s139_s22 }
   0xb   : > { %s3822_s24 = smul.u32 1320, %s3938_s15  ;;  %p4006_p8 = pnand %p3831_p6, %p58_p4 }
   0xc   : > { %s143_s29 = scalar_lea.vmem [#allocation2], %s3823_s23  ;;  %s140_s5 = scalar_lea.sflag [#allocation3], %s139_s22 }
   0xd   : > { %s148_s28 = scalar_lea.hbm %s6906_s1, %s3822_s24  ;;  %s151_s30 = sshll.u32 %s143_s29, 4  ;;  %s152_s30 = int_to_ptr.vmem [resolvable:$true] %s151_s30 }
   0xe   : > { %s149_s4 = sshll.u32 %s148_s28, 4  ;;  %p3878_p10 = pneg %p4006_p8  ;;  %s150_s4 = int_to_ptr.hbm [resolvable:$true] %s149_s4 }
   0xf   : > { %s3874_s6 = sshra.s32 %s150_s4, 4  ;;  %s3881_s10 = scalar_lea.hbm %s6906_s1, 5280  ;;  %s3875_s6 = int_to_ptr.hbm [resolvable:$true] %s3874_s6 }
  0x10   : > { %s3876_s7 = scalar_lea.hbm %s3875_s6, 2640  ;;  %p3882_p13 = scmp.lt.s32.totalorder %s3875_s6, %s6906_s1 }
  0x11   : > { %p3877_p9 = scmp.ne.s32.totalorder %s3875_s6, %s3876_s7  ;;  %p3883_p0 = scmp.lt.s32.totalorder %s3881_s10, %s3876_s7 }
  0x13   : > { %p3879_p11 = pnand %p3878_p10, %p3877_p9  ;;  %p3884_p1 = por %p3883_p0, %p3882_p13 }
  0x15   : > { %p3880_p12 = pneg %p3879_p11 }
  0x17   : > { %p3885_p2 = pnand %p3884_p1, %p3880_p12 }
  0x19   : > { %3888 = shalt.err (!%p3885_p2)
}
  0x1a   : > { %s3940_s18 = smov 42240   ;;  %s3941_s19 = smov 21120  }
  0x1b   : > { %s3942_s22 = smov 1320   ;;  %p3817_p3 = scmp.ge.s32.totalorder %s3938_s15, 1 }
  0x1c   : > { %3830 = dma.hbm_to_vmem [thread:$0]  (!%p4006_p8), %s150_s4, 42240, %s152_s30, %s140_s5, %s3940_s18, %s3941_s19, %s3942_s22  }
  0x1d   : > { %p159_p4 = scmp.lt.s32.totalorder %s3938_s15, 3 }
  0x1f   : > { %p160_p5 = pnand %p3817_p3, %p159_p4 }
  0x20   : > { %s165_s23 = sand.u32 (!%p160_p5), 1, %s3930_s13  }
  0x21   : > { %163 = sbr.rel (%p160_p5) target bundleno = 933 (0x3a5), region = 32  ;;  %s166_s26 = scalar_lea.sflag (!%p160_p5), [#allocation3], %s165_s23 }
  0x22   : > { %s3824_s24 = smul.u32 (!%p160_p5), 2640, %s165_s23 }
  0x24   : > { %s4026_s27 = scalar_lea.vmem (!%p160_p5), [#allocation2], %s3824_s24 }
  0x26   : > { %3921 = dma.done.wait (%p4000_p7), %s166_s26, 42240  }
  0x27   : > { %3923 = vsyncadd (%p4000_p7), %s166_s26, 4294925056  ;;  %s192_s28 = smul.u32 330, %s3983_s16  ;;  %p3818_p8 = scmp.ne.s32.totalorder %s3983_s16, 0 }
  0x29   : > { %p193_p6 = scmp.lt.s32.totalorder %s192_s28, 659  ;;  %201 = sbr.rel (%p3818_p8) target bundleno = 49 (0x31), region = 40 }
  0x2b   : > { %s7128_s28 = smov (!%p193_p6, %s192_s28), 659 }
  0x2c   : > { %s4036_s29 = scalar_lea.vmem %s6905_s0, %s7128_s28 }
  0x2e   : > { %vm202_vm0 = vcmask 7168   ;;  %vm204_vm1 = vcmask 1024   ;;  %v3943_v0 = vmov 0.0  }
  0x2f   : > { %203 = vst.msk [vmem:[%s6908_s3] sm:$0xff] %vm202_vm0, %v3943_v0 }
  0x30   : > { %205 = vst.msk [vmem:[%s6908_s3 + $0x8] sm:$0x3] %vm204_vm1, %v3943_v0 }
  0x31 PF: > { %v368_v1 = vld [vmem:[%s4026_s27 + $0x3c] sm:$0xff]  ;;  %v369_v3 = vld [vmem:[%s4026_s27 + $0x44] sm:$0xff]  ;;  %v370_v4 = vld [vmem:[%s4026_s27 + $0x4c] sm:$0xff]  ;;  %vm334_vm2 = vcmask 1041408   ;;  %vm3711_vm3 = vcmask 1024   ;;  %vm3709_vm4 = vcmask 7168  }
  0x32   : > { %v4047_v2 = vld [vmem:[%s4036_s29 + $0xf] sm:$0xff]  ;;  %v384_v6 = vunpack.c.l.bf16 %v368_v1  ;;  %v385_v7 = vunpack.c.h.bf16 %v368_v1  ;;  %v386_v13 = vunpack.c.l.bf16 %v369_v3  ;;  %v387_v14 = vunpack.c.h.bf16 %v369_v3  ;;  %v4059_v21 = vld [vmem:[%s4036_s29 + $0x17] sm:$0xff]  ;;  %v4088_v50 = vld [vmem:[%s4036_s29] sm:$0xff]  ;;  %p3819_p7 = scmp.ne.s32.totalorder %s3983_s16, 1 }
  0x33   : > { %v371_v5 = vld [vmem:[%s4026_s27 + $0x54] sm:$0xff]  ;;  %v418_v8 = vperm.slane %v4047_v2, 0  ;;  %v372_v9 = vld [vmem:[%s4026_s27 + $0x5c] sm:$0xff]  ;;  %v419_v10 = vperm.slane %v4047_v2, 1  ;;  %v373_v11 = vld [vmem:[%s4026_s27 + $0x64] sm:$0xff]  ;;  %v420_v15 = vperm.slane %v4047_v2, 2  ;;  %v388_v16 = vunpack.c.l.bf16 %v370_v4 }
  0x34   : > { %v374_v12 = vld [vmem:[%s4026_s27 + $0x6c] sm:$0xff]  ;;  %v389_v17 = vunpack.c.h.bf16 %v370_v4  ;;  %v390_v18 = vunpack.c.l.bf16 %v371_v5  ;;  %v391_v19 = vunpack.c.h.bf16 %v371_v5  ;;  %v392_v20 = vunpack.c.l.bf16 %v372_v9  ;;  %v375_v29 = vld [vmem:[%s4026_s27 + $0x74] sm:$0xf]  ;;  %v208_v49 = vld [vmem:[%s4026_s27] sm:$0xff] }
  0x35   : > { %v421_v22 = vperm.slane %v4047_v2, 3  ;;  %v448_v23 = vmul.f32 %v418_v8, %v384_v6  ;;  %v449_v24 = vmul.f32 %v419_v10, %v385_v7  ;;  %v393_v25 = vunpack.c.h.bf16 %v372_v9  ;;  %v209_v55 = vld [vmem:[%s4026_s27 + $0x8] sm:$0xff]  ;;  %v210_v60 = vld [vmem:[%s4026_s27 + $0x10] sm:$0xff]  ;;  %v211_v61 = vld [vmem:[%s4026_s27 + $0x18] sm:$0xff] }
  0x36   : > { %v394_v26 = vunpack.c.l.bf16 %v373_v11  ;;  %v395_v27 = vunpack.c.h.bf16 %v373_v11  ;;  %v396_v28 = vunpack.c.l.bf16 %v374_v12  ;;  %v422_v30 = vperm.slane %v4047_v2, 4  ;;  %v212_v62 = vld [vmem:[%s4026_s27 + $0x20] sm:$0xff]  ;;  %v213_v9 = vld [vmem:[%s4026_s27 + $0x28] sm:$0xff]  ;;  %v214_v11 = vld [vmem:[%s4026_s27 + $0x30] sm:$0xff] }
  0x37   : > { %v423_v31 = vperm.slane %v4047_v2, 5  ;;  %v424_v32 = vperm.slane %v4047_v2, 6  ;;  %v450_v33 = vmul.f32 %v420_v15, %v386_v13  ;;  %v425_v34 = vperm.slane %v4047_v2, 7 }
  0x38   : > { %v426_v35 = vperm.slane %v4059_v21, 0  ;;  %v6978_v36 = vperm.slane %v4059_v21, 1  ;;  %v6956_v37 = vperm.slane %v4059_v21, 2  ;;  %v6955_v38 = vperm.slane %v4059_v21, 3 }
  0x39   : > { %v6954_v39 = vperm.slane %v4059_v21, 4  ;;  %v451_v40 = vmul.f32 %v421_v22, %v387_v14  ;;  %v478_v41 = vadd.f32 %v449_v24, %v448_v23  ;;  %v397_v42 = vunpack.c.h.bf16 %v374_v12  ;;  %v4128_v24 = vld [vmem:[%s4036_s29 + $0x8] sm:$0xff] }
  0x3a   : > { %v398_v43 = vunpack.c.l.bf16 %v375_v29  ;;  %v6953_v44 = vperm.slane %v4059_v21, 5  ;;  %v6952_v45 = vperm.slane %v4059_v21, 6  ;;  %v452_v46 = vmul.f32 %v422_v30, %v388_v16 }
  0x3b   : > { %v453_v47 = vmul.f32 %v423_v31, %v389_v17  ;;  %v479_v48 = vadd.f32 %v478_v41, %v450_v33  ;;  %v454_v51 = vmul.f32 %v424_v32, %v390_v18  ;;  %v455_v52 = vmul.f32 %v425_v34, %v391_v19 }
  0x3c   : > { %v456_v53 = vmul.f32 %v426_v35, %v392_v20  ;;  %v457_v54 = vmul.f32 %v6978_v36, %v393_v25  ;;  %v4101_v56 = vmul.f32 %v6956_v37, %v394_v26  ;;  %v4105_v57 = vmul.f32 %v6955_v38, %v395_v27  ;;  %v4349_v37 = vld [vmem:[%s4036_s29 + $0x35] sm:$0xff] }
  0x3d   : > { %v4109_v58 = vmul.f32 %v6954_v39, %v396_v28  ;;  %v480_v59 = vadd.f32 %v479_v48, %v451_v40  ;;  %v224_v63 = vunpack.c.l.bf16 %v208_v49  ;;  %v225_v0 = vunpack.c.h.bf16 %v208_v49  ;;  %v215_v48 = vld [vmem:[%s4026_s27 + $0x38] sm:$0xf] }
  0x3e   : > { %v6941_v1 = vperm.slane %v4088_v50, 0  ;;  %v6940_v3 = vperm.slane %v4088_v50, 1  ;;  %v4118_v4 = vmul.f32 %v6953_v44, %v397_v42  ;;  %v4122_v5 = vmul.f32 %v6952_v45, %v398_v43 }
  0x3f   : > { %v481_v6 = vadd.f32 %v480_v59, %v452_v46  ;;  %v226_v7 = vunpack.c.l.bf16 %v209_v55  ;;  %v227_v12 = vunpack.c.h.bf16 %v209_v55  ;;  %v228_v13 = vunpack.c.l.bf16 %v210_v60 }
  0x40   : > { %v229_v14 = vunpack.c.h.bf16 %v210_v60  ;;  %v6938_v16 = vperm.slane %v4088_v50, 2  ;;  %v230_v18 = vunpack.c.l.bf16 %v211_v61  ;;  %v231_v19 = vunpack.c.h.bf16 %v211_v61 }
  0x41   : > { %v482_v17 = vadd.f32 %v481_v6, %v453_v47  ;;  %v232_v20 = vunpack.c.l.bf16 %v212_v62  ;;  %v233_v23 = vunpack.c.h.bf16 %v212_v62  ;;  %v6920_v25 = vperm.slane %v4088_v50, 3 }
  0x42   : > { %v288_v26 = vmul.f32 %v6941_v1, %v224_v63  ;;  %v289_v27 = vmul.f32 %v6940_v3, %v225_v0  ;;  %v234_v29 = vunpack.c.l.bf16 %v213_v9  ;;  %v235_v33 = vunpack.c.h.bf16 %v213_v9 }
  0x43   : > { %v483_v28 = vadd.f32 %v482_v17, %v454_v51  ;;  %v236_v40 = vunpack.c.l.bf16 %v214_v11  ;;  %v237_v41 = vunpack.c.h.bf16 %v214_v11  ;;  %v6919_v42 = vperm.slane %v4088_v50, 4 }
  0x44   : > { %v6918_v43 = vperm.slane %v4088_v50, 5  ;;  %v290_v46 = vmul.f32 %v6938_v16, %v226_v7  ;;  %v6917_v49 = vperm.slane %v4088_v50, 6  ;;  %v6916_v55 = vperm.slane %v4088_v50, 7 }
  0x45   : > { %v484_v47 = vadd.f32 %v483_v28, %v455_v52  ;;  %v6915_v59 = vperm.slane %v4128_v24, 0  ;;  %v6913_v51 = vperm.slane %v4128_v24, 1  ;;  %v6912_v60 = vperm.slane %v4128_v24, 2 }
  0x46   : > { %v291_v61 = vmul.f32 %v6920_v25, %v227_v12  ;;  %v318_v62 = vadd.f32 %v289_v27, %v288_v26  ;;  %v6909_v0 = vperm.slane %v4128_v24, 3  ;;  %v6910_v52 = vperm.slane %v4128_v24, 4  ;;  %v527_v27 = vld [vmem:[%s4026_s27 + $0x78] sm:$0xff]  ;;  %v534_v25 = vld [vmem:[%s4026_s27 + $0xb0] sm:$0xf] }
  0x47   : > { %v485_v63 = vadd.f32 %v484_v47, %v456_v53  ;;  %v6911_v6 = vperm.slane %v4128_v24, 5  ;;  %v238_v7 = vunpack.c.l.bf16 %v215_v48  ;;  %v6914_v9 = vperm.slane %v4128_v24, 6 }
  0x48   : > { %v292_v11 = vmul.f32 %v6919_v42, %v228_v13  ;;  %v319_v17 = vadd.f32 %v318_v62, %v290_v46  ;;  %v293_v53 = vmul.f32 %v6918_v43, %v229_v14  ;;  %v294_v12 = vmul.f32 %v6917_v49, %v230_v18  ;;  %v528_v46 = vld [vmem:[%s4026_s27 + $0x80] sm:$0xff] }
  0x49   : > { %v486_v28 = vadd.f32 %v485_v63, %v457_v54  ;;  %v295_v26 = vmul.f32 %v6916_v55, %v231_v19  ;;  %v296_v47 = vmul.f32 %v6915_v59, %v232_v20  ;;  %v297_v13 = vmul.f32 %v6913_v51, %v233_v23  ;;  %v4170_v18 = vld [vmem:[%s4036_s29 + $0x1e] sm:$0xff]  ;;  %v4201_v42 = vld [vmem:[%s4036_s29 + $0x26] sm:$0xff] }
  0x4a   : > { %v4166_v54 = vmul.f32 %v6912_v60, %v234_v29  ;;  %v320_v14 = vadd.f32 %v319_v17, %v291_v61  ;;  %v4175_v19 = vmul.f32 %v6909_v0, %v235_v33  ;;  %v4179_v20 = vmul.f32 %v6910_v52, %v236_v40  ;;  %v529_v29 = vld [vmem:[%s4026_s27 + $0x88] sm:$0xff]  ;;  %v532_v0 = vld [vmem:[%s4026_s27 + $0xa0] sm:$0xff] }
  0x4b   : > { %v487_v48 = vadd.f32 %v486_v28, %v4101_v56  ;;  %v4183_v23 = vmul.f32 %v6911_v6, %v237_v41  ;;  %v4188_v61 = vmul.f32 %v6914_v9, %v238_v7  ;;  %v530_v56 = vld [vmem:[%s4026_s27 + $0x90] sm:$0xff]  ;;  %v543_v63 = vunpack.c.l.bf16 %v527_v27  ;;  %v531_v28 = vld [vmem:[%s4026_s27 + $0x98] sm:$0xff] }
  0x4c   : > { %v321_v62 = vadd.f32 %v320_v14, %v292_v11  ;;  %v544_v17 = vunpack.c.h.bf16 %v527_v27  ;;  %v545_v40 = vunpack.c.l.bf16 %v528_v46  ;;  %v6921_v52 = vperm.slane %v4170_v18, 0  ;;  %v533_v11 = vld [vmem:[%s4026_s27 + $0xa8] sm:$0xff] }
  0x4d   : > { %v488_v33 = vadd.f32 %v487_v48, %v4105_v57  ;;  %v6923_v41 = vperm.slane %v4170_v18, 1  ;;  %v546_v60 = vunpack.c.h.bf16 %v528_v46  ;;  %v547_v51 = vunpack.c.l.bf16 %v529_v29 }
  0x4e   : > { %v322_v6 = vadd.f32 %v321_v62, %v293_v53  ;;  %v548_v7 = vunpack.c.h.bf16 %v529_v29  ;;  %v549_v14 = vunpack.c.l.bf16 %v530_v56  ;;  %v550_v59 = vunpack.c.h.bf16 %v530_v56 }
  0x4f   : > { %v489_v9 = vadd.f32 %v488_v33, %v4109_v58  ;;  %v6922_v27 = vperm.slane %v4170_v18, 2  ;;  %v551_v48 = vunpack.c.l.bf16 %v531_v28  ;;  %v552_v55 = vunpack.c.h.bf16 %v531_v28 }
  0x50   : > { %v323_v57 = vadd.f32 %v322_v6, %v294_v12  ;;  %v553_v49 = vunpack.c.l.bf16 %v532_v0  ;;  %v6935_v53 = vperm.slane %v4170_v18, 3  ;;  %v607_v46 = vmul.f32 %v6921_v52, %v543_v63 }
  0x51   : > { %v490_v43 = vadd.f32 %v489_v9, %v4118_v4  ;;  %v608_v58 = vmul.f32 %v6923_v41, %v544_v17  ;;  %v554_v62 = vunpack.c.h.bf16 %v532_v0  ;;  %v555_v56 = vunpack.c.l.bf16 %v533_v11 }
  0x52   : > { %v324_v29 = vadd.f32 %v323_v57, %v295_v26  ;;  %v556_v6 = vunpack.c.h.bf16 %v533_v11  ;;  %v6934_v33 = vperm.slane %v4170_v18, 4  ;;  %v6933_v4 = vperm.slane %v4170_v18, 5 }
  0x53   : > { %v491_v12 = vadd.f32 %v490_v43, %v4122_v5  ;;  %v609_v9 = vmul.f32 %v6922_v27, %v545_v40  ;;  %v6932_v63 = vperm.slane %v4170_v18, 6  ;;  %v6931_v52 = vperm.slane %v4170_v18, 7 }
  0x54   : > { %v325_v28 = vadd.f32 %v324_v29, %v296_v47  ;;  %v6929_v26 = vperm.slane %v4201_v42, 0  ;;  %v6928_v0 = vperm.slane %v4201_v42, 1  ;;  %v6925_v5 = vperm.slane %v4201_v42, 2 }
  0x55   : > { %492 = vadd.xlane.f32.xlu1 %v491_v12  ;;  %v610_v43 = vmul.f32 %v6935_v53, %v546_v60  ;;  %v637_v17 = vadd.f32 %v608_v58, %v607_v46  ;;  %v6924_v47 = vperm.slane %v4201_v42, 3  ;;  %v6926_v40 = vperm.slane %v4201_v42, 4  ;;  %v4278_v53 = vld [vmem:[%s4036_s29 + $0x53] sm:$0xff] }
  0x56   : > { %v326_v11 = vadd.f32 %v325_v28, %v297_v13  ;;  %v6927_v57 = vperm.slane %v4201_v42, 5  ;;  %v557_v29 = vunpack.c.l.bf16 %v534_v25  ;;  %v6930_v12 = vperm.slane %v4201_v42, 6  ;;  %v1004_v25 = vld [vmem:[%s4026_s27 + $0x12c] sm:$0xff] }
  0x57   : > { %v611_v27 = vmul.f32 %v6934_v33, %v547_v51  ;;  %v638_v41 = vadd.f32 %v637_v17, %v609_v9  ;;  %v612_v13 = vmul.f32 %v6933_v4, %v548_v7  ;;  %v613_v46 = vmul.f32 %v6932_v63, %v549_v14  ;;  %v1005_v9 = vld [vmem:[%s4026_s27 + $0x134] sm:$0xff] }
  0x58   : > { %v327_v60 = vadd.f32 %v326_v11, %v4166_v54  ;;  %v614_v58 = vmul.f32 %v6931_v52, %v550_v59  ;;  %v615_v28 = vmul.f32 %v6929_v26, %v551_v48  ;;  %v616_v51 = vmul.f32 %v6928_v0, %v552_v55  ;;  %v4245_v14 = vld [vmem:[%s4036_s29 + $0x4b] sm:$0xff] }
  0x59   : > { %v4241_v54 = vmul.f32 %v6925_v5, %v553_v49  ;;  %v639_v7 = vadd.f32 %v638_v41, %v610_v43  ;;  %v4250_v59 = vmul.f32 %v6924_v47, %v554_v62  ;;  %v4254_v48 = vmul.f32 %v6926_v40, %v555_v56  ;;  %v1006_v49 = vld [vmem:[%s4026_s27 + $0x13c] sm:$0xff]  ;;  %v1008_v47 = vld [vmem:[%s4026_s27 + $0x14c] sm:$0xff]  ;;  %v1009_v5 = vld [vmem:[%s4026_s27 + $0x154] sm:$0xff] }
  0x5a   : > { %v328_v17 = vadd.f32 %v327_v60, %v4175_v19  ;;  %v4258_v55 = vmul.f32 %v6927_v57, %v556_v6  ;;  %v4263_v41 = vmul.f32 %v6930_v12, %v557_v29  ;;  %v1007_v19 = vld [vmem:[%s4026_s27 + $0x144] sm:$0xff]  ;;  %v1020_v11 = vunpack.c.l.bf16 %v1004_v25 }
  0x5b   : > { %v640_v43 = vadd.f32 %v639_v7, %v611_v27  ;;  %v1021_v60 = vunpack.c.h.bf16 %v1004_v25  ;;  %v1022_v56 = vunpack.c.l.bf16 %v1005_v9  ;;  %v6937_v40 = vperm.slane %v4245_v14, 0  ;;  %v4273_v27 = vld [vmem:[%s4026_s27 + $0x15c] sm:$0xff] }
  0x5c   : > { %v329_v62 = vadd.f32 %v328_v17, %v4179_v20  ;;  %v6936_v6 = vperm.slane %v4245_v14, 1  ;;  %v1023_v0 = vunpack.c.h.bf16 %v1005_v9  ;;  %v1024_v26 = vunpack.c.l.bf16 %v1006_v49 }
  0x5d   : > { %v641_v57 = vadd.f32 %v640_v43, %v612_v13  ;;  %v1025_v29 = vunpack.c.h.bf16 %v1006_v49  ;;  %v1026_v7 = vunpack.c.l.bf16 %v1007_v19  ;;  %v1027_v25 = vunpack.c.h.bf16 %v1007_v19 }
  0x5e   : > { %v330_v12 = vadd.f32 %v329_v62, %v4183_v23  ;;  %v6939_v20 = vperm.slane %v4245_v14, 2  ;;  %v1028_v52 = vunpack.c.l.bf16 %v1008_v47  ;;  %v1029_v63 = vunpack.c.h.bf16 %v1008_v47  ;;  %v4288_v47 = vld [vmem:[%s4026_s27 + $0x164] sm:$0xf] }
  0x5f   : > { %v642_v17 = vadd.f32 %v641_v57, %v613_v46  ;;  %v1030_v4 = vunpack.c.l.bf16 %v1009_v5  ;;  %v6942_v13 = vperm.slane %v4245_v14, 3  ;;  %v1084_v23 = vmul.f32 %v6937_v40, %v1020_v11 }
  0x60   : > { %v331_v33 = vadd.f32 %v330_v12, %v4188_v61  ;;  %v1085_v9 = vmul.f32 %v6936_v6, %v1021_v60  ;;  %v1031_v43 = vunpack.c.h.bf16 %v1009_v5  ;;  %v1032_v19 = vunpack.c.l.bf16 %v4273_v27 }
  0x61   : > { %v643_v49 = vadd.f32 %v642_v17, %v614_v58  ;;  %v1033_v57 = vunpack.c.h.bf16 %v4273_v27  ;;  %v6943_v61 = vperm.slane %v4245_v14, 4  ;;  %v6951_v12 = vperm.slane %v4245_v14, 5 }
  0x62   : > { %332 = vadd.xlane.f32.xlu0 %v331_v33  ;;  %v6950_v46 = vperm.slane %v4245_v14, 6  ;;  %v1086_v11 = vmul.f32 %v6939_v20, %v1022_v56  ;;  %v6947_v5 = vperm.slane %v4245_v14, 7  ;;  %v6944_v58 = vperm.slane %v4278_v53, 0 }
  0x63   : > { %v644_v62 = vadd.f32 %v643_v49, %v615_v28  ;;  %v6945_v60 = vperm.slane %v4278_v53, 1  ;;  %v6946_v33 = vperm.slane %v4278_v53, 2  ;;  %v6948_v17 = vperm.slane %v4278_v53, 3 }
  0x64   : > { %v1087_v6 = vmul.f32 %v6942_v13, %v1023_v0  ;;  %v1114_v40 = vadd.f32 %v1085_v9, %v1084_v23  ;;  %v1034_v28 = vunpack.c.l.bf16 %v4288_v47  ;;  %v6949_v56 = vperm.slane %v4278_v53, 4  ;;  %v686_v13 = vld [vmem:[%s4026_s27 + $0xb4] sm:$0xff] }
  0x65   : > { %v645_v16 = vadd.f32 %v644_v62, %v616_v51  ;;  %v6960_v49 = vperm.slane %v4278_v53, 5  ;;  %v6959_v20 = vperm.slane %v4278_v53, 6  ;;  %v1088_v3 = vmul.f32 %v6943_v61, %v1024_v26  ;;  %v687_v26 = vld [vmem:[%s4026_s27 + $0xbc] sm:$0xff] }
  0x66   : > { %v1089_v1 = vmul.f32 %v6951_v12, %v1025_v29  ;;  %v1115_v0 = vadd.f32 %v1114_v40, %v1086_v11  ;;  %v1090_v23 = vmul.f32 %v6950_v46, %v1026_v7  ;;  %v1091_v9 = vmul.f32 %v6947_v5, %v1027_v25  ;;  %v4320_v61 = vld [vmem:[%s4036_s29 + $0x2d] sm:$0xff] }
  0x67   : > { %v646_v51 = vadd.f32 %v645_v16, %v4241_v54  ;;  %v1092_v62 = vmul.f32 %v6944_v58, %v1028_v52  ;;  %v1093_v40 = vmul.f32 %v6945_v60, %v1029_v63  ;;  %v4326_v16 = vmul.f32 %v6946_v33, %v1030_v4  ;;  %v688_v7 = vld [vmem:[%s4026_s27 + $0xc4] sm:$0xff]  ;;  %v689_v11 = vld [vmem:[%s4026_s27 + $0xcc] sm:$0xff]  ;;  %v690_v4 = vld [vmem:[%s4026_s27 + $0xd4] sm:$0xff] }
  0x68   : > { %v4330_v54 = vmul.f32 %v6948_v17, %v1031_v43  ;;  %v1116_v29 = vadd.f32 %v1115_v0, %v1087_v6  ;;  %v4336_v52 = vmul.f32 %v6949_v56, %v1032_v19  ;;  %v702_v58 = vunpack.c.l.bf16 %v686_v13  ;;  %v691_v33 = vld [vmem:[%s4026_s27 + $0xdc] sm:$0xff]  ;;  %v692_v56 = vld [vmem:[%s4026_s27 + $0xe4] sm:$0xff] }
  0x69   : > { %v647_v25 = vadd.f32 %v646_v51, %v4250_v59  ;;  %v703_v63 = vunpack.c.h.bf16 %v686_v13  ;;  %v704_v5 = vunpack.c.l.bf16 %v687_v26  ;;  %v6957_v43 = vperm.slane %v4320_v61, 0 }
  0x6a   : > { %v1117_v60 = vadd.f32 %v1116_v29, %v1088_v3  ;;  %v6976_v6 = vperm.slane %v4320_v61, 1  ;;  %v705_v0 = vunpack.c.h.bf16 %v687_v26  ;;  %v706_v51 = vunpack.c.l.bf16 %v688_v7  ;;  %v693_v29 = vld [vmem:[%s4026_s27 + $0xec] sm:$0xf] }
  0x6b   : > { %v648_v59 = vadd.f32 %v647_v25, %v4254_v48  ;;  %v707_v17 = vunpack.c.h.bf16 %v688_v7  ;;  %v708_v46 = vunpack.c.l.bf16 %v689_v11  ;;  %v709_v12 = vunpack.c.h.bf16 %v689_v11 }
  0x6c   : > { %v1118_v19 = vadd.f32 %v1117_v60, %v1089_v1  ;;  %v6958_v3 = vperm.slane %v4320_v61, 2  ;;  %v710_v45 = vunpack.c.l.bf16 %v690_v4  ;;  %v711_v44 = vunpack.c.h.bf16 %v690_v4 }
  0x6d   : > { %v649_v13 = vadd.f32 %v648_v59, %v4258_v55  ;;  %v712_v39 = vunpack.c.l.bf16 %v691_v33  ;;  %v6975_v48 = vperm.slane %v4320_v61, 3  ;;  %v766_v26 = vmul.f32 %v6957_v43, %v702_v58 }
  0x6e   : > { %v1119_v38 = vadd.f32 %v1118_v19, %v1090_v23  ;;  %v767_v1 = vmul.f32 %v6976_v6, %v703_v63  ;;  %v713_v7 = vunpack.c.h.bf16 %v691_v33  ;;  %v714_v25 = vunpack.c.l.bf16 %v692_v56 }
  0x6f   : > { %v650_v60 = vadd.f32 %v649_v13, %v4263_v41  ;;  %v715_v55 = vunpack.c.h.bf16 %v692_v56  ;;  %v716_v59 = vunpack.c.l.bf16 %v693_v29  ;;  %v6974_v4 = vperm.slane %v4320_v61, 4 }
  0x70   : > { %v1120_v11 = vadd.f32 %v1119_v38, %v1091_v9  ;;  %v768_v23 = vmul.f32 %v6958_v3, %v704_v5  ;;  %v6972_v19 = vperm.slane %v4320_v61, 5  ;;  %v6971_v58 = vperm.slane %v4320_v61, 6 }
  0x71   : > { %651 = vadd.xlane.f32.xlu2 %v650_v60  ;;  %v6968_v43 = vperm.slane %v4320_v61, 7  ;;  %v6967_v63 = vperm.slane %v4349_v37, 0  ;;  %v6966_v33 = vperm.slane %v4349_v37, 1  ;;  %v769_v38 = vmul.f32 %v6975_v48, %v705_v0 }
  0x72   : > { %v1121_v41 = vadd.f32 %v1120_v11, %v1092_v62  ;;  %v796_v56 = vadd.f32 %v767_v1, %v766_v26  ;;  %v6965_v9 = vperm.slane %v4349_v37, 2  ;;  %v6964_v5 = vperm.slane %v4349_v37, 3 }
  0x73   : > { %v6963_v13 = vperm.slane %v4349_v37, 4  ;;  %v6962_v29 = vperm.slane %v4349_v37, 5  ;;  %v6961_v3 = vperm.slane %v4349_v37, 6  ;;  %v770_v62 = vmul.f32 %v6974_v4, %v706_v51 }
  0x74   : > { %v1122_v60 = vadd.f32 %v1121_v41, %v1093_v40  ;;  %v797_v11 = vadd.f32 %v796_v56, %v768_v23  ;;  %v1097_v0 = vmul.f32 %v6960_v49, %v1033_v57  ;;  %v1098_v26 = vmul.f32 %v6959_v20, %v1034_v28  ;;  %v845_v23 = vld [vmem:[%s4026_s27 + $0xf0] sm:$0xff]  ;;  %v846_v41 = vld [vmem:[%s4026_s27 + $0xf8] sm:$0xff]  ;;  %v847_v56 = vld [vmem:[%s4026_s27 + $0x100] sm:$0xff] }
  0x75   : > { %v771_v40 = vmul.f32 %v6972_v19, %v707_v17  ;;  %v772_v1 = vmul.f32 %v6971_v58, %v708_v46  ;;  %v773_v27 = vmul.f32 %v6968_v43, %v709_v12  ;;  %v774_v57 = vmul.f32 %v6967_v63, %v710_v45  ;;  %v4393_v28 = vld [vmem:[%s4036_s29 + $0x3c] sm:$0xff]  ;;  %v376_v58 = vld [vmem:[%s4026_s27 + $0x564] sm:$0x11] }
  0x76   : > { %v1123_v51 = vadd.f32 %v1122_v60, %v4326_v16  ;;  %v798_v47 = vadd.f32 %v797_v11, %v769_v38  ;;  %v775_v17 = vmul.f32 %v6966_v33, %v711_v44  ;;  %v776_v46 = vmul.f32 %v6965_v9, %v712_v39  ;;  %v4422_v60 = vld [vmem:[%s4026_s27 + $0x110] sm:$0xff]  ;;  %v4433_v9 = vld [vmem:[%s4026_s27 + $0x120] sm:$0xff] }
  0x77   : > { %v4401_v16 = vmul.f32 %v6964_v5, %v713_v7  ;;  %v4405_v12 = vmul.f32 %v6963_v13, %v714_v25  ;;  %v4411_v38 = vmul.f32 %v6962_v29, %v715_v55  ;;  %v4415_v44 = vmul.f32 %v6961_v3, %v716_v59  ;;  %v4419_v7 = vld [vmem:[%s4026_s27 + $0x108] sm:$0xff]  ;;  %v4428_v3 = vld [vmem:[%s4026_s27 + $0x118] sm:$0xff] }
  0x78   : > { %v1124_v45 = vadd.f32 %v1123_v51, %v4330_v54  ;;  %v799_v39 = vadd.f32 %v798_v47, %v770_v62  ;;  %v861_v25 = vunpack.c.l.bf16 %v845_v23  ;;  %v862_v11 = vunpack.c.h.bf16 %v845_v23  ;;  %v377_v19 = vld [vmem:[%s4026_s27 + $0x56c] sm:$0x11] }
  0x79   : > { %v6970_v20 = vperm.slane %v4393_v28, 0  ;;  %v6969_v54 = vperm.slane %v4393_v28, 1  ;;  %v863_v49 = vunpack.c.l.bf16 %v846_v41  ;;  %v864_v59 = vunpack.c.h.bf16 %v846_v41 }
  0x7a   : > { %v1125_v55 = vadd.f32 %v1124_v45, %v4336_v52  ;;  %v800_v51 = vadd.f32 %v799_v39, %v771_v40  ;;  %v865_v62 = vunpack.c.l.bf16 %v847_v56  ;;  %v866_v47 = vunpack.c.h.bf16 %v847_v56  ;;  %v4438_v40 = vld [vmem:[%s4026_s27 + $0x128] sm:$0xf] }
  0x7b   : > { %v867_v29 = vunpack.c.l.bf16 %v4419_v7  ;;  %v6973_v13 = vperm.slane %v4393_v28, 2  ;;  %v868_v33 = vunpack.c.h.bf16 %v4419_v7  ;;  %v869_v52 = vunpack.c.l.bf16 %v4422_v60 }
  0x7c   : > { %v1126_v23 = vadd.f32 %v1125_v55, %v1097_v0  ;;  %v801_v5 = vadd.f32 %v800_v51, %v772_v1  ;;  %v870_v41 = vunpack.c.h.bf16 %v4422_v60  ;;  %v6977_v45 = vperm.slane %v4393_v28, 3  ;;  %v4449_v51 = vld [vmem:[%s4036_s29 + $0x44] sm:$0xff] }
  0x7d   : > { %v925_v39 = vmul.f32 %v6970_v20, %v861_v25  ;;  %v926_v56 = vmul.f32 %v6969_v54, %v862_v11  ;;  %v871_v55 = vunpack.c.l.bf16 %v4428_v3  ;;  %v872_v7 = vunpack.c.h.bf16 %v4428_v3 }
  0x7e   : > { %v1127_v0 = vadd.f32 %v1126_v23, %v1098_v26  ;;  %v802_v1 = vadd.f32 %v801_v5, %v773_v27  ;;  %v873_v60 = vunpack.c.l.bf16 %v4433_v9  ;;  %v6988_v43 = vperm.slane %v4393_v28, 4 }
  0x7f   : > { %v927_v25 = vmul.f32 %v6973_v13, %v863_v49  ;;  %v6987_v27 = vperm.slane %v4393_v28, 5  ;;  %v6986_v3 = vperm.slane %v4393_v28, 6  ;;  %v6985_v11 = vperm.slane %v4393_v28, 7 }
  0x80   : > { %1128 = vadd.xlane.f32.xlu1 %v1127_v0  ;;  %v803_v26 = vadd.f32 %v802_v1, %v774_v57  ;;  %v6984_v23 = vperm.slane %v4449_v51, 0  ;;  %v928_v54 = vmul.f32 %v6977_v45, %v864_v59  ;;  %v955_v20 = vadd.f32 %v926_v56, %v925_v39  ;;  %v378_v59 = vld [vmem:[%s4026_s27 + $0x574] sm:$0x11] }
  0x81   : > { %v6983_v57 = vperm.slane %v4449_v51, 1  ;;  %v6982_v0 = vperm.slane %v4449_v51, 2  ;;  %v6981_v1 = vperm.slane %v4449_v51, 3  ;;  %v6980_v13 = vperm.slane %v4449_v51, 4 }
  0x82   : > { %v804_v49 = vadd.f32 %v803_v26, %v775_v17  ;;  %v929_v48 = vmul.f32 %v6988_v43, %v865_v62  ;;  %v956_v6 = vadd.f32 %v955_v20, %v927_v25  ;;  %v399_v39 = vunpack.c.l.bf16 %v376_v58 }
  0x83   : > { %v400_v56 = vunpack.c.h.bf16 %v376_v58  ;;  %v401_v17 = vunpack.c.l.bf16 %v377_v19  ;;  %v6979_v26 = vperm.slane %v4449_v51, 6  ;;  %v930_v45 = vmul.f32 %v6987_v27, %v866_v47 }
  0x84   : > { %v805_v5 = vadd.f32 %v804_v49, %v776_v46  ;;  %v931_v63 = vmul.f32 %v6986_v3, %v867_v29  ;;  %v957_v4 = vadd.f32 %v956_v6, %v928_v54  ;;  %v932_v20 = vmul.f32 %v6985_v11, %v868_v33  ;;  %v379_v49 = vld [vmem:[%s4026_s27 + $0x57c] sm:$0x11] }
  0x85   : > { %v933_v46 = vmul.f32 %v6984_v23, %v869_v52  ;;  %v402_v58 = vunpack.c.h.bf16 %v377_v19  ;;  %v934_v62 = vmul.f32 %v6983_v57, %v870_v41  ;;  %v935_v47 = vmul.f32 %v6982_v0, %v871_v55  ;;  %v4646_v0 = vld [vmem:[%s4026_s27 + $0x1d4] sm:$0xff]  ;;  %v4650_v11 = vld [vmem:[%s4026_s27 + $0x1dc] sm:$0xf] }
  0x86   : > { %v806_v36 = vadd.f32 %v805_v5, %v4401_v16  ;;  %v958_v25 = vadd.f32 %v957_v4, %v929_v48  ;;  %v403_v29 = vunpack.c.l.bf16 %v378_v59  ;;  %v380_v16 = vld [vmem:[%s4026_s27 + $0x584] sm:$0x11]  ;;  %v463_v33 = vmul.f32 %v418_v8, %v399_v39 }
  0x87   : > { %v464_v19 = vmul.f32 %v419_v10, %v400_v56  ;;  %v465_v54 = vmul.f32 %v420_v15, %v401_v17  ;;  %v936_v52 = vmul.f32 %v6981_v1, %v872_v7  ;;  %v4500_v48 = vmul.f32 %v6980_v13, %v873_v60  ;;  %v382_v15 = vld [vmem:[%s4026_s27 + $0x594] sm:$0x11]  ;;  %v383_v56 = vld [vmem:[%s4026_s27 + $0x59c] sm:$0x1] }
  0x88   : > { %v807_v6 = vadd.f32 %v806_v36, %v4405_v12  ;;  %v959_v4 = vadd.f32 %v958_v25, %v930_v45  ;;  %v381_v12 = vld [vmem:[%s4026_s27 + $0x58c] sm:$0x11]  ;;  %v404_v8 = vunpack.c.h.bf16 %v378_v59  ;;  %v405_v41 = vunpack.c.l.bf16 %v379_v49 }
  0x89   : > { %v466_v10 = vmul.f32 %v421_v22, %v402_v58  ;;  %v406_v5 = vunpack.c.h.bf16 %v379_v49  ;;  %v407_v39 = vunpack.c.l.bf16 %v380_v16  ;;  %v467_v7 = vmul.f32 %v422_v30, %v403_v29 }
  0x8a   : > { %v808_v36 = vadd.f32 %v807_v6, %v4411_v38  ;;  %v960_v55 = vadd.f32 %v959_v4, %v931_v63  ;;  %v494_v45 = vsel %vm334_vm2, %v463_v33, 0.0  ;;  %v495_v38 = vsel %vm334_vm2, %v464_v19, 0.0 }
  0x8b   : > { %v497_v59 = vsel %vm334_vm2, %v465_v54, 0.0  ;;  %v408_v25 = vunpack.c.h.bf16 %v380_v16  ;;  %v409_v6 = vunpack.c.l.bf16 %v381_v12  ;;  %v496_v22 = vadd.f32 %v495_v38, %v494_v45  ;;  %v1163_v45 = vld [vmem:[%s4026_s27 + $0x168] sm:$0xff] }
  0x8c   : > { %v809_v60 = vadd.f32 %v808_v36, %v4415_v44  ;;  %v961_v17 = vadd.f32 %v960_v55, %v932_v20  ;;  %v410_v63 = vunpack.c.h.bf16 %v381_v12  ;;  %v411_v58 = vunpack.c.l.bf16 %v382_v15 }
  0x8d   : > { %v468_v49 = vmul.f32 %v423_v31, %v404_v8  ;;  %v499_v30 = vsel %vm334_vm2, %v466_v10, 0.0  ;;  %v412_v29 = vunpack.c.h.bf16 %v382_v15  ;;  %v413_v4 = vunpack.c.l.bf16 %v383_v56 }
  0x8e   : > { %810 = vadd.xlane.f32.xlu0 %v809_v60  ;;  %v962_v44 = vadd.f32 %v961_v17, %v933_v46  ;;  %v498_v33 = vadd.f32 %v497_v59, %v496_v22  ;;  %v469_v19 = vmul.f32 %v424_v32, %v405_v41  ;;  %v470_v20 = vmul.f32 %v425_v34, %v406_v5 }
  0x8f   : > { %v471_v16 = vmul.f32 %v426_v35, %v407_v39  ;;  %v501_v54 = vsel %vm334_vm2, %v467_v7, 0.0  ;;  %v7015_v31 = vperm.slane %v4059_v21, 1  ;;  %v7016_v46 = vperm.slane %v4059_v21, 2 }
  0x90   : > { %v963_v36 = vadd.f32 %v962_v44, %v934_v62  ;;  %v500_v10 = vadd.f32 %v499_v30, %v498_v33  ;;  %v7017_v32 = vunpack.c.h.bf16 %v4433_v9  ;;  %v7018_v2 = vperm.slane %v4449_v51, 5  ;;  %v1165_v30 = vld [vmem:[%s4026_s27 + $0x178] sm:$0xff] }
  0x91   : > { %v472_v12 = vmul.f32 %v7015_v31, %v408_v25  ;;  %v473_v8 = vmul.f32 %v7016_v46, %v409_v6  ;;  %v7019_v34 = vperm.slane %v4059_v21, 3  ;;  %v7020_v35 = vperm.slane %v4059_v21, 4  ;;  %v4554_v6 = vld [vmem:[%s4036_s29 + $0x5a] sm:$0xff] }
  0x92   : > { %v938_v41 = vmul.f32 %v7018_v2, %v7017_v32  ;;  %v503_v62 = vsel %vm334_vm2, %v468_v49, 0.0  ;;  %v7021_v5 = vunpack.c.l.bf16 %v4438_v40  ;;  %v964_v7 = vadd.f32 %v963_v36, %v935_v47  ;;  %v1164_v49 = vld [vmem:[%s4026_s27 + $0x170] sm:$0xff]  ;;  %v1169_v2 = vld [vmem:[%s4026_s27 + $0x198] sm:$0xff] }
  0x93   : > { %v474_v55 = vmul.f32 %v7019_v34, %v410_v63  ;;  %v475_v15 = vmul.f32 %v7020_v35, %v411_v58  ;;  %v7022_v9 = vperm.slane %v4059_v21, 5  ;;  %v502_v56 = vadd.f32 %v501_v54, %v500_v10  ;;  %v1168_v32 = vld [vmem:[%s4026_s27 + $0x190] sm:$0xff]  ;;  %v1170_v35 = vld [vmem:[%s4026_s27 + $0x1a0] sm:$0xf] }
  0x94   : > { %v939_v39 = vmul.f32 %v6979_v26, %v7021_v5  ;;  %v7023_v38 = vperm.slane %v4059_v21, 6  ;;  %v505_v17 = vsel %vm334_vm2, %v469_v19, 0.0  ;;  %v507_v40 = vsel %vm334_vm2, %v470_v20, 0.0  ;;  %v1167_v20 = vld [vmem:[%s4026_s27 + $0x188] sm:$0xff] }
  0x95   : > { %v4543_v60 = vmul.f32 %v7022_v9, %v412_v29  ;;  %v509_v25 = vsel %vm334_vm2, %v471_v16, 0.0  ;;  %v965_v47 = vadd.f32 %v964_v7, %v936_v52  ;;  %v504_v22 = vadd.f32 %v503_v62, %v502_v56  ;;  %v1166_v29 = vld [vmem:[%s4026_s27 + $0x180] sm:$0xff] }
  0x96   : > { %v4548_v59 = vmul.f32 %v7023_v38, %v413_v4  ;;  %v511_v63 = vsel %vm334_vm2, %v472_v12, 0.0  ;;  %v513_v58 = vsel %vm334_vm2, %v473_v8, 0.0  ;;  %v515_v21 = vsel %vm334_vm2, %v474_v55, 0.0  ;;  %v4573_v56 = vld [vmem:[%s4036_s29 + $0x62] sm:$0xff] }
  0x97   : > { %v517_v44 = vsel %vm334_vm2, %v475_v15, 0.0  ;;  %v1179_v4 = vunpack.c.l.bf16 %v1163_v45  ;;  %v1180_v33 = vunpack.c.h.bf16 %v1163_v45  ;;  %v966_v19 = vadd.f32 %v965_v47, %v4500_v48 }
  0x98   : > { %v506_v52 = vadd.f32 %v505_v17, %v504_v22  ;;  %v1213_v16 = vperm.slane %v4554_v6, 0  ;;  %v1214_v54 = vperm.slane %v4554_v6, 1  ;;  %v1181_v36 = vunpack.c.l.bf16 %v1164_v49 }
  0x99   : > { %v1182_v31 = vunpack.c.h.bf16 %v1164_v49  ;;  %v1183_v12 = vunpack.c.l.bf16 %v1165_v30  ;;  %v1184_v46 = vunpack.c.h.bf16 %v1165_v30  ;;  %v967_v8 = vadd.f32 %v966_v19, %v938_v41 }
  0x9a   : > { %v508_v10 = vadd.f32 %v507_v40, %v506_v52  ;;  %v1185_v34 = vunpack.c.l.bf16 %v1166_v29  ;;  %v1215_v55 = vperm.slane %v4554_v6, 2  ;;  %v1186_v48 = vunpack.c.h.bf16 %v1166_v29 }
  0x9b   : > { %v1187_v15 = vunpack.c.l.bf16 %v1167_v20  ;;  %v1188_v62 = vunpack.c.h.bf16 %v1167_v20  ;;  %v1216_v5 = vperm.slane %v4554_v6, 3  ;;  %v968_v7 = vadd.f32 %v967_v8, %v939_v39 }
  0x9c   : > { %v510_v9 = vadd.f32 %v509_v25, %v508_v10  ;;  %v1243_v45 = vmul.f32 %v1213_v16, %v1179_v4  ;;  %v1244_v41 = vmul.f32 %v1214_v54, %v1180_v33  ;;  %v1189_v38 = vunpack.c.l.bf16 %v1168_v32 }
  0x9d   : > { %v1190_v17 = vunpack.c.h.bf16 %v1168_v32  ;;  %v1191_v40 = vunpack.c.l.bf16 %v1169_v2  ;;  %v1192_v47 = vunpack.c.h.bf16 %v1169_v2  ;;  %969 = vadd.xlane.f32.xlu2 %v968_v7  ;;  %v1193_v49 = vunpack.c.l.bf16 %v1170_v35 }
  0x9e   : > { %v512_v22 = vadd.f32 %v511_v63, %v510_v9  ;;  %v7002_v30 = vperm.slane %v4554_v6, 4  ;;  %v1245_v39 = vmul.f32 %v1215_v55, %v1181_v36  ;;  %v7001_v25 = vperm.slane %v4554_v6, 5 }
  0x9f   : > { %v7000_v29 = vperm.slane %v4554_v6, 6  ;;  %v6999_v4 = vperm.slane %v4554_v6, 7  ;;  %v6998_v33 = vperm.slane %v4573_v56, 0  ;;  %v6997_v52 = vperm.slane %v4573_v56, 1 }
  0xa0   : > { %v514_v19 = vadd.f32 %v513_v58, %v512_v22  ;;  %v1246_v63 = vmul.f32 %v1216_v5, %v1182_v31  ;;  %v1273_v20 = vadd.f32 %v1244_v41, %v1243_v45  ;;  %v6995_v8 = vperm.slane %v4573_v56, 2 }
  0xa1   : > { %v6994_v36 = vperm.slane %v4573_v56, 3  ;;  %v6993_v10 = vperm.slane %v4573_v56, 4  ;;  %v6990_v32 = vperm.slane %v4573_v56, 5  ;;  %v6989_v35 = vperm.slane %v4573_v56, 6 }
  0xa2   : > { %v516_v2 = vadd.f32 %v515_v21, %v514_v19  ;;  %v1247_v58 = vmul.f32 %v7002_v30, %v1183_v12  ;;  %v1274_v7 = vadd.f32 %v1273_v20, %v1245_v39  ;;  %v519_v31 = vsel %vm334_vm2, %v4543_v60, 0.0  ;;  %v1322_v39 = vld [vmem:[%s4026_s27 + $0x1a4] sm:$0xff]  ;;  %v1324_v20 = vld [vmem:[%s4026_s27 + $0x1b4] sm:$0xff] }
  0xa3   : > { %v521_v9 = vsel %vm334_vm2, %v4548_v59, 0.0  ;;  %v1248_v45 = vmul.f32 %v7001_v25, %v1184_v46  ;;  %v1249_v41 = vmul.f32 %v7000_v29, %v1185_v34  ;;  %v1250_v12 = vmul.f32 %v6999_v4, %v1186_v48  ;;  %v4610_v19 = vld [vmem:[%s4036_s29 + $0x69] sm:$0xff] }
  0xa4   : > { %v518_v21 = vadd.f32 %v517_v44, %v516_v2  ;;  %v1251_v22 = vmul.f32 %v6998_v33, %v1187_v15  ;;  %v1275_v60 = vadd.f32 %v1274_v7, %v1246_v63  ;;  %v1252_v59 = vmul.f32 %v6997_v52, %v1188_v62  ;;  %v1323_v48 = vld [vmem:[%s4026_s27 + $0x1ac] sm:$0xff]  ;;  %v4638_v2 = vld [vmem:[%s4026_s27 + $0x1c4] sm:$0xff] }
  0xa5   : > { %v4616_v46 = vmul.f32 %v6995_v8, %v1189_v38  ;;  %v4620_v44 = vmul.f32 %v6994_v36, %v1190_v17  ;;  %v4624_v34 = vmul.f32 %v6993_v10, %v1191_v40  ;;  %v4629_v63 = vmul.f32 %v6990_v32, %v1192_v47  ;;  %v1325_v17 = vld [vmem:[%s4026_s27 + $0x1bc] sm:$0xff]  ;;  %v4643_v47 = vld [vmem:[%s4026_s27 + $0x1cc] sm:$0xff] }
  0xa6   : > { %v520_v15 = vadd.f32 %v519_v31, %v518_v21  ;;  %v4633_v62 = vmul.f32 %v6989_v35, %v1193_v49  ;;  %v1276_v38 = vadd.f32 %v1275_v60, %v1247_v58  ;;  %v1338_v7 = vunpack.c.l.bf16 %v1322_v39  ;;  %v696_v52 = vld [vmem:[%s4026_s27 + $0x5ec] sm:$0x11] }
  0xa7   : > { %v1339_v40 = vunpack.c.h.bf16 %v1322_v39  ;;  %v6991_v26 = vperm.slane %v4610_v19, 0  ;;  %v6992_v31 = vperm.slane %v4610_v19, 1  ;;  %v1340_v1 = vunpack.c.l.bf16 %v1323_v48 }
  0xa8   : > { %v522_v21 = vadd.f32 %v521_v9, %v520_v15  ;;  %v1277_v13 = vadd.f32 %v1276_v38, %v1248_v45  ;;  %v1341_v49 = vunpack.c.h.bf16 %v1323_v48  ;;  %v1342_v58 = vunpack.c.l.bf16 %v1324_v20  ;;  %v4656_v48 = vld [vmem:[%s4036_s29 + $0x71] sm:$0xff] }
  0xa9   : > { %v1343_v60 = vunpack.c.h.bf16 %v1324_v20  ;;  %v1344_v57 = vunpack.c.l.bf16 %v1325_v17  ;;  %v6996_v23 = vperm.slane %v4610_v19, 2  ;;  %v1345_v3 = vunpack.c.h.bf16 %v1325_v17 }
  0xaa   : > { %523 = vadd.xlane.f32.xlu1 %v522_v21  ;;  %v1278_v39 = vadd.f32 %v1277_v13, %v1249_v41  ;;  %v1346_v9 = vunpack.c.l.bf16 %v4638_v2  ;;  %v1347_v45 = vunpack.c.h.bf16 %v4638_v2  ;;  %v1348_v15 = vunpack.c.l.bf16 %v4643_v47 }
  0xab   : > { %v1375_v38 = vperm.slane %v4610_v19, 3  ;;  %v1402_v20 = vmul.f32 %v6991_v26, %v1338_v7  ;;  %v1403_v13 = vmul.f32 %v6992_v31, %v1339_v40  ;;  %v1349_v17 = vunpack.c.h.bf16 %v4643_v47  ;;  %v694_v7 = vld [vmem:[%s4026_s27 + $0x5dc] sm:$0x11] }
  0xac   : > { %v1279_v41 = vadd.f32 %v1278_v39, %v1250_v12  ;;  %v1350_v21 = vunpack.c.l.bf16 %v4646_v0  ;;  %v1376_v2 = vperm.slane %v4610_v19, 4  ;;  %v1351_v27 = vunpack.c.h.bf16 %v4646_v0  ;;  %v695_v39 = vld [vmem:[%s4026_s27 + $0x5e4] sm:$0x11] }
  0xad   : > { %v1352_v43 = vunpack.c.l.bf16 %v4650_v11  ;;  %v1377_v35 = vperm.slane %v4610_v19, 5  ;;  %v1404_v32 = vmul.f32 %v6996_v23, %v1340_v1  ;;  %v7003_v12 = vperm.slane %v4610_v19, 6 }
  0xae   : > { %v1280_v26 = vadd.f32 %v1279_v41, %v1251_v22  ;;  %v1379_v40 = vperm.slane %v4610_v19, 7  ;;  %v1380_v47 = vperm.slane %v4656_v48, 0  ;;  %v1381_v31 = vperm.slane %v4656_v48, 1 }
  0xaf   : > { %v1382_v0 = vperm.slane %v4656_v48, 2  ;;  %v1405_v10 = vmul.f32 %v1375_v38, %v1341_v49  ;;  %v1432_v36 = vadd.f32 %v1403_v13, %v1402_v20  ;;  %v7006_v1 = vperm.slane %v4656_v48, 3 }
  0xb0   : > { %v1281_v8 = vadd.f32 %v1280_v26, %v1252_v59  ;;  %v7004_v22 = vperm.slane %v4656_v48, 4  ;;  %v1406_v41 = vmul.f32 %v1376_v2, %v1342_v58  ;;  %v717_v33 = vunpack.c.l.bf16 %v694_v7 }
  0xb1   : > { %v1433_v23 = vadd.f32 %v1432_v36, %v1404_v32  ;;  %v718_v4 = vunpack.c.h.bf16 %v694_v7  ;;  %v719_v29 = vunpack.c.l.bf16 %v695_v39  ;;  %v7005_v30 = vperm.slane %v4656_v48, 5  ;;  %v697_v7 = vld [vmem:[%s4026_s27 + $0x5f4] sm:$0x11] }
  0xb2   : > { %v1282_v25 = vadd.f32 %v1281_v8, %v4616_v46  ;;  %v1386_v49 = vperm.slane %v4656_v48, 6  ;;  %v1407_v26 = vmul.f32 %v1377_v35, %v1343_v60  ;;  %v1408_v59 = vmul.f32 %v7003_v12, %v1344_v57 }
  0xb3   : > { %v1409_v36 = vmul.f32 %v1379_v40, %v1345_v3  ;;  %v1434_v32 = vadd.f32 %v1433_v23, %v1405_v10  ;;  %v720_v58 = vunpack.c.h.bf16 %v695_v39  ;;  %v1410_v8 = vmul.f32 %v1380_v47, %v1346_v9 }
  0xb4   : > { %v1283_v20 = vadd.f32 %v1282_v25, %v4620_v44  ;;  %v1411_v46 = vmul.f32 %v1381_v31, %v1347_v45  ;;  %v721_v13 = vunpack.c.l.bf16 %v696_v52  ;;  %v7024_v57 = vperm.slane %v4320_v61, 0 }
  0xb5   : > { %v1435_v60 = vadd.f32 %v1434_v32, %v1406_v41  ;;  %v7025_v3 = vperm.slane %v4320_v61, 1  ;;  %v7026_v10 = vperm.slane %v4320_v61, 2  ;;  %v1412_v44 = vmul.f32 %v1382_v0, %v1348_v15  ;;  %v698_v41 = vld [vmem:[%s4026_s27 + $0x5fc] sm:$0x11] }
  0xb6   : > { %v781_v12 = vmul.f32 %v7024_v57, %v717_v33  ;;  %v1284_v25 = vadd.f32 %v1283_v20, %v4624_v34  ;;  %v1413_v9 = vmul.f32 %v7006_v1, %v1349_v17  ;;  %v4713_v45 = vmul.f32 %v7004_v22, %v1350_v21  ;;  %v699_v20 = vld [vmem:[%s4026_s27 + $0x604] sm:$0x11]  ;;  %v700_v22 = vld [vmem:[%s4026_s27 + $0x60c] sm:$0x11] }
  0xb7   : > { %v782_v23 = vmul.f32 %v7025_v3, %v718_v4  ;;  %v783_v39 = vmul.f32 %v7026_v10, %v719_v29  ;;  %v4717_v33 = vmul.f32 %v7005_v30, %v1351_v27  ;;  %v1436_v4 = vadd.f32 %v1435_v60, %v1407_v26  ;;  %v701_v30 = vld [vmem:[%s4026_s27 + $0x614] sm:$0x1] }
  0xb8   : > { %v722_v29 = vunpack.c.h.bf16 %v696_v52  ;;  %v7027_v32 = vperm.slane %v4320_v61, 3  ;;  %v1285_v15 = vadd.f32 %v1284_v25, %v4629_v63  ;;  %v723_v57 = vunpack.c.l.bf16 %v697_v7 }
  0xb9   : > { %v724_v17 = vunpack.c.h.bf16 %v697_v7  ;;  %v7028_v3 = vperm.slane %v4320_v61, 4  ;;  %v1437_v10 = vadd.f32 %v1436_v4, %v1408_v59  ;;  %v812_v27 = vsel %vm334_vm2, %v781_v12, 0.0 }
  0xba   : > { %v784_v34 = vmul.f32 %v7027_v32, %v720_v58  ;;  %v813_v26 = vsel %vm334_vm2, %v782_v23, 0.0  ;;  %v815_v52 = vsel %vm334_vm2, %v783_v39, 0.0  ;;  %v1286_v60 = vadd.f32 %v1285_v15, %v4633_v62 }
  0xbb   : > { %v785_v21 = vmul.f32 %v7028_v3, %v721_v13  ;;  %v725_v58 = vunpack.c.l.bf16 %v698_v41  ;;  %v726_v32 = vunpack.c.h.bf16 %v698_v41  ;;  %v814_v63 = vadd.f32 %v813_v26, %v812_v27 }
  0xbc   : > { %v1438_v25 = vadd.f32 %v1437_v10, %v1409_v36  ;;  %v727_v7 = vunpack.c.l.bf16 %v699_v20  ;;  %v7029_v1 = vperm.slane %v4320_v61, 5  ;;  %v817_v59 = vsel %vm334_vm2, %v784_v34, 0.0  ;;  %1287 = vadd.xlane.f32.xlu0 %v1286_v60 }
  0xbd   : > { %v1416_v12 = vmul.f32 %v1386_v49, %v1352_v43  ;;  %v728_v62 = vunpack.c.h.bf16 %v699_v20  ;;  %v729_v23 = vunpack.c.l.bf16 %v700_v22  ;;  %v816_v39 = vadd.f32 %v815_v52, %v814_v63  ;;  %v217_v20 = vld [vmem:[%s4026_s27 + $0x530] sm:$0x11] }
  0xbe   : > { %v786_v13 = vmul.f32 %v7029_v1, %v722_v29  ;;  %v1439_v4 = vadd.f32 %v1438_v25, %v1410_v8  ;;  %v730_v41 = vunpack.c.h.bf16 %v700_v22  ;;  %v7030_v36 = vperm.slane %v4320_v61, 6  ;;  %v216_v1 = vld [vmem:[%s4026_s27 + $0x528] sm:$0x11] }
  0xbf   : > { %v819_v3 = vsel %vm334_vm2, %v785_v21, 0.0  ;;  %v731_v29 = vunpack.c.l.bf16 %v701_v30  ;;  %v7031_v34 = vperm.slane %v4320_v61, 7  ;;  %v7032_v11 = vperm.slane %v4349_v37, 0 }
  0xc0   : > { %v787_v15 = vmul.f32 %v7030_v36, %v723_v57  ;;  %v818_v43 = vadd.f32 %v817_v59, %v816_v39  ;;  %v1440_v26 = vadd.f32 %v1439_v4, %v1411_v46  ;;  %v7033_v8 = vperm.slane %v4349_v37, 1  ;;  %v218_v39 = vld [vmem:[%s4026_s27 + $0x538] sm:$0x11] }
  0xc1   : > { %v788_v10 = vmul.f32 %v7031_v34, %v724_v17  ;;  %v789_v27 = vmul.f32 %v7032_v11, %v725_v58  ;;  %v7034_v52 = vperm.slane %v4349_v37, 2  ;;  %v821_v21 = vsel %vm334_vm2, %v786_v13, 0.0 }
  0xc2   : > { %v790_v22 = vmul.f32 %v7033_v8, %v726_v32  ;;  %v7035_v30 = vperm.slane %v4349_v37, 3  ;;  %v820_v61 = vadd.f32 %v819_v3, %v818_v43  ;;  %v239_v63 = vunpack.c.l.bf16 %v216_v1 }
  0xc3   : > { %v791_v57 = vmul.f32 %v7034_v52, %v727_v7  ;;  %v240_v17 = vunpack.c.h.bf16 %v216_v1  ;;  %v1441_v25 = vadd.f32 %v1440_v26, %v1412_v44  ;;  %v7036_v58 = vperm.slane %v4349_v37, 4 }
  0xc4   : > { %v792_v60 = vmul.f32 %v7035_v30, %v728_v62  ;;  %v823_v46 = vsel %vm334_vm2, %v787_v15, 0.0  ;;  %v241_v32 = vunpack.c.l.bf16 %v217_v20  ;;  %v7037_v4 = vperm.slane %v4349_v37, 5  ;;  %v219_v15 = vld [vmem:[%s4026_s27 + $0x540] sm:$0x11] }
  0xc5   : > { %v793_v59 = vmul.f32 %v7036_v58, %v729_v23  ;;  %v7038_v13 = vperm.slane %v4349_v37, 6  ;;  %v822_v34 = vadd.f32 %v821_v21, %v820_v61  ;;  %v242_v62 = vunpack.c.h.bf16 %v217_v20  ;;  %v220_v21 = vld [vmem:[%s4026_s27 + $0x548] sm:$0x11]  ;;  %v221_v58 = vld [vmem:[%s4026_s27 + $0x550] sm:$0x11] }
  0xc6   : > { %v794_v7 = vmul.f32 %v7037_v4, %v730_v41  ;;  %v1442_v3 = vadd.f32 %v1441_v25, %v1413_v9  ;;  %v825_v1 = vsel %vm334_vm2, %v788_v10, 0.0  ;;  %v827_v44 = vsel %vm334_vm2, %v789_v27, 0.0 }
  0xc7   : > { %v795_v36 = vmul.f32 %v7038_v13, %v731_v29  ;;  %v829_v23 = vsel %vm334_vm2, %v790_v22, 0.0  ;;  %v824_v11 = vadd.f32 %v823_v46, %v822_v34  ;;  %v243_v43 = vunpack.c.l.bf16 %v218_v39  ;;  %v222_v13 = vld [vmem:[%s4026_s27 + $0x558] sm:$0x11] }
  0xc8   : > { %v7039_v26 = vperm.slane %v4088_v50, 0  ;;  %v7040_v41 = vperm.slane %v4088_v50, 1  ;;  %v1443_v29 = vadd.f32 %v1442_v3, %v4713_v45  ;;  %v831_v9 = vsel %vm334_vm2, %v791_v57, 0.0 }
  0xc9   : > { %v833_v10 = vsel %vm334_vm2, %v792_v60, 0.0  ;;  %v7041_v27 = vperm.slane %v4088_v50, 2  ;;  %v826_v22 = vadd.f32 %v825_v1, %v824_v11  ;;  %v835_v52 = vsel %vm334_vm2, %v793_v59, 0.0 }
  0xca   : > { %v303_v8 = vmul.f32 %v7039_v26, %v239_v63  ;;  %v304_v37 = vmul.f32 %v7040_v41, %v240_v17  ;;  %v244_v30 = vunpack.c.h.bf16 %v218_v39  ;;  %v7042_v61 = vperm.slane %v4088_v50, 3 }
  0xcb   : > { %v305_v20 = vmul.f32 %v7041_v27, %v241_v32  ;;  %v1444_v17 = vadd.f32 %v1443_v29, %v4717_v33  ;;  %v837_v45 = vsel %vm334_vm2, %v794_v7, 0.0  ;;  %v245_v57 = vunpack.c.l.bf16 %v219_v15  ;;  %v223_v7 = vld [vmem:[%s4026_s27 + $0x560] sm:$0x1] }
  0xcc   : > { %v306_v63 = vmul.f32 %v7042_v61, %v242_v62  ;;  %v246_v25 = vunpack.c.h.bf16 %v219_v15  ;;  %v828_v60 = vadd.f32 %v827_v44, %v826_v22  ;;  %v7043_v46 = vperm.slane %v4088_v50, 4 }
  0xcd   : > { %v335_v4 = vsel %vm334_vm2, %v303_v8, 0.0  ;;  %v336_v59 = vsel %vm334_vm2, %v304_v37, 0.0  ;;  %v1445_v39 = vadd.f32 %v1444_v17, %v1416_v12  ;;  %v247_v34 = vunpack.c.l.bf16 %v220_v21  ;;  %v536_v17 = vld [vmem:[%s4026_s27 + $0x5a8] sm:$0x11] }
  0xce   : > { %v307_v32 = vmul.f32 %v7043_v46, %v243_v43  ;;  %v337_v62 = vadd.f32 %v336_v59, %v335_v4  ;;  %v338_v33 = vsel %vm334_vm2, %v305_v20, 0.0  ;;  %v830_v3 = vadd.f32 %v829_v23, %v828_v60  ;;  %v535_v20 = vld [vmem:[%s4026_s27 + $0x5a0] sm:$0x11] }
  0xcf   : > { %v248_v1 = vunpack.c.h.bf16 %v220_v21  ;;  %v7044_v44 = vperm.slane %v4088_v50, 5  ;;  %v340_v15 = vsel %vm334_vm2, %v306_v63, 0.0  ;;  %1446 = vadd.xlane.f32.xlu2 %v1445_v39  ;;  %v839_v43 = vsel %vm334_vm2, %v795_v36, 0.0 }
  0xd0   : > { %v249_v26 = vunpack.c.l.bf16 %v221_v58  ;;  %v250_v12 = vunpack.c.h.bf16 %v221_v58  ;;  %v339_v8 = vadd.f32 %v338_v33, %v337_v62  ;;  %v832_v41 = vadd.f32 %v831_v9, %v830_v3  ;;  %v537_v33 = vld [vmem:[%s4026_s27 + $0x5b0] sm:$0x11] }
  0xd1   : > { %v308_v11 = vmul.f32 %v7044_v44, %v244_v30  ;;  %v251_v37 = vunpack.c.l.bf16 %v222_v13  ;;  %v7045_v29 = vperm.slane %v4088_v50, 6  ;;  %v342_v23 = vsel %vm334_vm2, %v307_v32, 0.0 }
  0xd2   : > { %v252_v22 = vunpack.c.h.bf16 %v222_v13  ;;  %v253_v21 = vunpack.c.l.bf16 %v223_v7  ;;  %v7046_v30 = vperm.slane %v4088_v50, 7  ;;  %v341_v63 = vadd.f32 %v340_v15, %v339_v8 }
  0xd3   : > { %v309_v27 = vmul.f32 %v7045_v29, %v245_v57  ;;  %v834_v36 = vadd.f32 %v833_v10, %v832_v41  ;;  %v7047_v60 = vperm.slane %v4128_v24, 0  ;;  %v7048_v9 = vperm.slane %v4128_v24, 1 }
  0xd4   : > { %v310_v61 = vmul.f32 %v7046_v30, %v246_v25  ;;  %v344_v57 = vsel %vm334_vm2, %v308_v11, 0.0  ;;  %v7049_v32 = vperm.slane %v4128_v24, 2  ;;  %v343_v59 = vadd.f32 %v342_v23, %v341_v63 }
  0xd5   : > { %v311_v58 = vmul.f32 %v7047_v60, %v247_v34  ;;  %v312_v46 = vmul.f32 %v7048_v9, %v248_v1  ;;  %v558_v39 = vunpack.c.l.bf16 %v535_v20  ;;  %v559_v13 = vunpack.c.h.bf16 %v535_v20  ;;  %v539_v60 = vld [vmem:[%s4026_s27 + $0x5c0] sm:$0x11] }
  0xd6   : > { %v313_v4 = vmul.f32 %v7049_v32, %v249_v26  ;;  %v836_v50 = vadd.f32 %v835_v52, %v834_v36  ;;  %v7050_v25 = vperm.slane %v4128_v24, 3  ;;  %v346_v10 = vsel %vm334_vm2, %v309_v27, 0.0  ;;  %v538_v27 = vld [vmem:[%s4026_s27 + $0x5b8] sm:$0x11] }
  0xd7   : > { %v560_v34 = vunpack.c.l.bf16 %v536_v17  ;;  %v7051_v3 = vperm.slane %v4128_v24, 4  ;;  %v7052_v1 = vperm.slane %v4128_v24, 5  ;;  %v345_v11 = vadd.f32 %v344_v57, %v343_v59 }
  0xd8   : > { %v314_v62 = vmul.f32 %v7050_v25, %v250_v12  ;;  %v561_v15 = vunpack.c.h.bf16 %v536_v17  ;;  %v838_v26 = vadd.f32 %v837_v45, %v836_v50  ;;  %v7053_v8 = vperm.slane %v4128_v24, 6 }
  0xd9   : > { %v315_v7 = vmul.f32 %v7051_v3, %v251_v37  ;;  %v316_v44 = vmul.f32 %v7052_v1, %v252_v22  ;;  %v348_v41 = vsel %vm334_vm2, %v310_v61, 0.0  ;;  %v350_v12 = vsel %vm334_vm2, %v311_v58, 0.0 }
  0xda   : > { %v317_v52 = vmul.f32 %v7053_v8, %v253_v21  ;;  %v347_v29 = vadd.f32 %v346_v10, %v345_v11  ;;  %v562_v23 = vunpack.c.l.bf16 %v537_v33  ;;  %v7054_v37 = vperm.slane %v4170_v18, 0 }
  0xdb   : > { %v7055_v22 = vperm.slane %v4170_v18, 1  ;;  %v840_v63 = vadd.f32 %v839_v43, %v838_v26  ;;  %v352_v45 = vsel %vm334_vm2, %v312_v46, 0.0  ;;  %v354_v24 = vsel %vm334_vm2, %v313_v4, 0.0  ;;  %v540_v46 = vld [vmem:[%s4026_s27 + $0x5c8] sm:$0x11] }
  0xdc   : > { %v622_v20 = vmul.f32 %v7054_v37, %v558_v39  ;;  %v7056_v21 = vperm.slane %v4170_v18, 2  ;;  %v349_v17 = vadd.f32 %v348_v41, %v347_v29  ;;  %v356_v36 = vsel %vm334_vm2, %v314_v62, 0.0 }
  0xdd   : > { %v623_v30 = vmul.f32 %v7055_v22, %v559_v13  ;;  %v563_v58 = vunpack.c.h.bf16 %v537_v33  ;;  %v7057_v9 = vperm.slane %v4170_v18, 3  ;;  %841 = vadd.xlane.f32.xlu1 %v840_v63  ;;  %v358_v43 = vsel %vm334_vm2, %v315_v7, 0.0  ;;  %v541_v13 = vld [vmem:[%s4026_s27 + $0x5d0] sm:$0x11] }
  0xde   : > { %v624_v61 = vmul.f32 %v7056_v21, %v560_v34  ;;  %v360_v32 = vsel %vm334_vm2, %v316_v44, 0.0  ;;  %v564_v59 = vunpack.c.l.bf16 %v538_v27  ;;  %v565_v4 = vunpack.c.h.bf16 %v538_v27  ;;  %v542_v44 = vld [vmem:[%s4026_s27 + $0x5d8] sm:$0x1]  ;;  %v1171_v63 = vld [vmem:[%s4026_s27 + $0x690] sm:$0x11] }
  0xdf   : > { %v625_v57 = vmul.f32 %v7057_v9, %v561_v15  ;;  %v351_v39 = vadd.f32 %v350_v12, %v349_v17  ;;  %v7058_v50 = vperm.slane %v4170_v18, 4  ;;  %v653_v62 = vsel %vm334_vm2, %v622_v20, 0.0 }
  0xe0   : > { %v654_v10 = vsel %vm334_vm2, %v623_v30, 0.0  ;;  %v566_v33 = vunpack.c.l.bf16 %v539_v60  ;;  %v567_v34 = vunpack.c.h.bf16 %v539_v60  ;;  %v656_v7 = vsel %vm334_vm2, %v624_v61, 0.0 }
  0xe1   : > { %v626_v25 = vmul.f32 %v7058_v50, %v562_v23  ;;  %v655_v3 = vadd.f32 %v654_v10, %v653_v62  ;;  %v353_v1 = vadd.f32 %v352_v45, %v351_v39  ;;  %v568_v11 = vunpack.c.l.bf16 %v540_v46  ;;  %v1172_v45 = vld [vmem:[%s4026_s27 + $0x698] sm:$0x11]  ;;  %v1173_v50 = vld [vmem:[%s4026_s27 + $0x6a0] sm:$0x11] }
  0xe2   : > { %v7059_v15 = vperm.slane %v4170_v18, 5  ;;  %v658_v8 = vsel %vm334_vm2, %v625_v57, 0.0  ;;  %v362_v41 = vsel %vm334_vm2, %v317_v52, 0.0  ;;  %v569_v12 = vunpack.c.h.bf16 %v540_v46 }
  0xe3   : > { %v570_v29 = vunpack.c.l.bf16 %v541_v13  ;;  %v657_v27 = vadd.f32 %v656_v7, %v655_v3  ;;  %v355_v23 = vadd.f32 %v354_v24, %v353_v1  ;;  %v571_v37 = vunpack.c.h.bf16 %v541_v13 }
  0xe4   : > { %v627_v26 = vmul.f32 %v7059_v15, %v563_v58  ;;  %v7060_v20 = vperm.slane %v4170_v18, 6  ;;  %v660_v30 = vsel %vm334_vm2, %v626_v25, 0.0  ;;  %v572_v21 = vunpack.c.l.bf16 %v542_v44 }
  0xe5   : > { %v7061_v61 = vperm.slane %v4170_v18, 7  ;;  %v7062_v60 = vperm.slane %v4201_v42, 0  ;;  %v659_v58 = vadd.f32 %v658_v8, %v657_v27  ;;  %v357_v9 = vadd.f32 %v356_v36, %v355_v23 }
  0xe6   : > { %v628_v22 = vmul.f32 %v7060_v20, %v564_v59  ;;  %v7063_v57 = vperm.slane %v4201_v42, 1  ;;  %v7064_v46 = vperm.slane %v4201_v42, 2  ;;  %v662_v59 = vsel %vm334_vm2, %v627_v26, 0.0  ;;  %v1174_v20 = vld [vmem:[%s4026_s27 + $0x6a8] sm:$0x11] }
  0xe7   : > { %v629_v17 = vmul.f32 %v7061_v61, %v565_v4  ;;  %v630_v52 = vmul.f32 %v7062_v60, %v566_v33  ;;  %v661_v13 = vadd.f32 %v660_v30, %v659_v58  ;;  %v1194_v25 = vunpack.c.l.bf16 %v1171_v63  ;;  %v1175_v61 = vld [vmem:[%s4026_s27 + $0x6b0] sm:$0x11] }
  0xe8   : > { %v631_v24 = vmul.f32 %v7063_v57, %v567_v34  ;;  %v632_v39 = vmul.f32 %v7064_v46, %v568_v11  ;;  %v1195_v62 = vunpack.c.h.bf16 %v1171_v63  ;;  %v1196_v18 = vunpack.c.l.bf16 %v1172_v45  ;;  %v1177_v57 = vld [vmem:[%s4026_s27 + $0x6c0] sm:$0x11] }
  0xe9   : > { %v359_v4 = vadd.f32 %v358_v43, %v357_v9  ;;  %v7065_v10 = vperm.slane %v4201_v42, 3  ;;  %v7066_v36 = vperm.slane %v4201_v42, 4  ;;  %v664_v34 = vsel %vm334_vm2, %v628_v22, 0.0 }
  0xea   : > { %v7067_v7 = vperm.slane %v4201_v42, 5  ;;  %v7068_v44 = vperm.slane %v4201_v42, 6  ;;  %v663_v15 = vadd.f32 %v662_v59, %v661_v13  ;;  %v1197_v26 = vunpack.c.h.bf16 %v1172_v45 }
  0xeb   : > { %v633_v33 = vmul.f32 %v7065_v10, %v569_v12  ;;  %v634_v3 = vmul.f32 %v7066_v36, %v570_v29  ;;  %v361_v8 = vadd.f32 %v360_v32, %v359_v4  ;;  %v666_v43 = vsel %vm334_vm2, %v629_v17, 0.0  ;;  %v1176_v17 = vld [vmem:[%s4026_s27 + $0x6b8] sm:$0x11] }
  0xec   : > { %v635_v1 = vmul.f32 %v7067_v7, %v571_v37  ;;  %v636_v11 = vmul.f32 %v7068_v44, %v572_v21  ;;  %v668_v27 = vsel %vm334_vm2, %v630_v52, 0.0  ;;  %v1198_v12 = vunpack.c.l.bf16 %v1173_v50 }
  0xed   : > { %v665_v23 = vadd.f32 %v664_v34, %v663_v15  ;;  %v1258_v29 = vmul.f32 %v1213_v16, %v1194_v25  ;;  %v1259_v37 = vmul.f32 %v1214_v54, %v1195_v62  ;;  %v1260_v42 = vmul.f32 %v1215_v55, %v1196_v18 }
  0xee   : > { %v363_v22 = vadd.f32 %v362_v41, %v361_v8  ;;  %v670_v32 = vsel %vm334_vm2, %v631_v24, 0.0  ;;  %v672_v30 = vsel %vm334_vm2, %v632_v39, 0.0  ;;  %v674_v63 = vsel %vm334_vm2, %v633_v33, 0.0 }
  0xef   : > { %v667_v45 = vadd.f32 %v666_v43, %v665_v23  ;;  %v676_v21 = vsel %vm334_vm2, %v634_v3, 0.0  ;;  %v1199_v16 = vunpack.c.h.bf16 %v1173_v50  ;;  %v1261_v54 = vmul.f32 %v1216_v5, %v1197_v26  ;;  %v1178_v5 = vld [vmem:[%s4026_s27 + $0x6c8] sm:$0x1]  ;;  %v854_v43 = vld [vmem:[%s4026_s27 + $0x620] sm:$0x11] }
  0xf0   : > { %364 = vadd.xlane.f32.xlu0 %v363_v22  ;;  %v678_v55 = vsel %vm334_vm2, %v635_v1, 0.0  ;;  %v680_v41 = vsel %vm334_vm2, %v636_v11, 0.0  ;;  %v1200_v60 = vunpack.c.l.bf16 %v1174_v20  ;;  %v7069_v52 = vperm.slane %v4554_v6, 4  ;;  %v853_v1 = vld [vmem:[%s4026_s27 + $0x618] sm:$0x11] }
  0xf1   : > { %v669_v9 = vadd.f32 %v668_v27, %v667_v45  ;;  %v1289_v24 = vsel %vm334_vm2, %v1258_v29, 0.0  ;;  %v1290_v46 = vsel %vm334_vm2, %v1259_v37, 0.0  ;;  %v1292_v39 = vsel %vm334_vm2, %v1260_v42, 0.0 }
  0xf2   : > { %v1262_v58 = vmul.f32 %v7069_v52, %v1198_v12  ;;  %v1201_v59 = vunpack.c.h.bf16 %v1174_v20  ;;  %v1202_v13 = vunpack.c.l.bf16 %v1175_v61  ;;  %v1203_v50 = vunpack.c.h.bf16 %v1175_v61 }
  0xf3   : > { %v1291_v25 = vadd.f32 %v1290_v46, %v1289_v24  ;;  %v671_v62 = vadd.f32 %v670_v32, %v669_v9  ;;  %v1204_v18 = vunpack.c.l.bf16 %v1176_v17  ;;  %v7070_v4 = vperm.slane %v4554_v6, 5  ;;  %v855_v46 = vld [vmem:[%s4026_s27 + $0x628] sm:$0x11] }
  0xf4   : > { %v1294_v33 = vsel %vm334_vm2, %v1261_v54, 0.0  ;;  %v1205_v36 = vunpack.c.h.bf16 %v1176_v17  ;;  %v1206_v3 = vunpack.c.l.bf16 %v1177_v57  ;;  %v1207_v34 = vunpack.c.h.bf16 %v1177_v57 }
  0xf5   : > { %v1263_v10 = vmul.f32 %v7070_v4, %v1199_v16  ;;  %v1293_v7 = vadd.f32 %v1292_v39, %v1291_v25  ;;  %v673_v44 = vadd.f32 %v672_v30, %v671_v62  ;;  %v1208_v11 = vunpack.c.l.bf16 %v1178_v5 }
  0xf6   : > { %v7071_v15 = vperm.slane %v4554_v6, 6  ;;  %v1296_v8 = vsel %vm334_vm2, %v1262_v58, 0.0  ;;  %v7072_v27 = vperm.slane %v4554_v6, 7  ;;  %v7073_v23 = vperm.slane %v4573_v56, 0 }
  0xf7   : > { %v7074_v29 = vperm.slane %v4573_v56, 1  ;;  %v1295_v42 = vadd.f32 %v1294_v33, %v1293_v7  ;;  %v675_v22 = vadd.f32 %v674_v63, %v673_v44  ;;  %v7075_v32 = vperm.slane %v4573_v56, 2  ;;  %v856_v33 = vld [vmem:[%s4026_s27 + $0x630] sm:$0x11] }
  0xf8   : > { %v1264_v26 = vmul.f32 %v7071_v15, %v1200_v60  ;;  %v1265_v12 = vmul.f32 %v7072_v27, %v1201_v59  ;;  %v1266_v20 = vmul.f32 %v7073_v23, %v1202_v13  ;;  %v1298_v45 = vsel %vm334_vm2, %v1263_v10, 0.0 }
  0xf9   : > { %v1267_v37 = vmul.f32 %v7074_v29, %v1203_v50  ;;  %v1268_v30 = vmul.f32 %v7075_v32, %v1204_v18  ;;  %v876_v61 = vunpack.c.l.bf16 %v853_v1  ;;  %v7076_v16 = vperm.slane %v4573_v56, 3  ;;  %v860_v32 = vld [vmem:[%s4026_s27 + $0x650] sm:$0x1] }
  0xfa   : > { %v1297_v6 = vadd.f32 %v1296_v8, %v1295_v42  ;;  %v877_v17 = vunpack.c.h.bf16 %v853_v1  ;;  %v878_v60 = vunpack.c.l.bf16 %v854_v43  ;;  %v677_v52 = vadd.f32 %v676_v21, %v675_v22  ;;  %v857_v8 = vld [vmem:[%s4026_s27 + $0x638] sm:$0x11]  ;;  %v859_v22 = vld [vmem:[%s4026_s27 + $0x648] sm:$0x11] }
  0xfb   : > { %v1269_v54 = vmul.f32 %v7076_v16, %v1205_v36  ;;  %v7077_v58 = vperm.slane %v4573_v56, 4  ;;  %v7078_v57 = vperm.slane %v4573_v56, 5  ;;  %v1300_v24 = vsel %vm334_vm2, %v1264_v26, 0.0 }
  0xfc   : > { %v7079_v39 = vperm.slane %v4573_v56, 6  ;;  %v1299_v59 = vadd.f32 %v1298_v45, %v1297_v6  ;;  %v1302_v13 = vsel %vm334_vm2, %v1265_v12, 0.0  ;;  %v879_v50 = vunpack.c.h.bf16 %v854_v43  ;;  %v858_v43 = vld [vmem:[%s4026_s27 + $0x640] sm:$0x11] }
  0xfd   : > { %v1270_v9 = vmul.f32 %v7077_v58, %v1206_v3  ;;  %v1271_v63 = vmul.f32 %v7078_v57, %v1207_v34  ;;  %v679_v25 = vadd.f32 %v678_v55, %v677_v52  ;;  %v1304_v21 = vsel %vm334_vm2, %v1266_v20, 0.0 }
  0xfe   : > { %v1272_v5 = vmul.f32 %v7079_v39, %v1208_v11  ;;  %v1306_v62 = vsel %vm334_vm2, %v1267_v37, 0.0  ;;  %v7080_v18 = vperm.slane %v4393_v28, 0  ;;  %v1301_v10 = vadd.f32 %v1300_v24, %v1299_v59  ;;  %v1012_v59 = vld [vmem:[%s4026_s27 + $0x654] sm:$0x11] }
  0xff   : > { %v880_v36 = vunpack.c.l.bf16 %v855_v46  ;;  %v7081_v56 = vperm.slane %v4393_v28, 1  ;;  %v7082_v34 = vperm.slane %v4393_v28, 2  ;;  %v681_v1 = vadd.f32 %v680_v41, %v679_v25 }
 0x100   : > { %v940_v4 = vmul.f32 %v7080_v18, %v876_v61  ;;  %v1308_v55 = vsel %vm334_vm2, %v1268_v30, 0.0  ;;  %v1310_v44 = vsel %vm334_vm2, %v1269_v54, 0.0  ;;  %v1312_v11 = vsel %vm334_vm2, %v1270_v9, 0.0 }
 0x101   : > { %v941_v3 = vmul.f32 %v7081_v56, %v877_v17  ;;  %v942_v7 = vmul.f32 %v7082_v34, %v878_v60  ;;  %v1303_v15 = vadd.f32 %v1302_v13, %v1301_v10  ;;  %v1314_v26 = vsel %vm334_vm2, %v1271_v63, 0.0  ;;  %682 = vadd.xlane.f32.xlu2 %v681_v1 }
 0x102   : > { %v881_v27 = vunpack.c.h.bf16 %v855_v46  ;;  %v7083_v12 = vperm.slane %v4393_v28, 3  ;;  %v1316_v41 = vsel %vm334_vm2, %v1272_v5, 0.0  ;;  %v882_v20 = vunpack.c.l.bf16 %v856_v33 }
 0x103   : > { %v883_v29 = vunpack.c.h.bf16 %v856_v33  ;;  %v971_v37 = vsel %vm334_vm2, %v940_v4, 0.0  ;;  %v1305_v42 = vadd.f32 %v1304_v21, %v1303_v15  ;;  %v7084_v30 = vperm.slane %v4393_v28, 4  ;;  %v1013_v4 = vld [vmem:[%s4026_s27 + $0x65c] sm:$0x11] }
 0x104   : > { %v943_v23 = vmul.f32 %v7083_v12, %v879_v50  ;;  %v972_v61 = vsel %vm334_vm2, %v941_v3, 0.0  ;;  %v974_v16 = vsel %vm334_vm2, %v942_v7, 0.0  ;;  %v884_v54 = vunpack.c.l.bf16 %v857_v8 }
 0x105   : > { %v944_v45 = vmul.f32 %v7084_v30, %v880_v36  ;;  %v885_v6 = vunpack.c.h.bf16 %v857_v8  ;;  %v886_v17 = vunpack.c.l.bf16 %v858_v43  ;;  %v973_v60 = vadd.f32 %v972_v61, %v971_v37 }
 0x106   : > { %v1307_v52 = vadd.f32 %v1306_v62, %v1305_v42  ;;  %v887_v58 = vunpack.c.h.bf16 %v858_v43  ;;  %v7085_v9 = vperm.slane %v4393_v28, 5  ;;  %v976_v63 = vsel %vm334_vm2, %v943_v23, 0.0 }
 0x107   : > { %v888_v24 = vunpack.c.l.bf16 %v859_v22  ;;  %v889_v46 = vunpack.c.h.bf16 %v859_v22  ;;  %v890_v39 = vunpack.c.l.bf16 %v860_v32  ;;  %v975_v5 = vadd.f32 %v974_v16, %v973_v60 }
 0x108   : > { %v945_v57 = vmul.f32 %v7085_v9, %v881_v27  ;;  %v1309_v13 = vadd.f32 %v1308_v55, %v1307_v52  ;;  %v7086_v50 = vperm.slane %v4393_v28, 6  ;;  %v7087_v21 = vperm.slane %v4393_v28, 7 }
 0x109   : > { %v978_v62 = vsel %vm334_vm2, %v944_v45, 0.0  ;;  %v7088_v10 = vperm.slane %v4449_v51, 0  ;;  %v7089_v36 = vperm.slane %v4449_v51, 1  ;;  %v7090_v3 = vperm.slane %v4449_v51, 2 }
 0x10a   : > { %v946_v25 = vmul.f32 %v7086_v50, %v882_v20  ;;  %v947_v18 = vmul.f32 %v7087_v21, %v883_v29  ;;  %v977_v7 = vadd.f32 %v976_v63, %v975_v5  ;;  %v1311_v1 = vadd.f32 %v1310_v44, %v1309_v13  ;;  %v1014_v20 = vld [vmem:[%s4026_s27 + $0x664] sm:$0x11] }
 0x10b   : > { %v948_v33 = vmul.f32 %v7088_v10, %v884_v54  ;;  %v949_v56 = vmul.f32 %v7089_v36, %v885_v6  ;;  %v950_v34 = vmul.f32 %v7090_v3, %v886_v17  ;;  %v980_v55 = vsel %vm334_vm2, %v945_v57, 0.0  ;;  %v1015_v17 = vld [vmem:[%s4026_s27 + $0x66c] sm:$0x11]  ;;  %v1018_v10 = vld [vmem:[%s4026_s27 + $0x684] sm:$0x11] }
 0x10c   : > { %v1035_v15 = vunpack.c.l.bf16 %v1012_v59  ;;  %v1036_v28 = vunpack.c.h.bf16 %v1012_v59  ;;  %v7091_v8 = vperm.slane %v4449_v51, 3  ;;  %v7092_v27 = vperm.slane %v4449_v51, 4 }
 0x10d   : > { %v979_v23 = vadd.f32 %v978_v62, %v977_v7  ;;  %v1037_v29 = vunpack.c.l.bf16 %v1013_v4  ;;  %v1313_v37 = vadd.f32 %v1312_v11, %v1311_v1  ;;  %v7093_v42 = vperm.slane %v4449_v51, 5  ;;  %v1019_v7 = vld [vmem:[%s4026_s27 + $0x68c] sm:$0x1] }
 0x10e   : > { %v951_v43 = vmul.f32 %v7091_v8, %v887_v58  ;;  %v952_v12 = vmul.f32 %v7092_v27, %v888_v24  ;;  %v982_v44 = vsel %vm334_vm2, %v946_v25, 0.0  ;;  %v1038_v32 = vunpack.c.h.bf16 %v1013_v4  ;;  %v1016_v24 = vld [vmem:[%s4026_s27 + $0x674] sm:$0x11] }
 0x10f   : > { %v953_v22 = vmul.f32 %v7093_v42, %v889_v46  ;;  %v7094_v30 = vperm.slane %v4449_v51, 6  ;;  %v981_v61 = vadd.f32 %v980_v55, %v979_v23  ;;  %v984_v16 = vsel %vm334_vm2, %v947_v18, 0.0  ;;  %v1017_v18 = vld [vmem:[%s4026_s27 + $0x67c] sm:$0x11] }
 0x110   : > { %v986_v54 = vsel %vm334_vm2, %v948_v33, 0.0  ;;  %v1315_v6 = vadd.f32 %v1314_v26, %v1313_v37  ;;  %v1039_v60 = vunpack.c.l.bf16 %v1014_v20  ;;  %v7095_v11 = vperm.slane %v4245_v14, 0 }
 0x111   : > { %v954_v45 = vmul.f32 %v7094_v30, %v890_v39  ;;  %v7096_v58 = vperm.slane %v4245_v14, 1  ;;  %v983_v57 = vadd.f32 %v982_v44, %v981_v61  ;;  %v988_v51 = vsel %vm334_vm2, %v949_v56, 0.0 }
 0x112   : > { %v1099_v52 = vmul.f32 %v7095_v11, %v1035_v15  ;;  %v990_v63 = vsel %vm334_vm2, %v950_v34, 0.0  ;;  %v7097_v46 = vperm.slane %v4245_v14, 2  ;;  %v1317_v26 = vadd.f32 %v1316_v41, %v1315_v6 }
 0x113   : > { %v1100_v9 = vmul.f32 %v7096_v58, %v1036_v28  ;;  %v992_v5 = vsel %vm334_vm2, %v951_v43, 0.0  ;;  %v1040_v59 = vunpack.c.h.bf16 %v1014_v20  ;;  %v7098_v13 = vperm.slane %v4245_v14, 3 }
 0x114   : > { %v1101_v39 = vmul.f32 %v7097_v46, %v1037_v29  ;;  %v985_v25 = vadd.f32 %v984_v16, %v983_v57  ;;  %v994_v21 = vsel %vm334_vm2, %v952_v12, 0.0  ;;  %v1041_v62 = vunpack.c.l.bf16 %v1015_v17  ;;  %1318 = vadd.xlane.f32.xlu1 %v1317_v26 }
 0x115   : > { %v1102_v50 = vmul.f32 %v7098_v13, %v1038_v32  ;;  %v1042_v4 = vunpack.c.h.bf16 %v1015_v17  ;;  %v1043_v33 = vunpack.c.l.bf16 %v1016_v24  ;;  %v7099_v36 = vperm.slane %v4245_v14, 4  ;;  %v1481_v13 = vld [vmem:[%s4026_s27 + $0x1e0] sm:$0xff] }
 0x116   : > { %v1130_v41 = vsel %vm334_vm2, %v1099_v52, 0.0  ;;  %v1131_v3 = vsel %vm334_vm2, %v1100_v9, 0.0  ;;  %v987_v34 = vadd.f32 %v986_v54, %v985_v25  ;;  %v1044_v1 = vunpack.c.h.bf16 %v1016_v24 }
 0x117   : > { %v1103_v56 = vmul.f32 %v7099_v36, %v1039_v60  ;;  %v1132_v55 = vadd.f32 %v1131_v3, %v1130_v41  ;;  %v1133_v15 = vsel %vm334_vm2, %v1101_v39, 0.0  ;;  %v1045_v28 = vunpack.c.l.bf16 %v1017_v18 }
 0x118   : > { %v1046_v8 = vunpack.c.h.bf16 %v1017_v18  ;;  %v7100_v43 = vperm.slane %v4245_v14, 5  ;;  %v1135_v12 = vsel %vm334_vm2, %v1102_v50, 0.0  ;;  %v989_v23 = vadd.f32 %v988_v51, %v987_v34 }
 0x119   : > { %v1047_v20 = vunpack.c.l.bf16 %v1018_v10  ;;  %v1048_v29 = vunpack.c.h.bf16 %v1018_v10  ;;  %v1134_v37 = vadd.f32 %v1133_v15, %v1132_v55  ;;  %v1049_v42 = vunpack.c.l.bf16 %v1019_v7  ;;  %v1483_v55 = vld [vmem:[%s4026_s27 + $0x1f0] sm:$0xff]  ;;  %v1484_v15 = vld [vmem:[%s4026_s27 + $0x1f8] sm:$0xff] }
 0x11a   : > { %v1104_v27 = vmul.f32 %v7100_v43, %v1040_v59  ;;  %v7101_v44 = vperm.slane %v4245_v14, 6  ;;  %v7102_v30 = vperm.slane %v4245_v14, 7  ;;  %v1137_v16 = vsel %vm334_vm2, %v1103_v56, 0.0  ;;  %v1482_v56 = vld [vmem:[%s4026_s27 + $0x1e8] sm:$0xff] }
 0x11b   : > { %v991_v54 = vadd.f32 %v990_v63, %v989_v23  ;;  %v7103_v6 = vperm.slane %v4278_v53, 0  ;;  %v7104_v60 = vperm.slane %v4278_v53, 1  ;;  %v1136_v52 = vadd.f32 %v1135_v12, %v1134_v37  ;;  %v5048_v37 = vld [vmem:[%s4026_s27 + $0x208] sm:$0xff] }
 0x11c   : > { %v1105_v32 = vmul.f32 %v7101_v44, %v1041_v62  ;;  %v1106_v61 = vmul.f32 %v7102_v30, %v1042_v4  ;;  %v996_v58 = vsel %vm334_vm2, %v953_v22, 0.0  ;;  %v7105_v9 = vperm.slane %v4278_v53, 2 }
 0x11d   : > { %v1107_v17 = vmul.f32 %v7103_v6, %v1043_v33  ;;  %v1108_v11 = vmul.f32 %v7104_v60, %v1044_v1  ;;  %v7106_v51 = vperm.slane %v4278_v53, 3  ;;  %v1139_v24 = vsel %vm334_vm2, %v1104_v27, 0.0 }
 0x11e   : > { %v1109_v57 = vmul.f32 %v7105_v9, %v1045_v28  ;;  %v993_v63 = vadd.f32 %v992_v5, %v991_v54  ;;  %v998_v46 = vsel %vm334_vm2, %v954_v45, 0.0  ;;  %v7107_v39 = vperm.slane %v4278_v53, 4  ;;  %v5030_v5 = vld [vmem:[%s4036_s29 + $0x78] sm:$0xff] }
 0x11f   : > { %v1110_v14 = vmul.f32 %v7106_v51, %v1046_v8  ;;  %v1138_v59 = vadd.f32 %v1137_v16, %v1136_v52  ;;  %v7108_v50 = vperm.slane %v4278_v53, 5  ;;  %v7109_v25 = vperm.slane %v4278_v53, 6 }
 0x120   : > { %v1111_v26 = vmul.f32 %v7107_v39, %v1047_v20  ;;  %v1141_v62 = vsel %vm334_vm2, %v1105_v32, 0.0  ;;  %v1143_v4 = vsel %vm334_vm2, %v1106_v61, 0.0  ;;  %v995_v45 = vadd.f32 %v994_v21, %v993_v63  ;;  %v5052_v32 = vld [vmem:[%s4026_s27 + $0x210] sm:$0xff] }
 0x121   : > { %v1112_v22 = vmul.f32 %v7108_v50, %v1048_v29  ;;  %v1113_v18 = vmul.f32 %v7109_v25, %v1049_v42  ;;  %v1140_v10 = vadd.f32 %v1139_v24, %v1138_v59  ;;  %v1145_v33 = vsel %vm334_vm2, %v1107_v17, 0.0  ;;  %v1485_v29 = vld [vmem:[%s4026_s27 + $0x200] sm:$0xff]  ;;  %v1488_v17 = vld [vmem:[%s4026_s27 + $0x218] sm:$0xf] }
 0x122   : > { %v1147_v36 = vsel %vm334_vm2, %v1108_v11, 0.0  ;;  %v1149_v41 = vsel %vm334_vm2, %v1109_v57, 0.0  ;;  %v1151_v53 = vsel %vm334_vm2, %v1110_v14, 0.0  ;;  %v1497_v3 = vunpack.c.l.bf16 %v1481_v13  ;;  %v5064_v63 = vld [vmem:[%s4036_s29 + $0x80] sm:$0xff] }
 0x123   : > { %v1498_v34 = vunpack.c.h.bf16 %v1481_v13  ;;  %v997_v7 = vadd.f32 %v996_v58, %v995_v45  ;;  %v1142_v1 = vadd.f32 %v1141_v62, %v1140_v10  ;;  %v1531_v21 = vperm.slane %v5030_v5, 0  ;;  %v1331_v45 = vld [vmem:[%s4026_s27 + $0x6d4] sm:$0x11] }
 0x124   : > { %v1532_v28 = vperm.slane %v5030_v5, 1  ;;  %v1153_v8 = vsel %vm334_vm2, %v1111_v26, 0.0  ;;  %v1155_v43 = vsel %vm334_vm2, %v1112_v22, 0.0  ;;  %v5044_v27 = vsel %vm334_vm2, %v1113_v18, 0.0  ;;  %v1330_v22 = vld [vmem:[%s4026_s27 + $0x6cc] sm:$0x11] }
 0x125   : > { %v1499_v12 = vunpack.c.l.bf16 %v1482_v56  ;;  %v999_v23 = vadd.f32 %v998_v46, %v997_v7  ;;  %v1144_v20 = vadd.f32 %v1143_v4, %v1142_v1  ;;  %v1500_v42 = vunpack.c.h.bf16 %v1482_v56 }
 0x126   : > { %v1533_v44 = vperm.slane %v5030_v5, 2  ;;  %v1501_v30 = vunpack.c.l.bf16 %v1483_v55  ;;  %v1502_v61 = vunpack.c.h.bf16 %v1483_v55  ;;  %v1503_v16 = vunpack.c.l.bf16 %v1484_v15 }
 0x127   : > { %v1504_v54 = vunpack.c.h.bf16 %v1484_v15  ;;  %1000 = vadd.xlane.f32.xlu0 %v999_v23  ;;  %v1146_v6 = vadd.f32 %v1145_v33, %v1144_v20  ;;  %v1534_v60 = vperm.slane %v5030_v5, 3  ;;  %v1561_v11 = vmul.f32 %v1531_v21, %v1497_v3 }
 0x128   : > { %v1562_v52 = vmul.f32 %v1532_v28, %v1498_v34  ;;  %v1505_v58 = vunpack.c.l.bf16 %v1485_v29  ;;  %v1506_v9 = vunpack.c.h.bf16 %v1485_v29  ;;  %v1507_v57 = vunpack.c.l.bf16 %v5048_v37 }
 0x129   : > { %v1508_v51 = vunpack.c.h.bf16 %v5048_v37  ;;  %v1148_v14 = vadd.f32 %v1147_v36, %v1146_v6  ;;  %v1509_v24 = vunpack.c.l.bf16 %v5052_v32  ;;  %v1535_v46 = vperm.slane %v5030_v5, 4 }
 0x12a   : > { %v1563_v39 = vmul.f32 %v1533_v44, %v1499_v12  ;;  %v1510_v26 = vunpack.c.h.bf16 %v5052_v32  ;;  %v1511_v59 = vunpack.c.l.bf16 %v1488_v17  ;;  %v1536_v13 = vperm.slane %v5030_v5, 5 }
 0x12b   : > { %v1537_v50 = vperm.slane %v5030_v5, 6  ;;  %v1150_v25 = vadd.f32 %v1149_v41, %v1148_v14  ;;  %v1538_v18 = vperm.slane %v5030_v5, 7  ;;  %v1564_v62 = vmul.f32 %v1534_v60, %v1500_v42  ;;  %v1333_v14 = vld [vmem:[%s4026_s27 + $0x6e4] sm:$0x11] }
 0x12c   : > { %v1591_v4 = vadd.f32 %v1562_v52, %v1561_v11  ;;  %v1539_v10 = vperm.slane %v5064_v63, 0  ;;  %v1540_v33 = vperm.slane %v5064_v63, 1  ;;  %v1541_v36 = vperm.slane %v5064_v63, 2 }
 0x12d   : > { %v1542_v56 = vperm.slane %v5064_v63, 3  ;;  %v1152_v3 = vadd.f32 %v1151_v53, %v1150_v25  ;;  %v1565_v41 = vmul.f32 %v1535_v46, %v1501_v30  ;;  %v1353_v7 = vunpack.c.l.bf16 %v1330_v22  ;;  %v1332_v53 = vld [vmem:[%s4026_s27 + $0x6dc] sm:$0x11] }
 0x12e   : > { %v1592_v34 = vadd.f32 %v1591_v4, %v1563_v39  ;;  %v1543_v1 = vperm.slane %v5064_v63, 4  ;;  %v1544_v55 = vperm.slane %v5064_v63, 5  ;;  %v1354_v15 = vunpack.c.h.bf16 %v1330_v22  ;;  %v1334_v4 = vld [vmem:[%s4026_s27 + $0x6ec] sm:$0x11] }
 0x12f   : > { %v1355_v12 = vunpack.c.l.bf16 %v1331_v45  ;;  %v1154_v23 = vadd.f32 %v1153_v8, %v1152_v3  ;;  %v1545_v20 = vperm.slane %v5064_v63, 6  ;;  %v1566_v29 = vmul.f32 %v1536_v13, %v1502_v61  ;;  %v1650_v63 = vld [vmem:[%s4026_s27 + $0x754] sm:$0x11] }
 0x130   : > { %v1593_v37 = vadd.f32 %v1592_v34, %v1564_v62  ;;  %v1567_v42 = vmul.f32 %v1537_v50, %v1503_v16  ;;  %v1568_v32 = vmul.f32 %v1538_v18, %v1504_v54  ;;  %v1569_v30 = vmul.f32 %v1539_v10, %v1505_v58 }
 0x131   : > { %v1356_v6 = vunpack.c.h.bf16 %v1331_v45  ;;  %v1156_v17 = vadd.f32 %v1155_v43, %v1154_v23  ;;  %v1570_v8 = vmul.f32 %v1540_v33, %v1506_v9  ;;  %v7110_v61 = vperm.slane %v4610_v19, 0  ;;  %v1337_v23 = vld [vmem:[%s4026_s27 + $0x704] sm:$0x1] }
 0x132   : > { %v1594_v11 = vadd.f32 %v1593_v37, %v1565_v41  ;;  %v1571_v16 = vmul.f32 %v1541_v36, %v1507_v57  ;;  %v1357_v54 = vunpack.c.l.bf16 %v1332_v53  ;;  %v7111_v39 = vperm.slane %v4610_v19, 1  ;;  %v1335_v41 = vld [vmem:[%s4026_s27 + $0x6f4] sm:$0x11] }
 0x133   : > { %v1417_v52 = vmul.f32 %v7110_v61, %v1353_v7  ;;  %v7112_v58 = vperm.slane %v4610_v19, 2  ;;  %v1158_v25 = vadd.f32 %v5044_v27, %v1156_v17  ;;  %v1572_v9 = vmul.f32 %v1542_v56, %v1508_v51  ;;  %v1336_v7 = vld [vmem:[%s4026_s27 + $0x6fc] sm:$0x11] }
 0x134   : > { %v1418_v22 = vmul.f32 %v7111_v39, %v1354_v15  ;;  %v5111_v62 = vmul.f32 %v1543_v1, %v1509_v24  ;;  %v1595_v57 = vadd.f32 %v1594_v11, %v1566_v29  ;;  %v5116_v45 = vmul.f32 %v1544_v55, %v1510_v26 }
 0x135   : > { %v1419_v43 = vmul.f32 %v7112_v58, %v1355_v12  ;;  %v5120_v3 = vmul.f32 %v1545_v20, %v1511_v59  ;;  %v1358_v27 = vunpack.c.h.bf16 %v1332_v53  ;;  %v1420_v34 = vmul.f32 %v1375_v38, %v1356_v6  ;;  %1159 = vadd.xlane.f32.xlu2 %v1158_v25 }
 0x136   : > { %v1596_v51 = vadd.f32 %v1595_v57, %v1567_v42  ;;  %v1359_v24 = vunpack.c.l.bf16 %v1333_v14  ;;  %v1360_v15 = vunpack.c.h.bf16 %v1333_v14  ;;  %v1448_v12 = vsel %vm334_vm2, %v1417_v52, 0.0 }
 0x137   : > { %v1361_v29 = vunpack.c.l.bf16 %v1334_v4  ;;  %v1421_v26 = vmul.f32 %v1376_v2, %v1357_v54  ;;  %v1449_v59 = vsel %vm334_vm2, %v1418_v22, 0.0  ;;  %v1451_v37 = vsel %vm334_vm2, %v1419_v43, 0.0  ;;  %v1489_v54 = vld [vmem:[%s4026_s27 + $0x708] sm:$0x11] }
 0x138   : > { %v1597_v53 = vadd.f32 %v1596_v51, %v1568_v32  ;;  %v1362_v17 = vunpack.c.h.bf16 %v1334_v4  ;;  %v1363_v38 = vunpack.c.l.bf16 %v1335_v41  ;;  %v1450_v42 = vadd.f32 %v1449_v59, %v1448_v12  ;;  %v1491_v12 = vld [vmem:[%s4026_s27 + $0x718] sm:$0x11] }
 0x139   : > { %v1364_v6 = vunpack.c.h.bf16 %v1335_v41  ;;  %v1365_v11 = vunpack.c.l.bf16 %v1336_v7  ;;  %v1422_v61 = vmul.f32 %v1377_v35, %v1358_v27  ;;  %v1453_v52 = vsel %vm334_vm2, %v1420_v34, 0.0  ;;  %v1490_v35 = vld [vmem:[%s4026_s27 + $0x710] sm:$0x11] }
 0x13a   : > { %v1598_v14 = vadd.f32 %v1597_v53, %v1569_v30  ;;  %v1366_v39 = vunpack.c.h.bf16 %v1336_v7  ;;  %v1367_v58 = vunpack.c.l.bf16 %v1337_v23  ;;  %v1452_v2 = vadd.f32 %v1451_v37, %v1450_v42 }
 0x13b   : > { %v7113_v22 = vperm.slane %v4610_v19, 6  ;;  %v1424_v32 = vmul.f32 %v1379_v40, %v1360_v15  ;;  %v1425_v25 = vmul.f32 %v1380_v47, %v1361_v29  ;;  %v1455_v57 = vsel %vm334_vm2, %v1421_v26, 0.0 }
 0x13c   : > { %v1599_v4 = vadd.f32 %v1598_v14, %v1570_v8  ;;  %v1426_v30 = vmul.f32 %v1381_v31, %v1362_v17  ;;  %v1427_v41 = vmul.f32 %v1382_v0, %v1363_v38  ;;  %v1454_v27 = vadd.f32 %v1453_v52, %v1452_v2  ;;  %v1492_v38 = vld [vmem:[%s4026_s27 + $0x720] sm:$0x11] }
 0x13d   : > { %v1423_v43 = vmul.f32 %v7113_v22, %v1359_v24  ;;  %v7114_v34 = vperm.slane %v4656_v48, 3  ;;  %v1457_v19 = vsel %vm334_vm2, %v1422_v61, 0.0  ;;  %v1512_v40 = vunpack.c.l.bf16 %v1489_v54 }
 0x13e   : > { %v1513_v7 = vunpack.c.h.bf16 %v1489_v54  ;;  %v1600_v47 = vadd.f32 %v1599_v4, %v1571_v16  ;;  %v7115_v24 = vperm.slane %v4656_v48, 4  ;;  %v1456_v15 = vadd.f32 %v1455_v57, %v1454_v27 }
 0x13f   : > { %v1428_v51 = vmul.f32 %v7114_v34, %v1364_v6  ;;  %v1514_v31 = vunpack.c.l.bf16 %v1490_v35  ;;  %v7116_v23 = vperm.slane %v4656_v48, 5  ;;  %v1431_v29 = vmul.f32 %v1386_v49, %v1367_v58  ;;  %v1493_v6 = vld [vmem:[%s4026_s27 + $0x728] sm:$0x11] }
 0x140   : > { %v1429_v8 = vmul.f32 %v7115_v24, %v1365_v11  ;;  %v1459_v26 = vsel %vm334_vm2, %v1423_v43, 0.0  ;;  %v1515_v59 = vunpack.c.h.bf16 %v1490_v35  ;;  %v1601_v37 = vadd.f32 %v1600_v47, %v1572_v9 }
 0x141   : > { %v1430_v0 = vmul.f32 %v7116_v23, %v1366_v39  ;;  %v1458_v53 = vadd.f32 %v1457_v19, %v1456_v15  ;;  %v1461_v17 = vsel %vm334_vm2, %v1424_v32, 0.0  ;;  %v1463_v16 = vsel %vm334_vm2, %v1425_v25, 0.0  ;;  %v1495_v32 = vld [vmem:[%s4026_s27 + $0x738] sm:$0x11] }
 0x142   : > { %v1465_v42 = vsel %vm334_vm2, %v1426_v30, 0.0  ;;  %v1516_v11 = vunpack.c.l.bf16 %v1491_v12  ;;  %v1576_v48 = vmul.f32 %v1531_v21, %v1512_v40  ;;  %v1577_v49 = vmul.f32 %v1532_v28, %v1513_v7  ;;  %v1494_v28 = vld [vmem:[%s4026_s27 + $0x730] sm:$0x11] }
 0x143   : > { %v1602_v9 = vadd.f32 %v1601_v37, %v5111_v62  ;;  %v1460_v61 = vadd.f32 %v1459_v26, %v1458_v53  ;;  %v1467_v52 = vsel %vm334_vm2, %v1427_v41, 0.0  ;;  %v1578_v14 = vmul.f32 %v1533_v44, %v1514_v31  ;;  %v1496_v41 = vld [vmem:[%s4026_s27 + $0x740] sm:$0x1] }
 0x144   : > { %v1469_v39 = vsel %vm334_vm2, %v1428_v51, 0.0  ;;  %v1517_v58 = vunpack.c.h.bf16 %v1491_v12  ;;  %v1518_v2 = vunpack.c.l.bf16 %v1492_v38  ;;  %v1579_v54 = vmul.f32 %v1534_v60, %v1515_v59 }
 0x145   : > { %v1603_v21 = vadd.f32 %v1602_v9, %v5116_v45  ;;  %v1462_v22 = vadd.f32 %v1461_v17, %v1460_v61  ;;  %v1519_v43 = vunpack.c.h.bf16 %v1492_v38  ;;  %v1520_v62 = vunpack.c.l.bf16 %v1493_v6 }
 0x146   : > { %v1521_v25 = vunpack.c.h.bf16 %v1493_v6  ;;  %v1580_v57 = vmul.f32 %v1535_v46, %v1516_v11  ;;  %v1607_v44 = vsel %vm334_vm2, %v1576_v48, 0.0  ;;  %v1608_v35 = vsel %vm334_vm2, %v1577_v49, 0.0  ;;  %v1649_v6 = vld [vmem:[%s4026_s27 + $0x74c] sm:$0x11] }
 0x147   : > { %v1604_v4 = vadd.f32 %v1603_v21, %v5120_v3  ;;  %v1464_v30 = vadd.f32 %v1463_v16, %v1462_v22  ;;  %v1609_v60 = vadd.f32 %v1608_v35, %v1607_v44  ;;  %v1610_v45 = vsel %vm334_vm2, %v1578_v14, 0.0  ;;  %v1648_v16 = vld [vmem:[%s4026_s27 + $0x744] sm:$0x11] }
 0x148   : > { %v1522_v27 = vunpack.c.l.bf16 %v1494_v28  ;;  %v1523_v34 = vunpack.c.h.bf16 %v1494_v28  ;;  %v1581_v51 = vmul.f32 %v1536_v13, %v1517_v58  ;;  %v1612_v19 = vsel %vm334_vm2, %v1579_v54, 0.0 }
 0x149   : > { %1605 = vadd.xlane.f32.xlu1 %v1604_v4  ;;  %v1466_v46 = vadd.f32 %v1465_v42, %v1464_v30  ;;  %v1471_v40 = vsel %vm334_vm2, %v1429_v8, 0.0  ;;  %v1524_v7 = vunpack.c.l.bf16 %v1495_v32  ;;  %v1611_v47 = vadd.f32 %v1610_v45, %v1609_v60  ;;  %v1654_v4 = vld [vmem:[%s4026_s27 + $0x774] sm:$0x11]  ;;  %v1655_v45 = vld [vmem:[%s4026_s27 + $0x77c] sm:$0x1] }
 0x14a   : > { %v1525_v24 = vunpack.c.h.bf16 %v1495_v32  ;;  %v1526_v3 = vunpack.c.l.bf16 %v1496_v41  ;;  %v1582_v15 = vmul.f32 %v1537_v50, %v1518_v2  ;;  %v1614_v12 = vsel %vm334_vm2, %v1580_v57, 0.0  ;;  %v1653_v32 = vld [vmem:[%s4026_s27 + $0x76c] sm:$0x11] }
 0x14b   : > { %v1468_v31 = vadd.f32 %v1467_v52, %v1466_v46  ;;  %v1583_v13 = vmul.f32 %v1538_v18, %v1519_v43  ;;  %v1584_v23 = vmul.f32 %v1539_v10, %v1520_v62  ;;  %v1613_v26 = vadd.f32 %v1612_v19, %v1611_v47  ;;  %v1651_v52 = vld [vmem:[%s4026_s27 + $0x75c] sm:$0x11]  ;;  %v1652_v62 = vld [vmem:[%s4026_s27 + $0x764] sm:$0x11] }
 0x14c   : > { %v1585_v8 = vmul.f32 %v1540_v33, %v1521_v25  ;;  %v1586_v59 = vmul.f32 %v1541_v36, %v1522_v27  ;;  %v1587_v50 = vmul.f32 %v1542_v56, %v1523_v34  ;;  %v1616_v37 = vsel %vm334_vm2, %v1581_v51, 0.0 }
 0x14d   : > { %v1470_v53 = vadd.f32 %v1469_v39, %v1468_v31  ;;  %v1473_v5 = vsel %vm334_vm2, %v1430_v0, 0.0  ;;  %v1615_v18 = vadd.f32 %v1614_v12, %v1613_v26  ;;  %v1475_v10 = vsel %vm334_vm2, %v1431_v29, 0.0  ;;  %v5216_v29 = vld [vmem:[%s4036_s29 + $0x87] sm:$0xff] }
 0x14e   : > { %v1588_v17 = vmul.f32 %v1543_v1, %v1524_v7  ;;  %v1589_v33 = vmul.f32 %v1544_v55, %v1525_v24  ;;  %v1618_v36 = vsel %vm334_vm2, %v1582_v15, 0.0  ;;  %v1590_v38 = vmul.f32 %v1545_v20, %v1526_v3  ;;  %v5243_v15 = vld [vmem:[%s4036_s29 + $0x8f] sm:$0xff] }
 0x14f   : > { %v1472_v56 = vadd.f32 %v1471_v40, %v1470_v53  ;;  %v1617_v42 = vadd.f32 %v1616_v37, %v1615_v18  ;;  %v1620_v0 = vsel %vm334_vm2, %v1583_v13, 0.0  ;;  %v1622_v1 = vsel %vm334_vm2, %v1584_v23, 0.0 }
 0x150   : > { %v1624_v11 = vsel %vm334_vm2, %v1585_v8, 0.0  ;;  %v1626_v55 = vsel %vm334_vm2, %v1586_v59, 0.0  ;;  %v1628_v48 = vsel %vm334_vm2, %v1587_v50, 0.0  ;;  %v1671_v20 = vunpack.c.l.bf16 %v1648_v16 }
 0x151   : > { %v1474_v49 = vadd.f32 %v1473_v5, %v1472_v56  ;;  %v1619_v9 = vadd.f32 %v1618_v36, %v1617_v42  ;;  %v1672_v61 = vunpack.c.h.bf16 %v1648_v16  ;;  %v1673_v14 = vunpack.c.l.bf16 %v1649_v6 }
 0x152   : > { %v1690_v39 = vperm.slane %v5216_v29, 0  ;;  %v1691_v58 = vperm.slane %v5216_v29, 1  ;;  %v1692_v2 = vperm.slane %v5216_v29, 2  ;;  %v1630_v22 = vsel %vm334_vm2, %v1588_v17, 0.0 }
 0x153   : > { %v1476_v54 = vadd.f32 %v1475_v10, %v1474_v49  ;;  %v1621_v21 = vadd.f32 %v1620_v0, %v1619_v9  ;;  %v1632_v28 = vsel %vm334_vm2, %v1589_v33, 0.0  ;;  %v1634_v43 = vsel %vm334_vm2, %v1590_v38, 0.0 }
 0x154   : > { %v1674_v25 = vunpack.c.h.bf16 %v1649_v6  ;;  %v1675_v57 = vunpack.c.l.bf16 %v1650_v63  ;;  %v1693_v44 = vperm.slane %v5216_v29, 3  ;;  %v1676_v30 = vunpack.c.h.bf16 %v1650_v63 }
 0x155   : > { %1477 = vadd.xlane.f32.xlu0 %v1476_v54  ;;  %v1623_v35 = vadd.f32 %v1622_v1, %v1621_v21  ;;  %v1677_v41 = vunpack.c.l.bf16 %v1651_v52  ;;  %v1678_v60 = vunpack.c.h.bf16 %v1651_v52  ;;  %v1694_v27 = vperm.slane %v5216_v29, 4  ;;  %v1640_v1 = vld [vmem:[%s4026_s27 + $0x21c] sm:$0xff]  ;;  %v1641_v52 = vld [vmem:[%s4026_s27 + $0x224] sm:$0xff] }
 0x156   : > { %v1735_v34 = vmul.f32 %v1690_v39, %v1671_v20  ;;  %v1736_v51 = vmul.f32 %v1691_v58, %v1672_v61  ;;  %v1737_v19 = vmul.f32 %v1692_v2, %v1673_v14  ;;  %v1679_v40 = vunpack.c.l.bf16 %v1652_v62 }
 0x157   : > { %v1625_v46 = vadd.f32 %v1624_v11, %v1623_v35  ;;  %v1680_v7 = vunpack.c.h.bf16 %v1652_v62  ;;  %v1681_v47 = vunpack.c.l.bf16 %v1653_v32  ;;  %v1682_v24 = vunpack.c.h.bf16 %v1653_v32 }
 0x158   : > { %v1683_v3 = vunpack.c.l.bf16 %v1654_v4  ;;  %v1695_v12 = vperm.slane %v5216_v29, 5  ;;  %v1738_v31 = vmul.f32 %v1693_v44, %v1674_v25  ;;  %v1684_v23 = vunpack.c.h.bf16 %v1654_v4 }
 0x159   : > { %v1627_v13 = vadd.f32 %v1626_v55, %v1625_v46  ;;  %v1685_v26 = vunpack.c.l.bf16 %v1655_v45  ;;  %v1696_v8 = vperm.slane %v5216_v29, 6  ;;  %v1739_v59 = vmul.f32 %v1694_v27, %v1675_v57  ;;  %v1642_v45 = vld [vmem:[%s4026_s27 + $0x22c] sm:$0xff] }
 0x15a   : > { %v1766_v50 = vsel %vm334_vm2, %v1735_v34, 0.0  ;;  %v1767_v37 = vsel %vm334_vm2, %v1736_v51, 0.0  ;;  %v1769_v53 = vsel %vm334_vm2, %v1737_v19, 0.0  ;;  %v1697_v18 = vperm.slane %v5216_v29, 7  ;;  %v1643_v51 = vld [vmem:[%s4026_s27 + $0x234] sm:$0xff] }
 0x15b   : > { %v1629_v5 = vadd.f32 %v1628_v48, %v1627_v13  ;;  %v1698_v10 = vperm.slane %v5243_v15, 0  ;;  %v1768_v17 = vadd.f32 %v1767_v37, %v1766_v50  ;;  %v1699_v33 = vperm.slane %v5243_v15, 1 }
 0x15c   : > { %v1700_v36 = vperm.slane %v5243_v15, 2  ;;  %v1740_v16 = vmul.f32 %v1695_v12, %v1676_v30  ;;  %v1771_v56 = vsel %vm334_vm2, %v1738_v31, 0.0  ;;  %v1701_v42 = vperm.slane %v5243_v15, 3  ;;  %v1644_v31 = vld [vmem:[%s4026_s27 + $0x23c] sm:$0xff] }
 0x15d   : > { %v1631_v38 = vadd.f32 %v1630_v22, %v1629_v5  ;;  %v1702_v0 = vperm.slane %v5243_v15, 4  ;;  %v1770_v6 = vadd.f32 %v1769_v53, %v1768_v17  ;;  %v1703_v11 = vperm.slane %v5243_v15, 5 }
 0x15e   : > { %v1704_v55 = vperm.slane %v5243_v15, 6  ;;  %v1741_v48 = vmul.f32 %v1696_v8, %v1677_v41  ;;  %v1773_v49 = vsel %vm334_vm2, %v1739_v59, 0.0  ;;  %v1742_v63 = vmul.f32 %v1697_v18, %v1678_v60  ;;  %v1646_v59 = vld [vmem:[%s4026_s27 + $0x24c] sm:$0xff] }
 0x15f   : > { %v1633_v9 = vadd.f32 %v1632_v28, %v1631_v38  ;;  %v1743_v20 = vmul.f32 %v1698_v10, %v1679_v40  ;;  %v1772_v61 = vadd.f32 %v1771_v56, %v1770_v6  ;;  %v1744_v14 = vmul.f32 %v1699_v33, %v1680_v7  ;;  %v5352_v15 = vld [vmem:[%s4026_s27 + $0x288] sm:$0xff] }
 0x160   : > { %v1775_v54 = vsel %vm334_vm2, %v1740_v16, 0.0  ;;  %v1656_v21 = vunpack.c.l.bf16 %v1640_v1  ;;  %v1657_v22 = vunpack.c.h.bf16 %v1640_v1  ;;  %v1745_v28 = vmul.f32 %v1700_v36, %v1681_v47 }
 0x161   : > { %v1635_v62 = vadd.f32 %v1634_v43, %v1633_v9  ;;  %v1746_v32 = vmul.f32 %v1701_v42, %v1682_v24  ;;  %v1774_v25 = vadd.f32 %v1773_v49, %v1772_v61  ;;  %v1747_v57 = vmul.f32 %v1702_v0, %v1683_v3 }
 0x162   : > { %v1748_v35 = vmul.f32 %v1703_v11, %v1684_v23  ;;  %v1777_v4 = vsel %vm334_vm2, %v1741_v48, 0.0  ;;  %v1658_v30 = vunpack.c.l.bf16 %v1641_v52  ;;  %v1749_v43 = vmul.f32 %v1704_v55, %v1685_v26  ;;  %v1645_v26 = vld [vmem:[%s4026_s27 + $0x244] sm:$0xff] }
 0x163   : > { %1636 = vadd.xlane.f32.xlu2 %v1635_v62  ;;  %v1776_v41 = vadd.f32 %v1775_v54, %v1774_v25  ;;  %v1779_v60 = vsel %vm334_vm2, %v1742_v63, 0.0  ;;  %v1781_v34 = vsel %vm334_vm2, %v1743_v20, 0.0  ;;  %v1659_v19 = vunpack.c.h.bf16 %v1641_v52 }
 0x164   : > { %v1720_v46 = vmul.f32 %v1690_v39, %v1656_v21  ;;  %v1721_v40 = vmul.f32 %v1691_v58, %v1657_v22  ;;  %v1783_v47 = vsel %vm334_vm2, %v1744_v14, 0.0  ;;  %v1785_v24 = vsel %vm334_vm2, %v1745_v28, 0.0  ;;  %v1647_v58 = vld [vmem:[%s4026_s27 + $0x254] sm:$0xf]  ;;  %v1799_v21 = vld [vmem:[%s4026_s27 + $0x258] sm:$0xff] }
 0x165   : > { %v1778_v7 = vadd.f32 %v1777_v4, %v1776_v41  ;;  %v1787_v3 = vsel %vm334_vm2, %v1746_v32, 0.0  ;;  %v1789_v13 = vsel %vm334_vm2, %v1747_v57, 0.0  ;;  %v1791_v23 = vsel %vm334_vm2, %v1748_v35, 0.0  ;;  %v5324_v32 = vld [vmem:[%s4036_s29 + $0x96] sm:$0xff] }
 0x166   : > { %v1660_v50 = vunpack.c.l.bf16 %v1642_v45  ;;  %v1722_v39 = vmul.f32 %v1692_v2, %v1658_v30  ;;  %v1661_v53 = vunpack.c.h.bf16 %v1642_v45  ;;  %v1662_v5 = vunpack.c.l.bf16 %v1643_v51  ;;  %v1802_v35 = vld [vmem:[%s4026_s27 + $0x270] sm:$0xff]  ;;  %v1803_v30 = vld [vmem:[%s4026_s27 + $0x278] sm:$0xff] }
 0x167   : > { %v1780_v37 = vadd.f32 %v1779_v60, %v1778_v7  ;;  %v1663_v17 = vunpack.c.h.bf16 %v1643_v51  ;;  %v1664_v16 = vunpack.c.l.bf16 %v1644_v31  ;;  %v1665_v56 = vunpack.c.h.bf16 %v1644_v31 }
 0x168   : > { %v1723_v38 = vmul.f32 %v1693_v44, %v1659_v19  ;;  %v1750_v6 = vadd.f32 %v1721_v40, %v1720_v46  ;;  %v1666_v48 = vunpack.c.l.bf16 %v1645_v26  ;;  %v1667_v49 = vunpack.c.h.bf16 %v1645_v26  ;;  %v1804_v19 = vld [vmem:[%s4026_s27 + $0x280] sm:$0xff] }
 0x169   : > { %v1782_v1 = vadd.f32 %v1781_v34, %v1780_v37  ;;  %v1668_v9 = vunpack.c.l.bf16 %v1646_v59  ;;  %v1669_v63 = vunpack.c.h.bf16 %v1646_v59  ;;  %v1670_v20 = vunpack.c.l.bf16 %v1647_v58 }
 0x16a   : > { %v1724_v2 = vmul.f32 %v1694_v27, %v1660_v50  ;;  %v1751_v61 = vadd.f32 %v1750_v6, %v1722_v39  ;;  %v1793_v14 = vsel %vm334_vm2, %v1749_v43, 0.0  ;;  %v1725_v44 = vmul.f32 %v1695_v12, %v1661_v53  ;;  %v5362_v53 = vld [vmem:[%s4036_s29 + $0x9e] sm:$0xff] }
 0x16b   : > { %v1784_v52 = vadd.f32 %v1783_v47, %v1782_v1  ;;  %v1726_v54 = vmul.f32 %v1696_v8, %v1662_v5  ;;  %v1727_v22 = vmul.f32 %v1697_v18, %v1663_v17  ;;  %v1728_v27 = vmul.f32 %v1698_v10, %v1664_v16  ;;  %v1800_v18 = vld [vmem:[%s4026_s27 + $0x260] sm:$0xff]  ;;  %v1801_v10 = vld [vmem:[%s4026_s27 + $0x268] sm:$0xff]  ;;  %v1806_v17 = vld [vmem:[%s4026_s27 + $0x290] sm:$0xf] }
 0x16c   : > { %v1729_v62 = vmul.f32 %v1699_v33, %v1665_v56  ;;  %v1752_v28 = vadd.f32 %v1751_v61, %v1723_v38  ;;  %v1730_v12 = vmul.f32 %v1700_v36, %v1666_v48  ;;  %v5330_v8 = vmul.f32 %v1701_v42, %v1667_v49 }
 0x16d   : > { %v1786_v25 = vadd.f32 %v1785_v24, %v1784_v52  ;;  %v5334_v29 = vmul.f32 %v1702_v0, %v1668_v9  ;;  %v5340_v33 = vmul.f32 %v1703_v11, %v1669_v63  ;;  %v5344_v57 = vmul.f32 %v1704_v55, %v1670_v20 }
 0x16e   : > { %v1753_v36 = vadd.f32 %v1752_v28, %v1724_v2  ;;  %v1815_v42 = vunpack.c.l.bf16 %v1799_v21  ;;  %v1816_v43 = vunpack.c.h.bf16 %v1799_v21  ;;  %v1849_v0 = vperm.slane %v5324_v32, 0 }
 0x16f   : > { %v1788_v4 = vadd.f32 %v1787_v3, %v1786_v25  ;;  %v1850_v41 = vperm.slane %v5324_v32, 1  ;;  %v1817_v45 = vunpack.c.l.bf16 %v1800_v18  ;;  %v1818_v34 = vunpack.c.h.bf16 %v1800_v18 }
 0x170   : > { %v1754_v60 = vadd.f32 %v1753_v36, %v1725_v44  ;;  %v1819_v11 = vunpack.c.l.bf16 %v1801_v10  ;;  %v1820_v55 = vunpack.c.h.bf16 %v1801_v10  ;;  %v1821_v46 = vunpack.c.l.bf16 %v1802_v35  ;;  %v5389_v10 = vld [vmem:[%s4036_s29 + $0xa5] sm:$0xff] }
 0x171   : > { %v1790_v51 = vadd.f32 %v1789_v13, %v1788_v4  ;;  %v1851_v40 = vperm.slane %v5324_v32, 2  ;;  %v1822_v47 = vunpack.c.h.bf16 %v1802_v35  ;;  %v1823_v24 = vunpack.c.l.bf16 %v1803_v30 }
 0x172   : > { %v1755_v7 = vadd.f32 %v1754_v60, %v1726_v54  ;;  %v1824_v3 = vunpack.c.h.bf16 %v1803_v30  ;;  %v1852_v26 = vperm.slane %v5324_v32, 3  ;;  %v1879_v59 = vmul.f32 %v1849_v0, %v1815_v42  ;;  %v1959_v60 = vld [vmem:[%s4026_s27 + $0x29c] sm:$0xff] }
 0x173   : > { %v1792_v31 = vadd.f32 %v1791_v23, %v1790_v51  ;;  %v1880_v13 = vmul.f32 %v1850_v41, %v1816_v43  ;;  %v1825_v39 = vunpack.c.l.bf16 %v1804_v19  ;;  %v1826_v37 = vunpack.c.h.bf16 %v1804_v19  ;;  %v5407_v51 = vld [vmem:[%s4026_s27 + $0x2ac] sm:$0xff] }
 0x174   : > { %v1756_v50 = vadd.f32 %v1755_v7, %v1727_v22  ;;  %v1827_v58 = vunpack.c.l.bf16 %v5352_v15  ;;  %v1828_v16 = vunpack.c.h.bf16 %v5352_v15  ;;  %v1853_v23 = vperm.slane %v5324_v32, 4 }
 0x175   : > { %v1794_v5 = vadd.f32 %v1793_v14, %v1792_v31  ;;  %v1881_v56 = vmul.f32 %v1851_v40, %v1817_v45  ;;  %v1854_v6 = vperm.slane %v5324_v32, 5  ;;  %v1855_v1 = vperm.slane %v5324_v32, 6 }
 0x176   : > { %v1757_v38 = vadd.f32 %v1756_v50, %v1728_v27  ;;  %v1856_v48 = vperm.slane %v5324_v32, 7  ;;  %v1857_v49 = vperm.slane %v5362_v53, 0  ;;  %v1858_v9 = vperm.slane %v5362_v53, 1  ;;  %v1958_v27 = vld [vmem:[%s4026_s27 + $0x294] sm:$0xff]  ;;  %v5430_v50 = vld [vmem:[%s4026_s27 + $0x2bc] sm:$0xff] }
 0x177   : > { %1795 = vadd.xlane.f32.xlu1 %v1794_v5  ;;  %v1882_v63 = vmul.f32 %v1852_v26, %v1818_v34  ;;  %v1909_v20 = vadd.f32 %v1880_v13, %v1879_v59  ;;  %v1829_v61 = vunpack.c.l.bf16 %v1806_v17  ;;  %v1859_v52 = vperm.slane %v5362_v53, 2  ;;  %v5434_v17 = vld [vmem:[%s4026_s27 + $0x2c4] sm:$0xff] }
 0x178   : > { %v1758_v2 = vadd.f32 %v1757_v38, %v1729_v62  ;;  %v1860_v14 = vperm.slane %v5362_v53, 3  ;;  %v1861_v44 = vperm.slane %v5362_v53, 4  ;;  %v1862_v54 = vperm.slane %v5362_v53, 5 }
 0x179   : > { %v1883_v21 = vmul.f32 %v1853_v23, %v1819_v11  ;;  %v1910_v22 = vadd.f32 %v1909_v20, %v1881_v56  ;;  %v1863_v62 = vperm.slane %v5362_v53, 6  ;;  %v1884_v25 = vmul.f32 %v1854_v6, %v1820_v55  ;;  %v1960_v11 = vld [vmem:[%s4026_s27 + $0x2a4] sm:$0xff] }
 0x17a   : > { %v1759_v28 = vadd.f32 %v1758_v2, %v1730_v12  ;;  %v1885_v18 = vmul.f32 %v1855_v1, %v1821_v46  ;;  %v1886_v36 = vmul.f32 %v1856_v48, %v1822_v47  ;;  %v1887_v35 = vmul.f32 %v1857_v49, %v1823_v24 }
 0x17b   : > { %v1888_v12 = vmul.f32 %v1858_v9, %v1824_v3  ;;  %v1911_v42 = vadd.f32 %v1910_v22, %v1882_v63  ;;  %v1889_v30 = vmul.f32 %v1859_v52, %v1825_v39  ;;  %v5402_v43 = vmul.f32 %v1860_v14, %v1826_v37  ;;  %v5425_v3 = vld [vmem:[%s4026_s27 + $0x2b4] sm:$0xff] }
 0x17c   : > { %v1760_v4 = vadd.f32 %v1759_v28, %v5330_v8  ;;  %v1974_v45 = vunpack.c.l.bf16 %v1958_v27  ;;  %v1975_v19 = vunpack.c.h.bf16 %v1958_v27  ;;  %v2008_v15 = vperm.slane %v5389_v10, 0  ;;  %v5450_v27 = vld [vmem:[%s4036_s29 + $0xad] sm:$0xff] }
 0x17d   : > { %v1912_v34 = vadd.f32 %v1911_v42, %v1883_v21  ;;  %v2009_v8 = vperm.slane %v5389_v10, 1  ;;  %v5414_v46 = vmul.f32 %v1861_v44, %v1827_v58  ;;  %v5418_v7 = vmul.f32 %v1862_v54, %v1828_v16  ;;  %v5437_v16 = vld [vmem:[%s4026_s27 + $0x2cc] sm:$0xf] }
 0x17e   : > { %v1761_v55 = vadd.f32 %v1760_v4, %v5334_v29  ;;  %v5422_v47 = vmul.f32 %v1863_v62, %v1829_v61  ;;  %v1976_v31 = vunpack.c.l.bf16 %v1959_v60  ;;  %v1977_v59 = vunpack.c.h.bf16 %v1959_v60 }
 0x17f   : > { %v1913_v24 = vadd.f32 %v1912_v34, %v1884_v25  ;;  %v7008_v29 = vperm.slane %v5389_v10, 2  ;;  %v1978_v39 = vunpack.c.l.bf16 %v1960_v11  ;;  %v1979_v37 = vunpack.c.h.bf16 %v1960_v11  ;;  %v1807_v11 = vld [vmem:[%s4026_s27 + $0x780] sm:$0x11] }
 0x180   : > { %v1762_v13 = vadd.f32 %v1761_v55, %v5340_v33  ;;  %v1980_v58 = vunpack.c.l.bf16 %v5407_v51  ;;  %v7007_v56 = vperm.slane %v5389_v10, 3  ;;  %v2038_v38 = vmul.f32 %v2008_v15, %v1974_v45 }
 0x181   : > { %v1914_v5 = vadd.f32 %v1913_v24, %v1885_v18  ;;  %v2039_v33 = vmul.f32 %v2009_v8, %v1975_v19  ;;  %v1981_v20 = vunpack.c.h.bf16 %v5407_v51  ;;  %v1982_v2 = vunpack.c.l.bf16 %v5425_v3  ;;  %v1808_v51 = vld [vmem:[%s4026_s27 + $0x788] sm:$0x11] }
 0x182   : > { %v1763_v63 = vadd.f32 %v1762_v13, %v5344_v57  ;;  %v1983_v61 = vunpack.c.h.bf16 %v5425_v3  ;;  %v1984_v22 = vunpack.c.l.bf16 %v5430_v50  ;;  %v2012_v28 = vperm.slane %v5389_v10, 4 }
 0x183   : > { %v1915_v21 = vadd.f32 %v1914_v5, %v1886_v36  ;;  %v2040_v25 = vmul.f32 %v7008_v29, %v1976_v31  ;;  %v1985_v57 = vunpack.c.h.bf16 %v5430_v50  ;;  %v1986_v18 = vunpack.c.l.bf16 %v5434_v17 }
 0x184   : > { %1764 = vadd.xlane.f32.xlu0 %v1763_v63  ;;  %v1987_v42 = vunpack.c.h.bf16 %v5434_v17  ;;  %v1988_v4 = vunpack.c.l.bf16 %v5437_v16  ;;  %v2013_v36 = vperm.slane %v5389_v10, 5  ;;  %v2041_v45 = vmul.f32 %v7007_v56, %v1977_v59  ;;  %v1967_v16 = vld [vmem:[%s4026_s27 + $0x7c4] sm:$0x11] }
 0x185   : > { %v1916_v60 = vadd.f32 %v1915_v21, %v1887_v35  ;;  %v2068_v34 = vadd.f32 %v2039_v33, %v2038_v38  ;;  %v2014_v19 = vperm.slane %v5389_v10, 6  ;;  %v2015_v55 = vperm.slane %v5389_v10, 7 }
 0x186   : > { %v2016_v24 = vperm.slane %v5450_v27, 0  ;;  %v2017_v3 = vperm.slane %v5450_v27, 1  ;;  %v2018_v35 = vperm.slane %v5450_v27, 2  ;;  %v2042_v13 = vmul.f32 %v2012_v28, %v1978_v39 }
 0x187   : > { %v1917_v31 = vadd.f32 %v1916_v60, %v1888_v12  ;;  %v2069_v50 = vadd.f32 %v2068_v34, %v2040_v25  ;;  %v2019_v59 = vperm.slane %v5450_v27, 3  ;;  %v1830_v5 = vunpack.c.l.bf16 %v1807_v11  ;;  %v1809_v12 = vld [vmem:[%s4026_s27 + $0x790] sm:$0x11] }
 0x188   : > { %v1831_v17 = vunpack.c.h.bf16 %v1807_v11  ;;  %v1832_v38 = vunpack.c.l.bf16 %v1808_v51  ;;  %v2020_v63 = vperm.slane %v5450_v27, 4  ;;  %v2043_v21 = vmul.f32 %v2013_v36, %v1979_v37  ;;  %v1810_v37 = vld [vmem:[%s4026_s27 + $0x798] sm:$0x11] }
 0x189   : > { %v1918_v33 = vadd.f32 %v1917_v31, %v1889_v30  ;;  %v2070_v56 = vadd.f32 %v2069_v50, %v2041_v45  ;;  %v2021_v60 = vperm.slane %v5450_v27, 5  ;;  %v2022_v29 = vperm.slane %v5450_v27, 6 }
 0x18a   : > { %v2044_v39 = vmul.f32 %v2014_v19, %v1980_v58  ;;  %v1833_v25 = vunpack.c.h.bf16 %v1808_v51  ;;  %v2045_v30 = vmul.f32 %v2015_v55, %v1981_v20  ;;  %v2046_v11 = vmul.f32 %v2016_v24, %v1982_v2 }
 0x18b   : > { %v1919_v34 = vadd.f32 %v1918_v33, %v5402_v43  ;;  %v2071_v31 = vadd.f32 %v2070_v56, %v2042_v13  ;;  %v1834_v45 = vunpack.c.l.bf16 %v1809_v12  ;;  %v1894_v50 = vmul.f32 %v1849_v0, %v1830_v5  ;;  %v1811_v5 = vld [vmem:[%s4026_s27 + $0x7a0] sm:$0x11] }
 0x18c   : > { %v1895_v58 = vmul.f32 %v1850_v41, %v1831_v17  ;;  %v1896_v43 = vmul.f32 %v1851_v40, %v1832_v38  ;;  %v2047_v20 = vmul.f32 %v2017_v3, %v1983_v61  ;;  %v2048_v56 = vmul.f32 %v2018_v35, %v1984_v22  ;;  %v1812_v38 = vld [vmem:[%s4026_s27 + $0x7a8] sm:$0x11] }
 0x18d   : > { %v1920_v51 = vadd.f32 %v1919_v34, %v5414_v46  ;;  %v2072_v2 = vadd.f32 %v2071_v31, %v2043_v21  ;;  %v2049_v13 = vmul.f32 %v2019_v59, %v1985_v57  ;;  %v2050_v0 = vmul.f32 %v2020_v63, %v1986_v18 }
 0x18e   : > { %v1835_v41 = vunpack.c.h.bf16 %v1809_v12  ;;  %v1897_v40 = vmul.f32 %v1852_v26, %v1833_v25  ;;  %v5506_v61 = vmul.f32 %v2021_v60, %v1987_v42  ;;  %v1836_v17 = vunpack.c.l.bf16 %v1810_v37  ;;  %v1813_v12 = vld [vmem:[%s4026_s27 + $0x7b0] sm:$0x11] }
 0x18f   : > { %v1921_v46 = vadd.f32 %v1920_v51, %v5418_v7  ;;  %v2073_v22 = vadd.f32 %v2072_v2, %v2044_v39  ;;  %v1898_v57 = vmul.f32 %v1853_v23, %v1834_v45  ;;  %v1925_v18 = vsel %vm334_vm2, %v1894_v50, 0.0  ;;  %v1814_v39 = vld [vmem:[%s4026_s27 + $0x7b8] sm:$0x1]  ;;  %v1966_v2 = vld [vmem:[%s4026_s27 + $0x7bc] sm:$0x11] }
 0x190   : > { %v1926_v33 = vsel %vm334_vm2, %v1895_v58, 0.0  ;;  %v1928_v26 = vsel %vm334_vm2, %v1896_v43, 0.0  ;;  %v1837_v25 = vunpack.c.h.bf16 %v1810_v37  ;;  %v1838_v34 = vunpack.c.l.bf16 %v1811_v5 }
 0x191   : > { %v1922_v21 = vadd.f32 %v1921_v46, %v5422_v47  ;;  %v2074_v7 = vadd.f32 %v2073_v22, %v2045_v30  ;;  %v1927_v42 = vadd.f32 %v1926_v33, %v1925_v18  ;;  %v1839_v31 = vunpack.c.h.bf16 %v1811_v5 }
 0x192   : > { %v1899_v51 = vmul.f32 %v1854_v6, %v1835_v41  ;;  %v1930_v23 = vsel %vm334_vm2, %v1897_v40, 0.0  ;;  %v2052_v47 = vmul.f32 %v2022_v29, %v1988_v4  ;;  %v1840_v45 = vunpack.c.l.bf16 %v1812_v38 }
 0x193   : > { %1923 = vadd.xlane.f32.xlu2 %v1922_v21  ;;  %v2075_v30 = vadd.f32 %v2074_v7, %v2046_v11  ;;  %v1929_v37 = vadd.f32 %v1928_v26, %v1927_v42  ;;  %v1841_v50 = vunpack.c.h.bf16 %v1812_v38  ;;  %v1842_v58 = vunpack.c.l.bf16 %v1813_v12 }
 0x194   : > { %v1900_v43 = vmul.f32 %v1855_v1, %v1836_v17  ;;  %v1932_v6 = vsel %vm334_vm2, %v1898_v57, 0.0  ;;  %v1843_v40 = vunpack.c.h.bf16 %v1813_v12  ;;  %v1844_v46 = vunpack.c.l.bf16 %v1814_v39  ;;  %v1968_v57 = vld [vmem:[%s4026_s27 + $0x7cc] sm:$0x11]  ;;  %v1969_v39 = vld [vmem:[%s4026_s27 + $0x7d4] sm:$0x11] }
 0x195   : > { %v2076_v41 = vadd.f32 %v2075_v30, %v2047_v20  ;;  %v1931_v22 = vadd.f32 %v1930_v23, %v1929_v37  ;;  %v1901_v4 = vmul.f32 %v1856_v48, %v1837_v25  ;;  %v1902_v11 = vmul.f32 %v1857_v49, %v1838_v34  ;;  %v1970_v23 = vld [vmem:[%s4026_s27 + $0x7dc] sm:$0x11]  ;;  %v1971_v37 = vld [vmem:[%s4026_s27 + $0x7e4] sm:$0x11] }
 0x196   : > { %v1903_v5 = vmul.f32 %v1858_v9, %v1839_v31  ;;  %v1934_v38 = vsel %vm334_vm2, %v1899_v51, 0.0  ;;  %v1989_v18 = vunpack.c.l.bf16 %v1966_v2  ;;  %v1990_v20 = vunpack.c.h.bf16 %v1966_v2 }
 0x197   : > { %v2077_v1 = vadd.f32 %v2076_v41, %v2048_v56  ;;  %v1933_v17 = vadd.f32 %v1932_v6, %v1931_v22  ;;  %v1904_v33 = vmul.f32 %v1859_v52, %v1840_v45  ;;  %v1905_v32 = vmul.f32 %v1860_v14, %v1841_v50  ;;  %v1972_v41 = vld [vmem:[%s4026_s27 + $0x7ec] sm:$0x11] }
 0x198   : > { %v1936_v48 = vsel %vm334_vm2, %v1900_v43, 0.0  ;;  %v1991_v49 = vunpack.c.l.bf16 %v1967_v16  ;;  %v1906_v9 = vmul.f32 %v1861_v44, %v1842_v58  ;;  %v1992_v56 = vunpack.c.h.bf16 %v1967_v16 }
 0x199   : > { %v2078_v26 = vadd.f32 %v2077_v1, %v2049_v13  ;;  %v1935_v21 = vadd.f32 %v1934_v38, %v1933_v17  ;;  %v1907_v7 = vmul.f32 %v1862_v54, %v1843_v40  ;;  %v1908_v12 = vmul.f32 %v1863_v62, %v1844_v46 }
 0x19a   : > { %v1938_v52 = vsel %vm334_vm2, %v1901_v4, 0.0  ;;  %v1993_v25 = vunpack.c.l.bf16 %v1968_v57  ;;  %v2053_v13 = vmul.f32 %v2008_v15, %v1989_v18  ;;  %v2054_v44 = vmul.f32 %v2009_v8, %v1990_v20 }
 0x19b   : > { %v2079_v14 = vadd.f32 %v2078_v26, %v2050_v0  ;;  %v1937_v42 = vadd.f32 %v1936_v48, %v1935_v21  ;;  %v1940_v34 = vsel %vm334_vm2, %v1902_v11, 0.0  ;;  %v1942_v54 = vsel %vm334_vm2, %v1903_v5, 0.0  ;;  %v1973_v5 = vld [vmem:[%s4026_s27 + $0x7f4] sm:$0x1] }
 0x19c   : > { %v1944_v53 = vsel %vm334_vm2, %v1904_v33, 0.0  ;;  %v7117_v62 = vperm.slane %v5389_v10, 2  ;;  %v1994_v30 = vunpack.c.h.bf16 %v1968_v57  ;;  %v7118_v15 = vperm.slane %v5389_v10, 3 }
 0x19d   : > { %v2080_v0 = vadd.f32 %v2079_v14, %v5506_v61  ;;  %v1939_v51 = vadd.f32 %v1938_v52, %v1937_v42  ;;  %v1946_v8 = vsel %vm334_vm2, %v1905_v32, 0.0  ;;  %v1995_v50 = vunpack.c.l.bf16 %v1969_v39 }
 0x19e   : > { %v2055_v31 = vmul.f32 %v7117_v62, %v1991_v49  ;;  %v2056_v45 = vmul.f32 %v7118_v15, %v1992_v56  ;;  %v1996_v58 = vunpack.c.h.bf16 %v1969_v39  ;;  %v2057_v43 = vmul.f32 %v2012_v28, %v1993_v25 }
 0x19f   : > { %v2081_v6 = vadd.f32 %v2080_v0, %v2052_v47  ;;  %v1941_v2 = vadd.f32 %v1940_v34, %v1939_v51  ;;  %v2084_v61 = vsel %vm334_vm2, %v2053_v13, 0.0  ;;  %v2085_v40 = vsel %vm334_vm2, %v2054_v44, 0.0  ;;  %v5600_v13 = vld [vmem:[%s4036_s29 + $0xb4] sm:$0xff] }
 0x1a0   : > { %v1997_v46 = vunpack.c.l.bf16 %v1970_v23  ;;  %v1998_v22 = vunpack.c.h.bf16 %v1970_v23  ;;  %v2086_v16 = vadd.f32 %v2085_v40, %v2084_v61  ;;  %v2087_v4 = vsel %vm334_vm2, %v2055_v31, 0.0  ;;  %v2126_v34 = vld [vmem:[%s4026_s27 + $0x800] sm:$0x11]  ;;  %v2127_v31 = vld [vmem:[%s4026_s27 + $0x808] sm:$0x11] }
 0x1a1   : > { %2082 = vadd.xlane.f32.xlu1 %v2081_v6  ;;  %v1943_v11 = vadd.f32 %v1942_v54, %v1941_v2  ;;  %v1999_v38 = vunpack.c.l.bf16 %v1971_v37  ;;  %v2058_v1 = vmul.f32 %v2013_v36, %v1994_v30  ;;  %v2089_v28 = vsel %vm334_vm2, %v2056_v45, 0.0 }
 0x1a2   : > { %v1948_v47 = vsel %vm334_vm2, %v1906_v9, 0.0  ;;  %v2000_v17 = vunpack.c.h.bf16 %v1971_v37  ;;  %v2001_v57 = vunpack.c.l.bf16 %v1972_v41  ;;  %v2088_v18 = vadd.f32 %v2087_v4, %v2086_v16  ;;  %v2128_v37 = vld [vmem:[%s4026_s27 + $0x810] sm:$0x11] }
 0x1a3   : > { %v1945_v20 = vadd.f32 %v1944_v53, %v1943_v11  ;;  %v2002_v33 = vunpack.c.h.bf16 %v1972_v41  ;;  %v2059_v32 = vmul.f32 %v2014_v19, %v1995_v50  ;;  %v2091_v48 = vsel %vm334_vm2, %v2057_v43, 0.0  ;;  %v2129_v50 = vld [vmem:[%s4026_s27 + $0x818] sm:$0x11] }
 0x1a4   : > { %v2003_v49 = vunpack.c.l.bf16 %v1973_v5  ;;  %v2060_v26 = vmul.f32 %v2015_v55, %v1996_v58  ;;  %v2061_v36 = vmul.f32 %v2016_v24, %v1997_v46  ;;  %v2090_v9 = vadd.f32 %v2089_v28, %v2088_v18  ;;  %v2125_v24 = vld [vmem:[%s4026_s27 + $0x7f8] sm:$0x11]  ;;  %v2130_v46 = vld [vmem:[%s4026_s27 + $0x820] sm:$0x11] }
 0x1a5   : > { %v1947_v21 = vadd.f32 %v1946_v8, %v1945_v20  ;;  %v2062_v56 = vmul.f32 %v2017_v3, %v1998_v22  ;;  %v2063_v52 = vmul.f32 %v2018_v35, %v1999_v38  ;;  %v2093_v19 = vsel %vm334_vm2, %v2058_v1, 0.0  ;;  %v2131_v22 = vld [vmem:[%s4026_s27 + $0x828] sm:$0x11]  ;;  %v2132_v20 = vld [vmem:[%s4026_s27 + $0x830] sm:$0x1] }
 0x1a6   : > { %v1950_v25 = vsel %vm334_vm2, %v1907_v7, 0.0  ;;  %v1952_v10 = vsel %vm334_vm2, %v1908_v12, 0.0  ;;  %v2064_v55 = vmul.f32 %v2019_v59, %v2000_v17  ;;  %v2092_v14 = vadd.f32 %v2091_v48, %v2090_v9 }
 0x1a7   : > { %v1949_v42 = vadd.f32 %v1948_v47, %v1947_v21  ;;  %v2065_v3 = vmul.f32 %v2020_v63, %v2001_v57  ;;  %v2066_v35 = vmul.f32 %v2021_v60, %v2002_v33  ;;  %v2095_v39 = vsel %vm334_vm2, %v2059_v32, 0.0 }
 0x1a8   : > { %v2067_v7 = vmul.f32 %v2022_v29, %v2003_v49  ;;  %v2094_v12 = vadd.f32 %v2093_v19, %v2092_v14  ;;  %v2097_v59 = vsel %vm334_vm2, %v2060_v26, 0.0  ;;  %v2099_v44 = vsel %vm334_vm2, %v2061_v36, 0.0  ;;  %v5635_v36 = vld [vmem:[%s4036_s29 + $0xbc] sm:$0xff] }
 0x1a9   : > { %v1951_v54 = vadd.f32 %v1950_v25, %v1949_v42  ;;  %v2101_v63 = vsel %vm334_vm2, %v2062_v56, 0.0  ;;  %v2103_v60 = vsel %vm334_vm2, %v2063_v52, 0.0  ;;  %v2148_v53 = vunpack.c.l.bf16 %v2125_v24 }
 0x1aa   : > { %v2096_v62 = vadd.f32 %v2095_v39, %v2094_v12  ;;  %v2149_v0 = vunpack.c.h.bf16 %v2125_v24  ;;  %v2167_v27 = vperm.slane %v5600_v13, 0  ;;  %v2168_v29 = vperm.slane %v5600_v13, 1  ;;  %v2117_v12 = vld [vmem:[%s4026_s27 + $0x2d0] sm:$0xff] }
 0x1ab   : > { %v1953_v51 = vadd.f32 %v1952_v10, %v1951_v54  ;;  %v2105_v23 = vsel %vm334_vm2, %v2064_v55, 0.0  ;;  %v2150_v30 = vunpack.c.l.bf16 %v2126_v34  ;;  %v2169_v15 = vperm.slane %v5600_v13, 2 }
 0x1ac   : > { %v2098_v45 = vadd.f32 %v2097_v59, %v2096_v62  ;;  %v2107_v8 = vsel %vm334_vm2, %v2065_v3, 0.0  ;;  %v2151_v58 = vunpack.c.h.bf16 %v2126_v34  ;;  %v2170_v43 = vperm.slane %v5600_v13, 3 }
 0x1ad   : > { %1954 = vadd.xlane.f32.xlu0 %v1953_v51  ;;  %v2109_v6 = vsel %vm334_vm2, %v2066_v35, 0.0  ;;  %v2111_v2 = vsel %vm334_vm2, %v2067_v7, 0.0  ;;  %v2152_v41 = vunpack.c.l.bf16 %v2127_v31  ;;  %v2153_v61 = vunpack.c.h.bf16 %v2127_v31  ;;  %v2118_v31 = vld [vmem:[%s4026_s27 + $0x2d8] sm:$0xff] }
 0x1ae   : > { %v2100_v40 = vadd.f32 %v2099_v44, %v2098_v45  ;;  %v2171_v16 = vperm.slane %v5600_v13, 4  ;;  %v2212_v4 = vmul.f32 %v2167_v27, %v2148_v53  ;;  %v2213_v11 = vmul.f32 %v2168_v29, %v2149_v0 }
 0x1af   : > { %v2154_v5 = vunpack.c.l.bf16 %v2128_v37  ;;  %v2155_v38 = vunpack.c.h.bf16 %v2128_v37  ;;  %v2156_v1 = vunpack.c.l.bf16 %v2129_v50  ;;  %v2214_v28 = vmul.f32 %v2169_v15, %v2150_v30 }
 0x1b0   : > { %v2102_v47 = vadd.f32 %v2101_v63, %v2100_v40  ;;  %v2157_v17 = vunpack.c.h.bf16 %v2129_v50  ;;  %v2172_v57 = vperm.slane %v5600_v13, 5  ;;  %v2215_v18 = vmul.f32 %v2170_v43, %v2151_v58 }
 0x1b1   : > { %v2158_v33 = vunpack.c.l.bf16 %v2130_v46  ;;  %v2159_v32 = vunpack.c.h.bf16 %v2130_v46  ;;  %v2160_v48 = vunpack.c.l.bf16 %v2131_v22  ;;  %v2173_v49 = vperm.slane %v5600_v13, 6 }
 0x1b2   : > { %v2104_v26 = vadd.f32 %v2103_v60, %v2102_v47  ;;  %v2216_v9 = vmul.f32 %v2171_v16, %v2152_v41  ;;  %v2243_v21 = vsel %vm334_vm2, %v2212_v4, 0.0  ;;  %v2244_v56 = vsel %vm334_vm2, %v2213_v11, 0.0  ;;  %v2119_v11 = vld [vmem:[%s4026_s27 + $0x2e0] sm:$0xff] }
 0x1b3   : > { %v2161_v52 = vunpack.c.h.bf16 %v2131_v22  ;;  %v2174_v19 = vperm.slane %v5600_v13, 7  ;;  %v2245_v25 = vadd.f32 %v2244_v56, %v2243_v21  ;;  %v2246_v10 = vsel %vm334_vm2, %v2214_v28, 0.0  ;;  %v2122_v56 = vld [vmem:[%s4026_s27 + $0x2f8] sm:$0xff] }
 0x1b4   : > { %v2106_v55 = vadd.f32 %v2105_v23, %v2104_v26  ;;  %v2162_v14 = vunpack.c.l.bf16 %v2132_v20  ;;  %v2217_v24 = vmul.f32 %v2172_v57, %v2153_v61  ;;  %v2248_v42 = vsel %vm334_vm2, %v2215_v18, 0.0  ;;  %v2120_v18 = vld [vmem:[%s4026_s27 + $0x2e8] sm:$0xff]  ;;  %v2278_v13 = vld [vmem:[%s4026_s27 + $0x31c] sm:$0xff] }
 0x1b5   : > { %v2175_v3 = vperm.slane %v5635_v36, 0  ;;  %v2176_v35 = vperm.slane %v5635_v36, 1  ;;  %v2177_v39 = vperm.slane %v5635_v36, 2  ;;  %v2247_v7 = vadd.f32 %v2246_v10, %v2245_v25 }
 0x1b6   : > { %v2108_v59 = vadd.f32 %v2107_v8, %v2106_v55  ;;  %v2178_v44 = vperm.slane %v5635_v36, 3  ;;  %v2218_v34 = vmul.f32 %v2173_v49, %v2154_v5  ;;  %v2250_v54 = vsel %vm334_vm2, %v2216_v9, 0.0 }
 0x1b7   : > { %v2179_v63 = vperm.slane %v5635_v36, 4  ;;  %v2180_v60 = vperm.slane %v5635_v36, 5  ;;  %v2219_v53 = vmul.f32 %v2174_v19, %v2155_v38  ;;  %v2249_v62 = vadd.f32 %v2248_v42, %v2247_v7  ;;  %v2124_v42 = vld [vmem:[%s4026_s27 + $0x308] sm:$0xf] }
 0x1b8   : > { %v2110_v0 = vadd.f32 %v2109_v6, %v2108_v59  ;;  %v2252_v51 = vsel %vm334_vm2, %v2217_v24, 0.0  ;;  %v2133_v23 = vunpack.c.l.bf16 %v2117_v12  ;;  %v2134_v30 = vunpack.c.h.bf16 %v2117_v12 }
 0x1b9   : > { %v2181_v45 = vperm.slane %v5635_v36, 6  ;;  %v2220_v8 = vmul.f32 %v2175_v3, %v2156_v1  ;;  %v2221_v37 = vmul.f32 %v2176_v35, %v2157_v17  ;;  %v2251_v50 = vadd.f32 %v2250_v54, %v2249_v62 }
 0x1ba   : > { %v2112_v58 = vadd.f32 %v2111_v2, %v2110_v0  ;;  %v2222_v41 = vmul.f32 %v2177_v39, %v2158_v33  ;;  %v2254_v6 = vsel %vm334_vm2, %v2218_v34, 0.0  ;;  %v2135_v61 = vunpack.c.l.bf16 %v2118_v31 }
 0x1bb   : > { %v2223_v40 = vmul.f32 %v2178_v44, %v2159_v32  ;;  %v2224_v46 = vmul.f32 %v2179_v63, %v2160_v48  ;;  %v2225_v22 = vmul.f32 %v2180_v60, %v2161_v52  ;;  %v2253_v4 = vadd.f32 %v2252_v51, %v2251_v50  ;;  %v2121_v32 = vld [vmem:[%s4026_s27 + $0x2f0] sm:$0xff]  ;;  %v2123_v52 = vld [vmem:[%s4026_s27 + $0x300] sm:$0xff] }
 0x1bc   : > { %2113 = vadd.xlane.f32.xlu2 %v2112_v58  ;;  %v2256_v2 = vsel %vm334_vm2, %v2219_v53, 0.0  ;;  %v2136_v5 = vunpack.c.h.bf16 %v2118_v31  ;;  %v2197_v38 = vmul.f32 %v2167_v27, %v2133_v23  ;;  %v2198_v1 = vmul.f32 %v2168_v29, %v2134_v30  ;;  %v5706_v50 = vld [vmem:[%s4036_s29 + $0xc3] sm:$0xff] }
 0x1bd   : > { %v2226_v28 = vmul.f32 %v2181_v45, %v2162_v14  ;;  %v2255_v47 = vadd.f32 %v2254_v6, %v2253_v4  ;;  %v2258_v17 = vsel %vm334_vm2, %v2220_v8, 0.0  ;;  %v2260_v20 = vsel %vm334_vm2, %v2221_v37, 0.0 }
 0x1be   : > { %v2262_v33 = vsel %vm334_vm2, %v2222_v41, 0.0  ;;  %v2137_v48 = vunpack.c.l.bf16 %v2119_v11  ;;  %v2199_v27 = vmul.f32 %v2169_v15, %v2135_v61  ;;  %v2264_v29 = vsel %vm334_vm2, %v2223_v40, 0.0  ;;  %v2277_v40 = vld [vmem:[%s4026_s27 + $0x314] sm:$0xff] }
 0x1bf   : > { %v2257_v26 = vadd.f32 %v2256_v2, %v2255_v47  ;;  %v2266_v9 = vsel %vm334_vm2, %v2224_v46, 0.0  ;;  %v2268_v21 = vsel %vm334_vm2, %v2225_v22, 0.0  ;;  %v2138_v25 = vunpack.c.h.bf16 %v2119_v11 }
 0x1c0   : > { %v2139_v10 = vunpack.c.l.bf16 %v2120_v18  ;;  %v2200_v55 = vmul.f32 %v2170_v43, %v2136_v5  ;;  %v2227_v14 = vadd.f32 %v2198_v1, %v2197_v38  ;;  %v2140_v7 = vunpack.c.h.bf16 %v2120_v18  ;;  %v2276_v43 = vld [vmem:[%s4026_s27 + $0x30c] sm:$0xff]  ;;  %v2281_v18 = vld [vmem:[%s4026_s27 + $0x334] sm:$0xff] }
 0x1c1   : > { %v2259_v24 = vadd.f32 %v2258_v17, %v2257_v26  ;;  %v2141_v15 = vunpack.c.l.bf16 %v2121_v32  ;;  %v2142_v12 = vunpack.c.h.bf16 %v2121_v32  ;;  %v2143_v59 = vunpack.c.l.bf16 %v2122_v56  ;;  %v2280_v38 = vld [vmem:[%s4026_s27 + $0x32c] sm:$0xff] }
 0x1c2   : > { %v2144_v34 = vunpack.c.h.bf16 %v2122_v56  ;;  %v2201_v54 = vmul.f32 %v2171_v16, %v2137_v48  ;;  %v2228_v53 = vadd.f32 %v2227_v14, %v2199_v27  ;;  %v2270_v31 = vsel %vm334_vm2, %v2226_v28, 0.0 }
 0x1c3   : > { %v2261_v62 = vadd.f32 %v2260_v20, %v2259_v24  ;;  %v2145_v0 = vunpack.c.l.bf16 %v2123_v52  ;;  %v2146_v51 = vunpack.c.h.bf16 %v2123_v52  ;;  %v2147_v23 = vunpack.c.l.bf16 %v2124_v42 }
 0x1c4   : > { %v2202_v30 = vmul.f32 %v2172_v57, %v2138_v25  ;;  %v2203_v8 = vmul.f32 %v2173_v49, %v2139_v10  ;;  %v2229_v37 = vadd.f32 %v2228_v53, %v2200_v55  ;;  %v2204_v58 = vmul.f32 %v2174_v19, %v2140_v7  ;;  %v2279_v19 = vld [vmem:[%s4026_s27 + $0x324] sm:$0xff] }
 0x1c5   : > { %v2263_v16 = vadd.f32 %v2262_v33, %v2261_v62  ;;  %v2205_v41 = vmul.f32 %v2175_v3, %v2141_v15  ;;  %v2206_v6 = vmul.f32 %v2176_v35, %v2142_v12  ;;  %v2207_v61 = vmul.f32 %v2177_v39, %v2143_v59  ;;  %v5747_v25 = vld [vmem:[%s4036_s29 + $0xcb] sm:$0xff]  ;;  %v2283_v7 = vld [vmem:[%s4026_s27 + $0x344] sm:$0xf] }
 0x1c6   : > { %v5718_v57 = vmul.f32 %v2178_v44, %v2144_v34  ;;  %v2230_v49 = vadd.f32 %v2229_v37, %v2201_v54  ;;  %v2292_v46 = vunpack.c.l.bf16 %v2276_v43  ;;  %v2293_v4 = vunpack.c.h.bf16 %v2276_v43 }
 0x1c7   : > { %v2265_v22 = vadd.f32 %v2264_v29, %v2263_v16  ;;  %v2326_v3 = vperm.slane %v5706_v50, 0  ;;  %v2327_v35 = vperm.slane %v5706_v50, 1  ;;  %v5727_v39 = vmul.f32 %v2179_v63, %v2145_v0 }
 0x1c8   : > { %v5731_v44 = vmul.f32 %v2180_v60, %v2146_v51  ;;  %v5735_v11 = vmul.f32 %v2181_v45, %v2147_v23  ;;  %v2231_v2 = vadd.f32 %v2230_v49, %v2202_v30  ;;  %v2294_v1 = vunpack.c.l.bf16 %v2277_v40  ;;  %v2282_v60 = vld [vmem:[%s4026_s27 + $0x33c] sm:$0xff] }
 0x1c9   : > { %v2267_v5 = vadd.f32 %v2266_v9, %v2265_v22  ;;  %v2295_v28 = vunpack.c.h.bf16 %v2277_v40  ;;  %v2328_v47 = vperm.slane %v5706_v50, 2  ;;  %v2296_v63 = vunpack.c.l.bf16 %v2278_v13 }
 0x1ca   : > { %v2232_v17 = vadd.f32 %v2231_v2, %v2203_v8  ;;  %v2297_v20 = vunpack.c.h.bf16 %v2278_v13  ;;  %v2298_v33 = vunpack.c.l.bf16 %v2279_v19  ;;  %v2329_v48 = vperm.slane %v5706_v50, 3 }
 0x1cb   : > { %v2269_v32 = vadd.f32 %v2268_v21, %v2267_v5  ;;  %v2356_v36 = vmul.f32 %v2326_v3, %v2292_v46  ;;  %v2357_v45 = vmul.f32 %v2327_v35, %v2293_v4  ;;  %v2299_v26 = vunpack.c.h.bf16 %v2279_v19  ;;  %v5773_v46 = vld [vmem:[%s4036_s29 + $0xd2] sm:$0xff] }
 0x1cc   : > { %v2233_v27 = vadd.f32 %v2232_v17, %v2204_v58  ;;  %v2300_v29 = vunpack.c.l.bf16 %v2280_v38  ;;  %v2301_v9 = vunpack.c.h.bf16 %v2280_v38  ;;  %v2302_v52 = vunpack.c.l.bf16 %v2281_v18  ;;  %v2435_v58 = vld [vmem:[%s4026_s27 + $0x348] sm:$0xff]  ;;  %v2436_v38 = vld [vmem:[%s4026_s27 + $0x350] sm:$0xff]  ;;  %v5792_v17 = vld [vmem:[%s4026_s27 + $0x360] sm:$0xff] }
 0x1cd   : > { %v2271_v56 = vadd.f32 %v2270_v31, %v2269_v32  ;;  %v2330_v21 = vperm.slane %v5706_v50, 4  ;;  %v2358_v10 = vmul.f32 %v2328_v47, %v2294_v1  ;;  %v2303_v14 = vunpack.c.h.bf16 %v2281_v18 }
 0x1ce   : > { %v2234_v55 = vadd.f32 %v2233_v27, %v2205_v41  ;;  %v2304_v24 = vunpack.c.l.bf16 %v2282_v60  ;;  %v2305_v42 = vunpack.c.h.bf16 %v2282_v60  ;;  %v2331_v15 = vperm.slane %v5706_v50, 5 }
 0x1cf   : > { %2272 = vadd.xlane.f32.xlu1 %v2271_v56  ;;  %v2332_v12 = vperm.slane %v5706_v50, 6  ;;  %v2359_v59 = vmul.f32 %v2329_v48, %v2295_v28  ;;  %v2386_v34 = vadd.f32 %v2357_v45, %v2356_v36  ;;  %v2333_v53 = vperm.slane %v5706_v50, 7  ;;  %v2437_v28 = vld [vmem:[%s4026_s27 + $0x358] sm:$0xff]  ;;  %v5810_v45 = vld [vmem:[%s4026_s27 + $0x368] sm:$0xff]  ;;  %v5814_v56 = vld [vmem:[%s4026_s27 + $0x370] sm:$0xff] }
 0x1d0   : > { %v2235_v54 = vadd.f32 %v2234_v55, %v2206_v6  ;;  %v2334_v62 = vperm.slane %v5747_v25, 0  ;;  %v2335_v31 = vperm.slane %v5747_v25, 1  ;;  %v2336_v0 = vperm.slane %v5747_v25, 2 }
 0x1d1   : > { %v2337_v51 = vperm.slane %v5747_v25, 3  ;;  %v2360_v43 = vmul.f32 %v2330_v21, %v2296_v63  ;;  %v2387_v23 = vadd.f32 %v2386_v34, %v2358_v10  ;;  %v2306_v8 = vunpack.c.l.bf16 %v2283_v7 }
 0x1d2   : > { %v2236_v30 = vadd.f32 %v2235_v54, %v2207_v61  ;;  %v2338_v37 = vperm.slane %v5747_v25, 4  ;;  %v2339_v16 = vperm.slane %v5747_v25, 5  ;;  %v2340_v41 = vperm.slane %v5747_v25, 6  ;;  %v2448_v25 = vld [vmem:[%s4026_s27 + $0x898] sm:$0x11] }
 0x1d3   : > { %v2361_v6 = vmul.f32 %v2331_v15, %v2297_v20  ;;  %v2362_v49 = vmul.f32 %v2332_v12, %v2298_v33  ;;  %v2388_v40 = vadd.f32 %v2387_v23, %v2359_v59  ;;  %v2363_v22 = vmul.f32 %v2333_v53, %v2299_v26 }
 0x1d4   : > { %v2237_v61 = vadd.f32 %v2236_v30, %v5718_v57  ;;  %v2364_v13 = vmul.f32 %v2334_v62, %v2300_v29  ;;  %v2365_v19 = vmul.f32 %v2335_v31, %v2301_v9  ;;  %v2366_v4 = vmul.f32 %v2336_v0, %v2302_v52 }
 0x1d5   : > { %v5786_v2 = vmul.f32 %v2337_v51, %v2303_v14  ;;  %v2389_v5 = vadd.f32 %v2388_v40, %v2360_v43  ;;  %v2451_v57 = vunpack.c.l.bf16 %v2435_v58  ;;  %v2452_v18 = vunpack.c.h.bf16 %v2435_v58 }
 0x1d6   : > { %v2238_v1 = vadd.f32 %v2237_v61, %v5727_v39  ;;  %v2485_v63 = vperm.slane %v5773_v46, 0  ;;  %v2486_v20 = vperm.slane %v5773_v46, 1  ;;  %v5798_v33 = vmul.f32 %v2338_v37, %v2304_v24  ;;  %v5819_v24 = vld [vmem:[%s4026_s27 + $0x378] sm:$0xff] }
 0x1d7   : > { %v5802_v32 = vmul.f32 %v2339_v16, %v2305_v42  ;;  %v5806_v39 = vmul.f32 %v2340_v41, %v2306_v8  ;;  %v2390_v60 = vadd.f32 %v2389_v5, %v2361_v6  ;;  %v2453_v27 = vunpack.c.l.bf16 %v2436_v38  ;;  %v5822_v42 = vld [vmem:[%s4026_s27 + $0x380] sm:$0xf]  ;;  %v2284_v5 = vld [vmem:[%s4026_s27 + $0x834] sm:$0x11] }
 0x1d8   : > { %v2239_v36 = vadd.f32 %v2238_v1, %v5731_v44  ;;  %v2454_v26 = vunpack.c.h.bf16 %v2436_v38  ;;  %v2487_v29 = vperm.slane %v5773_v46, 2  ;;  %v2455_v52 = vunpack.c.l.bf16 %v2437_v28  ;;  %v5835_v8 = vld [vmem:[%s4036_s29 + $0xda] sm:$0xff] }
 0x1d9   : > { %v2391_v9 = vadd.f32 %v2390_v60, %v2362_v49  ;;  %v2456_v10 = vunpack.c.h.bf16 %v2437_v28  ;;  %v2457_v55 = vunpack.c.l.bf16 %v5792_v17  ;;  %v7010_v44 = vperm.slane %v5773_v46, 3 }
 0x1da   : > { %v2240_v14 = vadd.f32 %v2239_v36, %v5735_v11  ;;  %v2515_v7 = vmul.f32 %v2485_v63, %v2451_v57  ;;  %v2516_v59 = vmul.f32 %v2486_v20, %v2452_v18  ;;  %v2458_v54 = vunpack.c.h.bf16 %v5792_v17  ;;  %v2285_v17 = vld [vmem:[%s4026_s27 + $0x83c] sm:$0x11] }
 0x1db   : > { %v2392_v34 = vadd.f32 %v2391_v9, %v2363_v22  ;;  %v2459_v43 = vunpack.c.l.bf16 %v5810_v45  ;;  %v2460_v11 = vunpack.c.h.bf16 %v5810_v45  ;;  %v2461_v23 = vunpack.c.l.bf16 %v5814_v56 }
 0x1dc   : > { %2241 = vadd.xlane.f32.xlu0 %v2240_v14  ;;  %v2462_v30 = vunpack.c.h.bf16 %v5814_v56  ;;  %v7009_v58 = vperm.slane %v5773_v46, 4  ;;  %v2517_v6 = vmul.f32 %v2487_v29, %v2453_v27  ;;  %v2463_v40 = vunpack.c.l.bf16 %v5819_v24 }
 0x1dd   : > { %v2393_v49 = vadd.f32 %v2392_v34, %v2364_v13  ;;  %v2464_v61 = vunpack.c.h.bf16 %v5819_v24  ;;  %v2465_v22 = vunpack.c.l.bf16 %v5822_v42  ;;  %v2490_v38 = vperm.slane %v5773_v46, 5  ;;  %v2286_v42 = vld [vmem:[%s4026_s27 + $0x844] sm:$0x11] }
 0x1de   : > { %v2491_v57 = vperm.slane %v5773_v46, 6  ;;  %v2518_v1 = vmul.f32 %v7010_v44, %v2454_v26  ;;  %v2545_v28 = vadd.f32 %v2516_v59, %v2515_v7  ;;  %v2492_v13 = vperm.slane %v5773_v46, 7 }
 0x1df   : > { %v2394_v18 = vadd.f32 %v2393_v49, %v2365_v19  ;;  %v2493_v60 = vperm.slane %v5835_v8, 0  ;;  %v2494_v36 = vperm.slane %v5835_v8, 1  ;;  %v2519_v45 = vmul.f32 %v7009_v58, %v2455_v52 }
 0x1e0   : > { %v2546_v27 = vadd.f32 %v2545_v28, %v2517_v6  ;;  %v2307_v9 = vunpack.c.l.bf16 %v2284_v5  ;;  %v2308_v56 = vunpack.c.h.bf16 %v2284_v5  ;;  %v2495_v24 = vperm.slane %v5835_v8, 2 }
 0x1e1   : > { %v2395_v14 = vadd.f32 %v2394_v18, %v2366_v4  ;;  %v2496_v26 = vperm.slane %v5835_v8, 3  ;;  %v2309_v19 = vunpack.c.l.bf16 %v2285_v17  ;;  %v2497_v7 = vperm.slane %v5835_v8, 4  ;;  %v2287_v18 = vld [vmem:[%s4026_s27 + $0x84c] sm:$0x11] }
 0x1e2   : > { %v2520_v59 = vmul.f32 %v2490_v38, %v2456_v10  ;;  %v2547_v34 = vadd.f32 %v2546_v27, %v2518_v1  ;;  %v2310_v49 = vunpack.c.h.bf16 %v2285_v17  ;;  %v2498_v6 = vperm.slane %v5835_v8, 5 }
 0x1e3   : > { %v2396_v52 = vadd.f32 %v2395_v14, %v5786_v2  ;;  %v2499_v5 = vperm.slane %v5835_v8, 6  ;;  %v2521_v4 = vmul.f32 %v2491_v57, %v2457_v55  ;;  %v2311_v58 = vunpack.c.l.bf16 %v2286_v42  ;;  %v2604_v8 = vld [vmem:[%s4026_s27 + $0x8bc] sm:$0x11] }
 0x1e4   : > { %v2548_v28 = vadd.f32 %v2547_v34, %v2519_v45  ;;  %v2371_v44 = vmul.f32 %v2326_v3, %v2307_v9  ;;  %v2372_v10 = vmul.f32 %v2327_v35, %v2308_v56  ;;  %v2522_v2 = vmul.f32 %v2492_v13, %v2458_v54  ;;  %v2288_v9 = vld [vmem:[%s4026_s27 + $0x854] sm:$0x11]  ;;  %v2290_v34 = vld [vmem:[%s4026_s27 + $0x864] sm:$0x11] }
 0x1e5   : > { %v2397_v1 = vadd.f32 %v2396_v52, %v5798_v33  ;;  %v2523_v17 = vmul.f32 %v2493_v60, %v2459_v43  ;;  %v2373_v55 = vmul.f32 %v2328_v47, %v2309_v19  ;;  %v2524_v45 = vmul.f32 %v2494_v36, %v2460_v11 }
 0x1e6   : > { %v2549_v27 = vadd.f32 %v2548_v28, %v2520_v59  ;;  %v2312_v14 = vunpack.c.h.bf16 %v2286_v42  ;;  %v2374_v3 = vmul.f32 %v2329_v48, %v2310_v49  ;;  %v2525_v33 = vmul.f32 %v2495_v24, %v2461_v23  ;;  %v2289_v59 = vld [vmem:[%s4026_s27 + $0x85c] sm:$0x11]  ;;  %v2291_v28 = vld [vmem:[%s4026_s27 + $0x86c] sm:$0x1] }
 0x1e7   : > { %v2398_v35 = vadd.f32 %v2397_v1, %v5802_v32  ;;  %v2526_v54 = vmul.f32 %v2496_v26, %v2462_v30  ;;  %v2313_v43 = vunpack.c.l.bf16 %v2287_v18  ;;  %v2375_v11 = vmul.f32 %v2330_v21, %v2311_v58  ;;  %v2443_v1 = vld [vmem:[%s4026_s27 + $0x870] sm:$0x11] }
 0x1e8   : > { %v2550_v47 = vadd.f32 %v2549_v27, %v2521_v4  ;;  %v2402_v56 = vsel %vm334_vm2, %v2371_v44, 0.0  ;;  %v2403_v42 = vsel %vm334_vm2, %v2372_v10, 0.0  ;;  %v2527_v32 = vmul.f32 %v2497_v7, %v2463_v40 }
 0x1e9   : > { %v2399_v48 = vadd.f32 %v2398_v35, %v5806_v39  ;;  %v2404_v23 = vadd.f32 %v2403_v42, %v2402_v56  ;;  %v2405_v19 = vsel %vm334_vm2, %v2373_v55, 0.0  ;;  %v2314_v49 = vunpack.c.h.bf16 %v2287_v18 }
 0x1ea   : > { %v2551_v30 = vadd.f32 %v2550_v47, %v2522_v2  ;;  %v2376_v21 = vmul.f32 %v2331_v15, %v2312_v14  ;;  %v2407_v44 = vsel %vm334_vm2, %v2374_v3, 0.0  ;;  %v2528_v39 = vmul.f32 %v2498_v6, %v2464_v61  ;;  %v2444_v3 = vld [vmem:[%s4026_s27 + $0x878] sm:$0x11] }
 0x1eb   : > { %2400 = vadd.xlane.f32.xlu2 %v2399_v48  ;;  %v2529_v58 = vmul.f32 %v2499_v5, %v2465_v22  ;;  %v2315_v40 = vunpack.c.l.bf16 %v2288_v9  ;;  %v2406_v52 = vadd.f32 %v2405_v19, %v2404_v23  ;;  %v2316_v10 = vunpack.c.h.bf16 %v2288_v9  ;;  %v2445_v19 = vld [vmem:[%s4026_s27 + $0x880] sm:$0x11] }
 0x1ec   : > { %v2552_v4 = vadd.f32 %v2551_v30, %v2523_v17  ;;  %v2377_v18 = vmul.f32 %v2332_v12, %v2313_v43  ;;  %v2409_v15 = vsel %vm334_vm2, %v2375_v11, 0.0  ;;  %v2317_v2 = vunpack.c.l.bf16 %v2289_v59 }
 0x1ed   : > { %v2318_v55 = vunpack.c.h.bf16 %v2289_v59  ;;  %v2319_v27 = vunpack.c.l.bf16 %v2290_v34  ;;  %v2408_v14 = vadd.f32 %v2407_v44, %v2406_v52  ;;  %v2320_v35 = vunpack.c.h.bf16 %v2290_v34 }
 0x1ee   : > { %v2553_v61 = vadd.f32 %v2552_v4, %v2524_v45  ;;  %v2378_v22 = vmul.f32 %v2333_v53, %v2314_v49  ;;  %v2411_v17 = vsel %vm334_vm2, %v2376_v21, 0.0  ;;  %v2321_v47 = vunpack.c.l.bf16 %v2291_v28  ;;  %v2446_v21 = vld [vmem:[%s4026_s27 + $0x888] sm:$0x11]  ;;  %v2447_v28 = vld [vmem:[%s4026_s27 + $0x890] sm:$0x11] }
 0x1ef   : > { %v2379_v12 = vmul.f32 %v2334_v62, %v2315_v40  ;;  %v2410_v43 = vadd.f32 %v2409_v15, %v2408_v14  ;;  %v2466_v9 = vunpack.c.l.bf16 %v2443_v1  ;;  %v2413_v56 = vsel %vm334_vm2, %v2377_v18, 0.0 }
 0x1f0   : > { %v2554_v11 = vadd.f32 %v2553_v61, %v2525_v33  ;;  %v2467_v42 = vunpack.c.h.bf16 %v2443_v1  ;;  %v2468_v48 = vunpack.c.l.bf16 %v2444_v3  ;;  %v2380_v45 = vmul.f32 %v2335_v31, %v2316_v10 }
 0x1f1   : > { %v2381_v50 = vmul.f32 %v2336_v0, %v2317_v2  ;;  %v2382_v53 = vmul.f32 %v2337_v51, %v2318_v55  ;;  %v2412_v23 = vadd.f32 %v2411_v17, %v2410_v43  ;;  %v2383_v33 = vmul.f32 %v2338_v37, %v2319_v27  ;;  %v2449_v55 = vld [vmem:[%s4026_s27 + $0x8a0] sm:$0x11] }
 0x1f2   : > { %v2555_v62 = vadd.f32 %v2554_v11, %v2526_v54  ;;  %v2415_v30 = vsel %vm334_vm2, %v2378_v22, 0.0  ;;  %v2469_v59 = vunpack.c.h.bf16 %v2444_v3  ;;  %v2384_v34 = vmul.f32 %v2339_v16, %v2320_v35  ;;  %v2450_v35 = vld [vmem:[%s4026_s27 + $0x8a8] sm:$0x1] }
 0x1f3   : > { %v2414_v31 = vadd.f32 %v2413_v56, %v2412_v23  ;;  %v2417_v49 = vsel %vm334_vm2, %v2379_v12, 0.0  ;;  %v2530_v0 = vmul.f32 %v2485_v63, %v2466_v9  ;;  %v2470_v54 = vunpack.c.l.bf16 %v2445_v19 }
 0x1f4   : > { %v2556_v51 = vadd.f32 %v2555_v62, %v2527_v32  ;;  %v2531_v37 = vmul.f32 %v2486_v20, %v2467_v42  ;;  %v2532_v44 = vmul.f32 %v2487_v29, %v2468_v48  ;;  %v2385_v16 = vmul.f32 %v2340_v41, %v2321_v47 }
 0x1f5   : > { %v2416_v40 = vadd.f32 %v2415_v30, %v2414_v31  ;;  %v2419_v52 = vsel %vm334_vm2, %v2380_v45, 0.0  ;;  %v2421_v4 = vsel %vm334_vm2, %v2381_v50, 0.0  ;;  %v2423_v32 = vsel %vm334_vm2, %v2382_v53, 0.0 }
 0x1f6   : > { %v2557_v63 = vadd.f32 %v2556_v51, %v2528_v39  ;;  %v2471_v10 = vunpack.c.h.bf16 %v2445_v19  ;;  %v7119_v20 = vperm.slane %v5773_v46, 3  ;;  %v2425_v29 = vsel %vm334_vm2, %v2383_v33, 0.0  ;;  %v2602_v51 = vld [vmem:[%s4026_s27 + $0x8ac] sm:$0x11] }
 0x1f7   : > { %v2418_v15 = vadd.f32 %v2417_v49, %v2416_v40  ;;  %v2472_v1 = vunpack.c.l.bf16 %v2446_v21  ;;  %v2561_v41 = vsel %vm334_vm2, %v2530_v0, 0.0  ;;  %v7120_v27 = vperm.slane %v5773_v46, 4 }
 0x1f8   : > { %v2533_v18 = vmul.f32 %v7119_v20, %v2469_v59  ;;  %v2558_v2 = vadd.f32 %v2557_v63, %v2529_v58  ;;  %v2562_v14 = vsel %vm334_vm2, %v2531_v37, 0.0  ;;  %v2564_v3 = vsel %vm334_vm2, %v2532_v44, 0.0 }
 0x1f9   : > { %v2534_v39 = vmul.f32 %v7120_v27, %v2470_v54  ;;  %v2420_v61 = vadd.f32 %v2419_v52, %v2418_v15  ;;  %v2473_v22 = vunpack.c.h.bf16 %v2446_v21  ;;  %v2474_v17 = vunpack.c.l.bf16 %v2447_v28  ;;  %v5975_v21 = vld [vmem:[%s4036_s29 + $0xe1] sm:$0xff] }
 0x1fa   : > { %v2563_v47 = vadd.f32 %v2562_v14, %v2561_v41  ;;  %2559 = vadd.xlane.f32.xlu1 %v2558_v2  ;;  %v2475_v12 = vunpack.c.h.bf16 %v2447_v28  ;;  %v2476_v43 = vunpack.c.l.bf16 %v2448_v25  ;;  %v2535_v9 = vmul.f32 %v2490_v38, %v2471_v10  ;;  %v2607_v27 = vld [vmem:[%s4026_s27 + $0x8d4] sm:$0x11] }
 0x1fb   : > { %v2566_v58 = vsel %vm334_vm2, %v2533_v18, 0.0  ;;  %v2422_v11 = vadd.f32 %v2421_v4, %v2420_v61  ;;  %v2477_v56 = vunpack.c.h.bf16 %v2448_v25  ;;  %v2478_v42 = vunpack.c.l.bf16 %v2449_v55  ;;  %v2605_v25 = vld [vmem:[%s4026_s27 + $0x8c4] sm:$0x11] }
 0x1fc   : > { %v2565_v48 = vadd.f32 %v2564_v3, %v2563_v47  ;;  %v2479_v45 = vunpack.c.h.bf16 %v2449_v55  ;;  %v2480_v50 = vunpack.c.l.bf16 %v2450_v35  ;;  %v2536_v53 = vmul.f32 %v2491_v57, %v2472_v1  ;;  %v2606_v1 = vld [vmem:[%s4026_s27 + $0x8cc] sm:$0x11]  ;;  %v2608_v35 = vld [vmem:[%s4026_s27 + $0x8dc] sm:$0x11] }
 0x1fd   : > { %v2568_v23 = vsel %vm334_vm2, %v2534_v39, 0.0  ;;  %v2424_v19 = vadd.f32 %v2423_v32, %v2422_v11  ;;  %v2537_v38 = vmul.f32 %v2492_v13, %v2473_v22  ;;  %v2538_v62 = vmul.f32 %v2493_v60, %v2474_v17  ;;  %v2603_v60 = vld [vmem:[%s4026_s27 + $0x8b4] sm:$0x11] }
 0x1fe   : > { %v2567_v33 = vadd.f32 %v2566_v58, %v2565_v48  ;;  %v2427_v30 = vsel %vm334_vm2, %v2384_v34, 0.0  ;;  %v2429_v59 = vsel %vm334_vm2, %v2385_v16, 0.0  ;;  %v2539_v31 = vmul.f32 %v2494_v36, %v2475_v12 }
 0x1ff   : > { %v2570_v57 = vsel %vm334_vm2, %v2535_v9, 0.0  ;;  %v2426_v49 = vadd.f32 %v2425_v29, %v2424_v19  ;;  %v2540_v0 = vmul.f32 %v2495_v24, %v2476_v43  ;;  %v2541_v46 = vmul.f32 %v2496_v26, %v2477_v56  ;;  %v2609_v56 = vld [vmem:[%s4026_s27 + $0x8e4] sm:$0x1] }
 0x200   : > { %v2569_v13 = vadd.f32 %v2568_v23, %v2567_v33  ;;  %v2542_v34 = vmul.f32 %v2497_v7, %v2478_v42  ;;  %v2543_v36 = vmul.f32 %v2498_v6, %v2479_v45  ;;  %v2544_v54 = vmul.f32 %v2499_v5, %v2480_v50  ;;  %v6013_v23 = vld [vmem:[%s4036_s29 + $0xe9] sm:$0xff] }
 0x201   : > { %v2572_v24 = vsel %vm334_vm2, %v2536_v53, 0.0  ;;  %v2428_v37 = vadd.f32 %v2427_v30, %v2426_v49  ;;  %v2574_v26 = vsel %vm334_vm2, %v2537_v38, 0.0  ;;  %v2576_v16 = vsel %vm334_vm2, %v2538_v62, 0.0 }
 0x202   : > { %v2571_v44 = vadd.f32 %v2570_v57, %v2569_v13  ;;  %v2625_v40 = vunpack.c.l.bf16 %v2602_v51  ;;  %v2626_v52 = vunpack.c.h.bf16 %v2602_v51  ;;  %v2627_v4 = vunpack.c.l.bf16 %v2603_v60 }
 0x203   : > { %v2644_v7 = vperm.slane %v5975_v21, 0  ;;  %v2430_v63 = vadd.f32 %v2429_v59, %v2428_v37  ;;  %v2645_v5 = vperm.slane %v5975_v21, 1  ;;  %v2646_v32 = vperm.slane %v5975_v21, 2  ;;  %v2594_v37 = vld [vmem:[%s4026_s27 + $0x384] sm:$0xff] }
 0x204   : > { %v2573_v6 = vadd.f32 %v2572_v24, %v2571_v44  ;;  %v2578_v28 = vsel %vm334_vm2, %v2539_v31, 0.0  ;;  %v2580_v10 = vsel %vm334_vm2, %v2540_v0, 0.0  ;;  %v2582_v20 = vsel %vm334_vm2, %v2541_v46, 0.0 }
 0x205   : > { %v2584_v18 = vsel %vm334_vm2, %v2542_v34, 0.0  ;;  %2431 = vadd.xlane.f32.xlu0 %v2430_v63  ;;  %v2586_v29 = vsel %vm334_vm2, %v2543_v36, 0.0  ;;  %v2628_v41 = vunpack.c.h.bf16 %v2603_v60  ;;  %v2647_v2 = vperm.slane %v5975_v21, 3 }
 0x206   : > { %v2575_v15 = vadd.f32 %v2574_v26, %v2573_v6  ;;  %v2588_v55 = vsel %vm334_vm2, %v2544_v54, 0.0  ;;  %v2629_v39 = vunpack.c.l.bf16 %v2604_v8  ;;  %v2630_v14 = vunpack.c.h.bf16 %v2604_v8  ;;  %v2595_v8 = vld [vmem:[%s4026_s27 + $0x38c] sm:$0xff] }
 0x207   : > { %v2689_v3 = vmul.f32 %v2644_v7, %v2625_v40  ;;  %v2648_v22 = vperm.slane %v5975_v21, 4  ;;  %v2690_v17 = vmul.f32 %v2645_v5, %v2626_v52  ;;  %v2691_v47 = vmul.f32 %v2646_v32, %v2627_v4 }
 0x208   : > { %v2577_v61 = vadd.f32 %v2576_v16, %v2575_v15  ;;  %v2631_v12 = vunpack.c.l.bf16 %v2605_v25  ;;  %v2632_v43 = vunpack.c.h.bf16 %v2605_v25  ;;  %v2633_v9 = vunpack.c.l.bf16 %v2606_v1 }
 0x209   : > { %v2634_v58 = vunpack.c.h.bf16 %v2606_v1  ;;  %v2635_v42 = vunpack.c.l.bf16 %v2607_v27  ;;  %v2649_v48 = vperm.slane %v5975_v21, 5  ;;  %v2692_v45 = vmul.f32 %v2647_v2, %v2628_v41 }
 0x20a   : > { %v2579_v11 = vadd.f32 %v2578_v28, %v2577_v61  ;;  %v2636_v50 = vunpack.c.h.bf16 %v2607_v27  ;;  %v2637_v53 = vunpack.c.l.bf16 %v2608_v35  ;;  %v2650_v19 = vperm.slane %v5975_v21, 6 }
 0x20b   : > { %v2720_v38 = vsel %vm334_vm2, %v2689_v3, 0.0  ;;  %v2693_v33 = vmul.f32 %v2648_v22, %v2629_v39  ;;  %v2721_v30 = vsel %vm334_vm2, %v2690_v17, 0.0  ;;  %v2723_v59 = vsel %vm334_vm2, %v2691_v47, 0.0  ;;  %v2596_v17 = vld [vmem:[%s4026_s27 + $0x394] sm:$0xff] }
 0x20c   : > { %v2581_v62 = vadd.f32 %v2580_v10, %v2579_v11  ;;  %v2638_v31 = vunpack.c.h.bf16 %v2608_v35  ;;  %v2639_v57 = vunpack.c.l.bf16 %v2609_v56  ;;  %v2651_v49 = vperm.slane %v5975_v21, 7 }
 0x20d   : > { %v2722_v0 = vadd.f32 %v2721_v30, %v2720_v38  ;;  %v2652_v13 = vperm.slane %v6013_v23, 0  ;;  %v2694_v51 = vmul.f32 %v2649_v48, %v2630_v14  ;;  %v2725_v60 = vsel %vm334_vm2, %v2692_v45, 0.0 }
 0x20e   : > { %v2583_v46 = vadd.f32 %v2582_v20, %v2581_v62  ;;  %v2653_v34 = vperm.slane %v6013_v23, 1  ;;  %v2654_v36 = vperm.slane %v6013_v23, 2  ;;  %v2655_v54 = vperm.slane %v6013_v23, 3 }
 0x20f   : > { %v2724_v24 = vadd.f32 %v2723_v59, %v2722_v0  ;;  %v2656_v26 = vperm.slane %v6013_v23, 4  ;;  %v2695_v16 = vmul.f32 %v2650_v19, %v2631_v12  ;;  %v2727_v40 = vsel %vm334_vm2, %v2693_v33, 0.0  ;;  %v2600_v59 = vld [vmem:[%s4026_s27 + $0x3b4] sm:$0xff] }
 0x210   : > { %v2585_v44 = vadd.f32 %v2584_v18, %v2583_v46  ;;  %v2657_v52 = vperm.slane %v6013_v23, 5  ;;  %v2658_v4 = vperm.slane %v6013_v23, 6  ;;  %v2696_v63 = vmul.f32 %v2651_v49, %v2632_v43  ;;  %v2759_v23 = vld [vmem:[%s4026_s27 + $0x3f0] sm:$0xff] }
 0x211   : > { %v2726_v6 = vadd.f32 %v2725_v60, %v2724_v24  ;;  %v2729_v10 = vsel %vm334_vm2, %v2694_v51, 0.0  ;;  %v2610_v20 = vunpack.c.l.bf16 %v2594_v37  ;;  %v2611_v18 = vunpack.c.h.bf16 %v2594_v37 }
 0x212   : > { %v2587_v28 = vadd.f32 %v2586_v29, %v2585_v44  ;;  %v2697_v15 = vmul.f32 %v2652_v13, %v2633_v9  ;;  %v2698_v25 = vmul.f32 %v2653_v34, %v2634_v58  ;;  %v2699_v1 = vmul.f32 %v2654_v36, %v2635_v42  ;;  %v2597_v42 = vld [vmem:[%s4026_s27 + $0x39c] sm:$0xff] }
 0x213   : > { %v2728_v41 = vadd.f32 %v2727_v40, %v2726_v6  ;;  %v2700_v39 = vmul.f32 %v2655_v54, %v2636_v50  ;;  %v2731_v29 = vsel %vm334_vm2, %v2695_v16, 0.0  ;;  %v2612_v14 = vunpack.c.l.bf16 %v2595_v8 }
 0x214   : > { %v2589_v27 = vadd.f32 %v2588_v55, %v2587_v28  ;;  %v2701_v3 = vmul.f32 %v2656_v26, %v2637_v53  ;;  %v2702_v61 = vmul.f32 %v2657_v52, %v2638_v31  ;;  %v2733_v55 = vsel %vm334_vm2, %v2696_v63, 0.0  ;;  %v2598_v53 = vld [vmem:[%s4026_s27 + $0x3a4] sm:$0xff] }
 0x215   : > { %v2730_v35 = vadd.f32 %v2729_v10, %v2728_v41  ;;  %v2613_v47 = vunpack.c.h.bf16 %v2595_v8  ;;  %v2674_v12 = vmul.f32 %v2644_v7, %v2610_v20  ;;  %v2675_v43 = vmul.f32 %v2645_v5, %v2611_v18  ;;  %v2599_v7 = vld [vmem:[%s4026_s27 + $0x3ac] sm:$0xff] }
 0x216   : > { %2590 = vadd.xlane.f32.xlu2 %v2589_v27  ;;  %v2703_v9 = vmul.f32 %v2658_v4, %v2639_v57  ;;  %v2735_v11 = vsel %vm334_vm2, %v2697_v15, 0.0  ;;  %v2737_v56 = vsel %vm334_vm2, %v2698_v25, 0.0  ;;  %v2739_v45 = vsel %vm334_vm2, %v2699_v1, 0.0  ;;  %v2601_v57 = vld [vmem:[%s4026_s27 + $0x3bc] sm:$0xf]  ;;  %v6087_v1 = vld [vmem:[%s4036_s29 + $0xf0] sm:$0xff] }
 0x217   : > { %v2732_v58 = vadd.f32 %v2731_v29, %v2730_v35  ;;  %v2741_v50 = vsel %vm334_vm2, %v2700_v39, 0.0  ;;  %v2614_v38 = vunpack.c.l.bf16 %v2596_v17  ;;  %v2676_v5 = vmul.f32 %v2646_v32, %v2612_v14  ;;  %v2754_v29 = vld [vmem:[%s4026_s27 + $0x3c8] sm:$0xff]  ;;  %v2755_v14 = vld [vmem:[%s4026_s27 + $0x3d0] sm:$0xff] }
 0x218   : > { %v2743_v33 = vsel %vm334_vm2, %v2701_v3, 0.0  ;;  %v2745_v30 = vsel %vm334_vm2, %v2702_v61, 0.0  ;;  %v2615_v31 = vunpack.c.h.bf16 %v2596_v17  ;;  %v2616_v0 = vunpack.c.l.bf16 %v2597_v42  ;;  %v2756_v61 = vld [vmem:[%s4026_s27 + $0x3d8] sm:$0xff] }
 0x219   : > { %v2734_v62 = vadd.f32 %v2733_v55, %v2732_v58  ;;  %v2617_v46 = vunpack.c.h.bf16 %v2597_v42  ;;  %v2677_v51 = vmul.f32 %v2647_v2, %v2613_v47  ;;  %v2704_v60 = vadd.f32 %v2675_v43, %v2674_v12  ;;  %v2753_v2 = vld [vmem:[%s4026_s27 + $0x3c0] sm:$0xff]  ;;  %v6118_v43 = vld [vmem:[%s4026_s27 + $0x3e8] sm:$0xff] }
 0x21a   : > { %v2618_v37 = vunpack.c.l.bf16 %v2598_v53  ;;  %v2619_v44 = vunpack.c.h.bf16 %v2598_v53  ;;  %v2620_v32 = vunpack.c.l.bf16 %v2599_v7  ;;  %v2621_v16 = vunpack.c.h.bf16 %v2599_v7  ;;  %v2757_v12 = vld [vmem:[%s4026_s27 + $0x3e0] sm:$0xff] }
 0x21b   : > { %v2736_v24 = vadd.f32 %v2735_v11, %v2734_v62  ;;  %v2622_v40 = vunpack.c.l.bf16 %v2600_v59  ;;  %v2678_v63 = vmul.f32 %v2648_v22, %v2614_v38  ;;  %v2705_v6 = vadd.f32 %v2704_v60, %v2676_v5 }
 0x21c   : > { %v2747_v28 = vsel %vm334_vm2, %v2703_v9, 0.0  ;;  %v2623_v10 = vunpack.c.h.bf16 %v2600_v59  ;;  %v2624_v20 = vunpack.c.l.bf16 %v2601_v57  ;;  %v2679_v18 = vmul.f32 %v2649_v48, %v2615_v31  ;;  %v2760_v31 = vld [vmem:[%s4026_s27 + $0x3f8] sm:$0xf] }
 0x21d   : > { %v2738_v8 = vadd.f32 %v2737_v56, %v2736_v24  ;;  %v2680_v15 = vmul.f32 %v2650_v19, %v2616_v0  ;;  %v2681_v25 = vmul.f32 %v2651_v49, %v2617_v46  ;;  %v2706_v22 = vadd.f32 %v2705_v6, %v2677_v51  ;;  %v6131_v0 = vld [vmem:[%s4036_s29 + $0xf8] sm:$0xff] }
 0x21e   : > { %v2682_v27 = vmul.f32 %v2652_v13, %v2618_v37  ;;  %v2683_v39 = vmul.f32 %v2653_v34, %v2619_v44  ;;  %v2684_v48 = vmul.f32 %v2654_v36, %v2620_v32  ;;  %v6098_v19 = vmul.f32 %v2655_v54, %v2621_v16 }
 0x21f   : > { %v2740_v41 = vadd.f32 %v2739_v45, %v2738_v8  ;;  %v6102_v21 = vmul.f32 %v2656_v26, %v2622_v40  ;;  %v2707_v49 = vadd.f32 %v2706_v22, %v2678_v63  ;;  %v2769_v13 = vunpack.c.l.bf16 %v2753_v2 }
 0x220   : > { %v2770_v34 = vunpack.c.h.bf16 %v2753_v2  ;;  %v2803_v35 = vperm.slane %v6087_v1, 0  ;;  %v2804_v36 = vperm.slane %v6087_v1, 1  ;;  %v6110_v54 = vmul.f32 %v2657_v52, %v2623_v10 }
 0x221   : > { %v2742_v3 = vadd.f32 %v2741_v50, %v2740_v41  ;;  %v6114_v17 = vmul.f32 %v2658_v4, %v2624_v20  ;;  %v2708_v26 = vadd.f32 %v2707_v49, %v2679_v18  ;;  %v2771_v55 = vunpack.c.l.bf16 %v2754_v29 }
 0x222   : > { %v2772_v9 = vunpack.c.h.bf16 %v2754_v29  ;;  %v2773_v58 = vunpack.c.l.bf16 %v2755_v14  ;;  %v2805_v11 = vperm.slane %v6087_v1, 2  ;;  %v2774_v42 = vunpack.c.h.bf16 %v2755_v14 }
 0x223   : > { %v2744_v47 = vadd.f32 %v2743_v33, %v2742_v3  ;;  %v2709_v56 = vadd.f32 %v2708_v26, %v2680_v15  ;;  %v2775_v52 = vunpack.c.l.bf16 %v2756_v61  ;;  %v2776_v45 = vunpack.c.h.bf16 %v2756_v61  ;;  %v2912_v15 = vld [vmem:[%s4026_s27 + $0x3fc] sm:$0xff] }
 0x224   : > { %v2806_v4 = vperm.slane %v6087_v1, 3  ;;  %v2833_v53 = vmul.f32 %v2803_v35, %v2769_v13  ;;  %v2834_v7 = vmul.f32 %v2804_v36, %v2770_v34  ;;  %v2777_v5 = vunpack.c.l.bf16 %v2757_v12  ;;  %v2913_v34 = vld [vmem:[%s4026_s27 + $0x404] sm:$0xff] }
 0x225   : > { %v2746_v50 = vadd.f32 %v2745_v30, %v2744_v47  ;;  %v2710_v38 = vadd.f32 %v2709_v56, %v2681_v25  ;;  %v2778_v62 = vunpack.c.h.bf16 %v2757_v12  ;;  %v2779_v33 = vunpack.c.l.bf16 %v6118_v43  ;;  %v2914_v47 = vld [vmem:[%s4026_s27 + $0x40c] sm:$0xff] }
 0x226   : > { %v2780_v57 = vunpack.c.h.bf16 %v6118_v43  ;;  %v2807_v30 = vperm.slane %v6087_v1, 4  ;;  %v2835_v46 = vmul.f32 %v2805_v11, %v2771_v55  ;;  %v2781_v60 = vunpack.c.l.bf16 %v2759_v23 }
 0x227   : > { %v2748_v59 = vadd.f32 %v2747_v28, %v2746_v50  ;;  %v2711_v51 = vadd.f32 %v2710_v38, %v2682_v27  ;;  %v2782_v24 = vunpack.c.h.bf16 %v2759_v23  ;;  %v2808_v37 = vperm.slane %v6087_v1, 5  ;;  %v6183_v50 = vld [vmem:[%s4026_s27 + $0x414] sm:$0xff]  ;;  %v6192_v38 = vld [vmem:[%s4026_s27 + $0x41c] sm:$0xff] }
 0x228   : > { %v2809_v44 = vperm.slane %v6087_v1, 6  ;;  %v2810_v32 = vperm.slane %v6087_v1, 7  ;;  %v2836_v16 = vmul.f32 %v2806_v4, %v2772_v9  ;;  %v2863_v40 = vadd.f32 %v2834_v7, %v2833_v53 }
 0x229   : > { %2749 = vadd.xlane.f32.xlu1 %v2748_v59  ;;  %v2712_v63 = vadd.f32 %v2711_v51, %v2683_v39  ;;  %v2783_v6 = vunpack.c.l.bf16 %v2760_v31  ;;  %v2811_v8 = vperm.slane %v6131_v0, 0  ;;  %v2812_v28 = vperm.slane %v6131_v0, 1  ;;  %v6152_v39 = vld [vmem:[%s4036_s29 + $0xff] sm:$0xff] }
 0x22a   : > { %v2813_v10 = vperm.slane %v6131_v0, 2  ;;  %v2814_v20 = vperm.slane %v6131_v0, 3  ;;  %v2837_v2 = vmul.f32 %v2807_v30, %v2773_v58  ;;  %v2864_v18 = vadd.f32 %v2863_v40, %v2835_v46  ;;  %v6195_v59 = vld [vmem:[%s4026_s27 + $0x424] sm:$0xff]  ;;  %v6198_v31 = vld [vmem:[%s4026_s27 + $0x42c] sm:$0xff] }
 0x22b   : > { %v2713_v25 = vadd.f32 %v2712_v63, %v2684_v48  ;;  %v2815_v22 = vperm.slane %v6131_v0, 4  ;;  %v2816_v41 = vperm.slane %v6131_v0, 5  ;;  %v2817_v27 = vperm.slane %v6131_v0, 6  ;;  %v6209_v63 = vld [vmem:[%s4026_s27 + $0x434] sm:$0xf] }
 0x22c   : > { %v2838_v29 = vmul.f32 %v2808_v37, %v2774_v42  ;;  %v2839_v49 = vmul.f32 %v2809_v44, %v2775_v52  ;;  %v2840_v14 = vmul.f32 %v2810_v32, %v2776_v45  ;;  %v2865_v13 = vadd.f32 %v2864_v18, %v2836_v16 }
 0x22d   : > { %v2714_v48 = vadd.f32 %v2713_v25, %v6098_v19  ;;  %v2841_v3 = vmul.f32 %v2811_v8, %v2777_v5  ;;  %v2842_v61 = vmul.f32 %v2812_v28, %v2778_v62  ;;  %v2928_v26 = vunpack.c.l.bf16 %v2912_v15 }
 0x22e   : > { %v2866_v55 = vadd.f32 %v2865_v13, %v2837_v2  ;;  %v2929_v12 = vunpack.c.h.bf16 %v2912_v15  ;;  %v2962_v43 = vperm.slane %v6152_v39, 0  ;;  %v2963_v9 = vperm.slane %v6152_v39, 1 }
 0x22f   : > { %v2715_v19 = vadd.f32 %v2714_v48, %v6102_v21  ;;  %v2843_v58 = vmul.f32 %v2813_v10, %v2779_v33  ;;  %v2844_v56 = vmul.f32 %v2814_v20, %v2780_v57  ;;  %v6176_v42 = vmul.f32 %v2815_v22, %v2781_v60 }
 0x230   : > { %v6180_v52 = vmul.f32 %v2816_v41, %v2782_v24  ;;  %v2867_v45 = vadd.f32 %v2866_v55, %v2838_v29  ;;  %v2930_v23 = vunpack.c.l.bf16 %v2913_v34  ;;  %v2964_v21 = vperm.slane %v6152_v39, 2  ;;  %v2762_v55 = vld [vmem:[%s4026_s27 + $0x8f0] sm:$0x11] }
 0x231   : > { %v2716_v53 = vadd.f32 %v2715_v19, %v6110_v54  ;;  %v6189_v7 = vmul.f32 %v2817_v27, %v2783_v6  ;;  %v2931_v5 = vunpack.c.h.bf16 %v2913_v34  ;;  %v2932_v62 = vunpack.c.l.bf16 %v2914_v47 }
 0x232   : > { %v2868_v33 = vadd.f32 %v2867_v45, %v2839_v49  ;;  %v2965_v57 = vperm.slane %v6152_v39, 3  ;;  %v2992_v46 = vmul.f32 %v2962_v43, %v2928_v26  ;;  %v2993_v54 = vmul.f32 %v2963_v9, %v2929_v12  ;;  %v6220_v49 = vld [vmem:[%s4036_s29 + $0x107] sm:$0xff] }
 0x233   : > { %v2717_v51 = vadd.f32 %v2716_v53, %v6114_v17  ;;  %v2933_v60 = vunpack.c.h.bf16 %v2914_v47  ;;  %v2934_v24 = vunpack.c.l.bf16 %v6183_v50  ;;  %v2935_v16 = vunpack.c.h.bf16 %v6183_v50  ;;  %v2761_v26 = vld [vmem:[%s4026_s27 + $0x8e8] sm:$0x11] }
 0x234   : > { %v2869_v40 = vadd.f32 %v2868_v33, %v2840_v14  ;;  %v2936_v6 = vunpack.c.l.bf16 %v6192_v38  ;;  %v7011_v2 = vperm.slane %v6152_v39, 4  ;;  %v2994_v18 = vmul.f32 %v2964_v21, %v2930_v23 }
 0x235   : > { %2718 = vadd.xlane.f32.xlu0 %v2717_v51  ;;  %v2937_v17 = vunpack.c.h.bf16 %v6192_v38  ;;  %v2938_v15 = vunpack.c.l.bf16 %v6195_v59  ;;  %v2939_v25 = vunpack.c.h.bf16 %v6195_v59  ;;  %v2940_v29 = vunpack.c.l.bf16 %v6198_v31 }
 0x236   : > { %v2870_v14 = vadd.f32 %v2869_v40, %v2841_v3  ;;  %v2967_v13 = vperm.slane %v6152_v39, 5  ;;  %v2995_v48 = vmul.f32 %v2965_v57, %v2931_v5  ;;  %v3022_v34 = vadd.f32 %v2993_v54, %v2992_v46 }
 0x237   : > { %v2941_v47 = vunpack.c.h.bf16 %v6198_v31  ;;  %v2942_v12 = vunpack.c.l.bf16 %v6209_v63  ;;  %v2968_v19 = vperm.slane %v6152_v39, 6  ;;  %v2969_v45 = vperm.slane %v6152_v39, 7 }
 0x238   : > { %v2871_v50 = vadd.f32 %v2870_v14, %v2842_v61  ;;  %v2970_v3 = vperm.slane %v6220_v49, 0  ;;  %v2996_v23 = vmul.f32 %v7011_v2, %v2932_v62  ;;  %v3023_v53 = vadd.f32 %v3022_v34, %v2994_v18  ;;  %v2763_v61 = vld [vmem:[%s4026_s27 + $0x8f8] sm:$0x11] }
 0x239   : > { %v2971_v38 = vperm.slane %v6220_v49, 1  ;;  %v2784_v5 = vunpack.c.l.bf16 %v2761_v26  ;;  %v2785_v33 = vunpack.c.h.bf16 %v2761_v26  ;;  %v2786_v59 = vunpack.c.l.bf16 %v2762_v55 }
 0x23a   : > { %v2872_v31 = vadd.f32 %v2871_v50, %v2843_v58  ;;  %v2972_v46 = vperm.slane %v6220_v49, 2  ;;  %v2997_v54 = vmul.f32 %v2967_v13, %v2933_v60  ;;  %v3024_v51 = vadd.f32 %v3023_v53, %v2995_v48  ;;  %v2764_v50 = vld [vmem:[%s4026_s27 + $0x900] sm:$0x11] }
 0x23b   : > { %v2973_v40 = vperm.slane %v6220_v49, 3  ;;  %v2974_v63 = vperm.slane %v6220_v49, 4  ;;  %v2975_v62 = vperm.slane %v6220_v49, 5  ;;  %v2787_v18 = vunpack.c.h.bf16 %v2762_v55 }
 0x23c   : > { %v2873_v14 = vadd.f32 %v2872_v31, %v2844_v56  ;;  %v2976_v34 = vperm.slane %v6220_v49, 6  ;;  %v2998_v58 = vmul.f32 %v2968_v19, %v2934_v24  ;;  %v3025_v26 = vadd.f32 %v3024_v51, %v2996_v23 }
 0x23d   : > { %v2788_v2 = vunpack.c.l.bf16 %v2763_v61  ;;  %v2848_v60 = vmul.f32 %v2803_v35, %v2784_v5  ;;  %v2849_v48 = vmul.f32 %v2804_v36, %v2785_v33  ;;  %v2850_v53 = vmul.f32 %v2805_v11, %v2786_v59  ;;  %v2765_v33 = vld [vmem:[%s4026_s27 + $0x908] sm:$0x11] }
 0x23e   : > { %v2874_v56 = vadd.f32 %v2873_v14, %v6176_v42  ;;  %v2999_v55 = vmul.f32 %v2969_v45, %v2935_v16  ;;  %v3000_v24 = vmul.f32 %v2970_v3, %v2936_v6  ;;  %v3026_v23 = vadd.f32 %v3025_v26, %v2997_v54  ;;  %v2768_v26 = vld [vmem:[%s4026_s27 + $0x920] sm:$0x1] }
 0x23f   : > { %v3001_v31 = vmul.f32 %v2971_v38, %v2937_v17  ;;  %v3002_v35 = vmul.f32 %v2972_v46, %v2938_v15  ;;  %v2789_v36 = vunpack.c.h.bf16 %v2763_v61  ;;  %v2851_v11 = vmul.f32 %v2806_v4, %v2787_v18 }
 0x240   : > { %v2875_v42 = vadd.f32 %v2874_v56, %v6180_v52  ;;  %v3003_v16 = vmul.f32 %v2973_v40, %v2939_v25  ;;  %v3027_v5 = vadd.f32 %v3026_v23, %v2998_v58  ;;  %v2790_v6 = vunpack.c.l.bf16 %v2764_v50  ;;  %v2766_v25 = vld [vmem:[%s4026_s27 + $0x910] sm:$0x11] }
 0x241   : > { %v2852_v17 = vmul.f32 %v2807_v30, %v2788_v2  ;;  %v2879_v59 = vsel %vm334_vm2, %v2848_v60, 0.0  ;;  %v2880_v15 = vsel %vm334_vm2, %v2849_v48, 0.0  ;;  %v2882_v54 = vsel %vm334_vm2, %v2850_v53, 0.0  ;;  %v2767_v30 = vld [vmem:[%s4026_s27 + $0x918] sm:$0x11] }
 0x242   : > { %v2876_v4 = vadd.f32 %v2875_v42, %v6189_v7  ;;  %v3004_v52 = vmul.f32 %v2974_v63, %v2940_v29  ;;  %v3028_v51 = vadd.f32 %v3027_v5, %v2999_v55  ;;  %v2881_v61 = vadd.f32 %v2880_v15, %v2879_v59  ;;  %v2921_v42 = vld [vmem:[%s4026_s27 + $0x92c] sm:$0x11] }
 0x243   : > { %v3005_v18 = vmul.f32 %v2975_v62, %v2941_v47  ;;  %v2791_v2 = vunpack.c.h.bf16 %v2764_v50  ;;  %v2853_v14 = vmul.f32 %v2808_v37, %v2789_v36  ;;  %v2884_v58 = vsel %vm334_vm2, %v2851_v11, 0.0  ;;  %v2920_v37 = vld [vmem:[%s4026_s27 + $0x924] sm:$0x11] }
 0x244   : > { %2877 = vadd.xlane.f32.xlu2 %v2876_v4  ;;  %v3006_v7 = vmul.f32 %v2976_v34, %v2942_v12  ;;  %v3029_v29 = vadd.f32 %v3028_v51, %v3000_v24  ;;  %v2792_v60 = vunpack.c.l.bf16 %v2765_v33  ;;  %v2883_v48 = vadd.f32 %v2882_v54, %v2881_v61  ;;  %v2922_v54 = vld [vmem:[%s4026_s27 + $0x934] sm:$0x11] }
 0x245   : > { %v2793_v53 = vunpack.c.h.bf16 %v2765_v33  ;;  %v2794_v56 = vunpack.c.l.bf16 %v2766_v25  ;;  %v2854_v47 = vmul.f32 %v2809_v44, %v2790_v6  ;;  %v2886_v50 = vsel %vm334_vm2, %v2852_v17, 0.0 }
 0x246   : > { %v3030_v55 = vadd.f32 %v3029_v29, %v3001_v31  ;;  %v2795_v23 = vunpack.c.h.bf16 %v2766_v25  ;;  %v2796_v36 = vunpack.c.l.bf16 %v2767_v30  ;;  %v2885_v11 = vadd.f32 %v2884_v58, %v2883_v48  ;;  %v2923_v58 = vld [vmem:[%s4026_s27 + $0x93c] sm:$0x11] }
 0x247   : > { %v2797_v5 = vunpack.c.h.bf16 %v2767_v30  ;;  %v2798_v12 = vunpack.c.l.bf16 %v2768_v26  ;;  %v2855_v24 = vmul.f32 %v2810_v32, %v2791_v2  ;;  %v2888_v33 = vsel %vm334_vm2, %v2853_v14, 0.0 }
 0x248   : > { %v3031_v59 = vadd.f32 %v3030_v55, %v3002_v35  ;;  %v2887_v15 = vadd.f32 %v2886_v50, %v2885_v11  ;;  %v2943_v4 = vunpack.c.l.bf16 %v2920_v37  ;;  %v2944_v44 = vunpack.c.h.bf16 %v2920_v37 }
 0x249   : > { %v2856_v31 = vmul.f32 %v2811_v8, %v2792_v60  ;;  %v2857_v6 = vmul.f32 %v2812_v28, %v2793_v53  ;;  %v2890_v17 = vsel %vm334_vm2, %v2854_v47, 0.0  ;;  %v2945_v51 = vunpack.c.l.bf16 %v2921_v42 }
 0x24a   : > { %v3032_v25 = vadd.f32 %v3031_v59, %v3003_v16  ;;  %v2858_v1 = vmul.f32 %v2813_v10, %v2794_v56  ;;  %v2889_v32 = vadd.f32 %v2888_v33, %v2887_v15  ;;  %v2946_v35 = vunpack.c.h.bf16 %v2921_v42  ;;  %v2926_v42 = vld [vmem:[%s4026_s27 + $0x954] sm:$0x11] }
 0x24b   : > { %v2859_v61 = vmul.f32 %v2814_v20, %v2795_v23  ;;  %v2860_v30 = vmul.f32 %v2815_v22, %v2796_v36  ;;  %v2892_v8 = vsel %vm334_vm2, %v2855_v24, 0.0  ;;  %v2947_v2 = vunpack.c.l.bf16 %v2922_v54 }
 0x24c   : > { %v3033_v28 = vadd.f32 %v3032_v25, %v3004_v52  ;;  %v2891_v14 = vadd.f32 %v2890_v17, %v2889_v32  ;;  %v3007_v16 = vmul.f32 %v2962_v43, %v2943_v4  ;;  %v3008_v10 = vmul.f32 %v2963_v9, %v2944_v44 }
 0x24d   : > { %v2861_v20 = vmul.f32 %v2816_v41, %v2797_v5  ;;  %v2862_v22 = vmul.f32 %v2817_v27, %v2798_v12  ;;  %v2894_v29 = vsel %vm334_vm2, %v2856_v31, 0.0  ;;  %v3009_v52 = vmul.f32 %v2964_v21, %v2945_v51  ;;  %v2924_v41 = vld [vmem:[%s4026_s27 + $0x944] sm:$0x11]  ;;  %v2925_v21 = vld [vmem:[%s4026_s27 + $0x94c] sm:$0x11] }
 0x24e   : > { %v3034_v26 = vadd.f32 %v3033_v28, %v3005_v18  ;;  %v2893_v60 = vadd.f32 %v2892_v8, %v2891_v14  ;;  %v2948_v48 = vunpack.c.h.bf16 %v2922_v54  ;;  %v3010_v43 = vmul.f32 %v2965_v57, %v2946_v35  ;;  %v2927_v5 = vld [vmem:[%s4026_s27 + $0x95c] sm:$0x1]  ;;  %v3079_v28 = vld [vmem:[%s4026_s27 + $0x960] sm:$0x11] }
 0x24f   : > { %v2896_v9 = vsel %vm334_vm2, %v2857_v6, 0.0  ;;  %v2898_v53 = vsel %vm334_vm2, %v2858_v1, 0.0  ;;  %v2949_v0 = vunpack.c.l.bf16 %v2923_v58  ;;  %v7121_v27 = vperm.slane %v6152_v39, 4 }
 0x250   : > { %v3035_v47 = vadd.f32 %v3034_v26, %v3006_v7  ;;  %v2895_v50 = vadd.f32 %v2894_v29, %v2893_v60  ;;  %v3038_v18 = vsel %vm334_vm2, %v3007_v16, 0.0  ;;  %v3039_v37 = vsel %vm334_vm2, %v3008_v10, 0.0  ;;  %v3081_v60 = vld [vmem:[%s4026_s27 + $0x970] sm:$0x11] }
 0x251   : > { %v3011_v56 = vmul.f32 %v7121_v27, %v2947_v2  ;;  %v2900_v57 = vsel %vm334_vm2, %v2859_v61, 0.0  ;;  %v2950_v55 = vunpack.c.h.bf16 %v2923_v58  ;;  %v3040_v23 = vadd.f32 %v3039_v37, %v3038_v18  ;;  %v6355_v58 = vld [vmem:[%s4036_s29 + $0x10e] sm:$0xff] }
 0x252   : > { %v3041_v36 = vsel %vm334_vm2, %v3009_v52, 0.0  ;;  %3036 = vadd.xlane.f32.xlu1 %v3035_v47  ;;  %v2897_v11 = vadd.f32 %v2896_v9, %v2895_v50  ;;  %v2951_v12 = vunpack.c.l.bf16 %v2924_v41  ;;  %v3012_v7 = vmul.f32 %v2967_v13, %v2948_v48 }
 0x253   : > { %v3043_v24 = vsel %vm334_vm2, %v3010_v43, 0.0  ;;  %v2902_v33 = vsel %vm334_vm2, %v2860_v30, 0.0  ;;  %v2952_v59 = vunpack.c.h.bf16 %v2924_v41  ;;  %v2953_v15 = vunpack.c.l.bf16 %v2925_v21 }
 0x254   : > { %v3042_v54 = vadd.f32 %v3041_v36, %v3040_v23  ;;  %v2899_v4 = vadd.f32 %v2898_v53, %v2897_v11  ;;  %v2954_v44 = vunpack.c.h.bf16 %v2925_v21  ;;  %v3013_v31 = vmul.f32 %v2968_v19, %v2949_v0  ;;  %v3082_v0 = vld [vmem:[%s4026_s27 + $0x978] sm:$0x11] }
 0x255   : > { %v3045_v6 = vsel %vm334_vm2, %v3011_v56, 0.0  ;;  %v2955_v17 = vunpack.c.l.bf16 %v2926_v42  ;;  %v2956_v51 = vunpack.c.h.bf16 %v2926_v42  ;;  %v2957_v25 = vunpack.c.l.bf16 %v2927_v5 }
 0x256   : > { %v3044_v13 = vadd.f32 %v3043_v24, %v3042_v54  ;;  %v2901_v1 = vadd.f32 %v2900_v57, %v2899_v4  ;;  %v3014_v32 = vmul.f32 %v2969_v45, %v2950_v55  ;;  %v3015_v35 = vmul.f32 %v2970_v3, %v2951_v12  ;;  %v3083_v57 = vld [vmem:[%s4026_s27 + $0x980] sm:$0x11]  ;;  %v3084_v55 = vld [vmem:[%s4026_s27 + $0x988] sm:$0x11]  ;;  %v3085_v54 = vld [vmem:[%s4026_s27 + $0x990] sm:$0x11] }
 0x257   : > { %v3047_v61 = vsel %vm334_vm2, %v3012_v7, 0.0  ;;  %v2904_v30 = vsel %vm334_vm2, %v2861_v20, 0.0  ;;  %v2906_v19 = vsel %vm334_vm2, %v2862_v22, 0.0  ;;  %v3016_v8 = vmul.f32 %v2971_v38, %v2952_v59  ;;  %v3080_v22 = vld [vmem:[%s4026_s27 + $0x968] sm:$0x11] }
 0x258   : > { %v3046_v2 = vadd.f32 %v3045_v6, %v3044_v13  ;;  %v2903_v14 = vadd.f32 %v2902_v33, %v2901_v1  ;;  %v3017_v39 = vmul.f32 %v2972_v46, %v2953_v15  ;;  %v3018_v45 = vmul.f32 %v2973_v40, %v2954_v44 }
 0x259   : > { %v3049_v3 = vsel %vm334_vm2, %v3013_v31, 0.0  ;;  %v3019_v16 = vmul.f32 %v2974_v63, %v2955_v17  ;;  %v3020_v38 = vmul.f32 %v2975_v62, %v2956_v51  ;;  %v3021_v10 = vmul.f32 %v2976_v34, %v2957_v25  ;;  %v3086_v51 = vld [vmem:[%s4026_s27 + $0x998] sm:$0x1] }
 0x25a   : > { %v3048_v20 = vadd.f32 %v3047_v61, %v3046_v2  ;;  %v2905_v46 = vadd.f32 %v2904_v30, %v2903_v14  ;;  %v3051_v29 = vsel %vm334_vm2, %v3014_v32, 0.0  ;;  %v3053_v40 = vsel %vm334_vm2, %v3015_v35, 0.0  ;;  %v6394_v25 = vld [vmem:[%s4036_s29 + $0x116] sm:$0xff] }
 0x25b   : > { %v3102_v52 = vunpack.c.l.bf16 %v3079_v28  ;;  %v3103_v48 = vunpack.c.h.bf16 %v3079_v28  ;;  %v3121_v63 = vperm.slane %v6355_v58, 0  ;;  %v3122_v43 = vperm.slane %v6355_v58, 1 }
 0x25c   : > { %v3050_v26 = vadd.f32 %v3049_v3, %v3048_v20  ;;  %v2907_v62 = vadd.f32 %v2906_v19, %v2905_v46  ;;  %v3055_v49 = vsel %vm334_vm2, %v3016_v8, 0.0  ;;  %v3104_v34 = vunpack.c.l.bf16 %v3080_v22 }
 0x25d   : > { %v3123_v9 = vperm.slane %v6355_v58, 2  ;;  %v3057_v41 = vsel %vm334_vm2, %v3017_v39, 0.0  ;;  %v3105_v27 = vunpack.c.h.bf16 %v3080_v22  ;;  %v3124_v56 = vperm.slane %v6355_v58, 3 }
 0x25e   : > { %v3052_v53 = vadd.f32 %v3051_v29, %v3050_v26  ;;  %2908 = vadd.xlane.f32.xlu0 %v2907_v62  ;;  %v3059_v47 = vsel %vm334_vm2, %v3018_v45, 0.0  ;;  %v3061_v50 = vsel %vm334_vm2, %v3019_v16, 0.0  ;;  %v3063_v21 = vsel %vm334_vm2, %v3020_v38, 0.0  ;;  %v3071_v38 = vld [vmem:[%s4026_s27 + $0x438] sm:$0xff] }
 0x25f   : > { %v3106_v18 = vunpack.c.l.bf16 %v3081_v60  ;;  %v3125_v23 = vperm.slane %v6355_v58, 4  ;;  %v3166_v36 = vmul.f32 %v3121_v63, %v3102_v52  ;;  %v3167_v11 = vmul.f32 %v3122_v43, %v3103_v48 }
 0x260   : > { %v3054_v37 = vadd.f32 %v3053_v40, %v3052_v53  ;;  %v3065_v42 = vsel %vm334_vm2, %v3021_v10, 0.0  ;;  %v3107_v5 = vunpack.c.h.bf16 %v3081_v60  ;;  %v3108_v12 = vunpack.c.l.bf16 %v3082_v0  ;;  %v3072_v60 = vld [vmem:[%s4026_s27 + $0x440] sm:$0xff] }
 0x261   : > { %v3168_v7 = vmul.f32 %v3123_v9, %v3104_v34  ;;  %v3109_v33 = vunpack.c.h.bf16 %v3082_v0  ;;  %v3126_v59 = vperm.slane %v6355_v58, 5  ;;  %v3169_v15 = vmul.f32 %v3124_v56, %v3105_v27 }
 0x262   : > { %v3056_v24 = vadd.f32 %v3055_v49, %v3054_v37  ;;  %v3110_v4 = vunpack.c.l.bf16 %v3083_v57  ;;  %v3111_v44 = vunpack.c.h.bf16 %v3083_v57  ;;  %v3112_v31 = vunpack.c.l.bf16 %v3084_v55 }
 0x263   : > { %v3127_v6 = vperm.slane %v6355_v58, 6  ;;  %v3170_v13 = vmul.f32 %v3125_v23, %v3106_v18  ;;  %v3197_v1 = vsel %vm334_vm2, %v3166_v36, 0.0  ;;  %v3198_v32 = vsel %vm334_vm2, %v3167_v11, 0.0  ;;  %v3073_v11 = vld [vmem:[%s4026_s27 + $0x448] sm:$0xff] }
 0x264   : > { %v3058_v17 = vadd.f32 %v3057_v41, %v3056_v24  ;;  %v3113_v35 = vunpack.c.h.bf16 %v3084_v55  ;;  %v3128_v61 = vperm.slane %v6355_v58, 7  ;;  %v3199_v30 = vadd.f32 %v3198_v32, %v3197_v1  ;;  %v3076_v32 = vld [vmem:[%s4026_s27 + $0x460] sm:$0xff] }
 0x265   : > { %v3200_v19 = vsel %vm334_vm2, %v3168_v7, 0.0  ;;  %v3114_v2 = vunpack.c.l.bf16 %v3085_v54  ;;  %v3171_v28 = vmul.f32 %v3126_v59, %v3107_v5  ;;  %v3202_v14 = vsel %vm334_vm2, %v3169_v15, 0.0 }
 0x266   : > { %v3060_v8 = vadd.f32 %v3059_v47, %v3058_v17  ;;  %v3115_v39 = vunpack.c.h.bf16 %v3085_v54  ;;  %v3116_v45 = vunpack.c.l.bf16 %v3086_v51  ;;  %v3129_v3 = vperm.slane %v6394_v25, 0 }
 0x267   : > { %v3201_v16 = vadd.f32 %v3200_v19, %v3199_v30  ;;  %v3130_v20 = vperm.slane %v6394_v25, 1  ;;  %v3172_v22 = vmul.f32 %v3127_v6, %v3108_v12  ;;  %v3204_v46 = vsel %vm334_vm2, %v3170_v13, 0.0  ;;  %v3075_v13 = vld [vmem:[%s4026_s27 + $0x458] sm:$0xff] }
 0x268   : > { %v3062_v10 = vadd.f32 %v3061_v50, %v3060_v8  ;;  %v3131_v29 = vperm.slane %v6394_v25, 2  ;;  %v3132_v40 = vperm.slane %v6394_v25, 3  ;;  %v3173_v52 = vmul.f32 %v3128_v61, %v3109_v33 }
 0x269   : > { %v3203_v26 = vadd.f32 %v3202_v14, %v3201_v16  ;;  %v3206_v62 = vsel %vm334_vm2, %v3171_v28, 0.0  ;;  %v3087_v49 = vunpack.c.l.bf16 %v3071_v38  ;;  %v3088_v34 = vunpack.c.h.bf16 %v3071_v38  ;;  %v3077_v28 = vld [vmem:[%s4026_s27 + $0x468] sm:$0xff] }
 0x26a   : > { %v3064_v48 = vadd.f32 %v3063_v21, %v3062_v10  ;;  %v3133_v53 = vperm.slane %v6394_v25, 4  ;;  %v3134_v41 = vperm.slane %v6394_v25, 5  ;;  %v3135_v0 = vperm.slane %v6394_v25, 6 }
 0x26b   : > { %v3205_v27 = vadd.f32 %v3204_v46, %v3203_v26  ;;  %v3174_v50 = vmul.f32 %v3129_v3, %v3110_v4  ;;  %v3208_v18 = vsel %vm334_vm2, %v3172_v22, 0.0  ;;  %v3089_v21 = vunpack.c.l.bf16 %v3072_v60  ;;  %v3074_v4 = vld [vmem:[%s4026_s27 + $0x450] sm:$0xff] }
 0x26c   : > { %v3066_v47 = vadd.f32 %v3065_v42, %v3064_v48  ;;  %v3175_v37 = vmul.f32 %v3130_v20, %v3111_v44  ;;  %v3176_v57 = vmul.f32 %v3131_v29, %v3112_v31  ;;  %v3177_v55 = vmul.f32 %v3132_v40, %v3113_v35  ;;  %v3230_v26 = vld [vmem:[%s4026_s27 + $0x474] sm:$0xff] }
 0x26d   : > { %v3207_v36 = vadd.f32 %v3206_v62, %v3205_v27  ;;  %v3210_v42 = vsel %vm334_vm2, %v3173_v52, 0.0  ;;  %v3090_v5 = vunpack.c.h.bf16 %v3072_v60  ;;  %v3151_v12 = vmul.f32 %v3121_v63, %v3087_v49 }
 0x26e   : > { %3067 = vadd.xlane.f32.xlu2 %v3066_v47  ;;  %v3152_v7 = vmul.f32 %v3122_v43, %v3088_v34  ;;  %v3178_v24 = vmul.f32 %v3133_v53, %v3114_v2  ;;  %v3179_v33 = vmul.f32 %v3134_v41, %v3115_v39  ;;  %v3212_v54 = vsel %vm334_vm2, %v3174_v50, 0.0  ;;  %v3078_v39 = vld [vmem:[%s4026_s27 + $0x470] sm:$0xf] }
 0x26f   : > { %v3209_v15 = vadd.f32 %v3208_v18, %v3207_v36  ;;  %v3091_v44 = vunpack.c.l.bf16 %v3073_v11  ;;  %v3153_v31 = vmul.f32 %v3123_v9, %v3089_v21  ;;  %v3180_v63 = vmul.f32 %v3135_v0, %v3116_v45  ;;  %v6463_v34 = vld [vmem:[%s4036_s29 + $0x11d] sm:$0xff] }
 0x270   : > { %v3214_v17 = vsel %vm334_vm2, %v3175_v37, 0.0  ;;  %v3216_v51 = vsel %vm334_vm2, %v3176_v57, 0.0  ;;  %v3218_v1 = vsel %vm334_vm2, %v3177_v55, 0.0  ;;  %v3092_v35 = vunpack.c.h.bf16 %v3073_v11  ;;  %v3231_v57 = vld [vmem:[%s4026_s27 + $0x47c] sm:$0xff] }
 0x271   : > { %v3211_v43 = vadd.f32 %v3210_v42, %v3209_v15  ;;  %v3154_v30 = vmul.f32 %v3124_v56, %v3090_v5  ;;  %v3181_v19 = vadd.f32 %v3152_v7, %v3151_v12  ;;  %v3220_v8 = vsel %vm334_vm2, %v3178_v24, 0.0  ;;  %v3232_v7 = vld [vmem:[%s4026_s27 + $0x484] sm:$0xff]  ;;  %v3233_v24 = vld [vmem:[%s4026_s27 + $0x48c] sm:$0xff] }
 0x272   : > { %v3222_v2 = vsel %vm334_vm2, %v3179_v33, 0.0  ;;  %v3093_v14 = vunpack.c.l.bf16 %v3074_v4  ;;  %v3094_v45 = vunpack.c.h.bf16 %v3074_v4  ;;  %v3095_v16 = vunpack.c.l.bf16 %v3075_v13 }
 0x273   : > { %v3213_v9 = vadd.f32 %v3212_v54, %v3211_v43  ;;  %v3155_v38 = vmul.f32 %v3125_v23, %v3091_v44  ;;  %v3182_v10 = vadd.f32 %v3181_v19, %v3153_v31  ;;  %v3224_v56 = vsel %vm334_vm2, %v3180_v63, 0.0  ;;  %v3234_v44 = vld [vmem:[%s4026_s27 + $0x494] sm:$0xff]  ;;  %v3235_v31 = vld [vmem:[%s4026_s27 + $0x49c] sm:$0xff] }
 0x274   : > { %v3096_v46 = vunpack.c.h.bf16 %v3075_v13  ;;  %v3097_v52 = vunpack.c.l.bf16 %v3076_v32  ;;  %v3098_v60 = vunpack.c.h.bf16 %v3076_v32  ;;  %v3099_v48 = vunpack.c.l.bf16 %v3077_v28  ;;  %v3236_v13 = vld [vmem:[%s4026_s27 + $0x4a4] sm:$0xff] }
 0x275   : > { %v3215_v22 = vadd.f32 %v3214_v17, %v3213_v9  ;;  %v3156_v62 = vmul.f32 %v3126_v59, %v3092_v35  ;;  %v3183_v49 = vadd.f32 %v3182_v10, %v3154_v30  ;;  %v3100_v47 = vunpack.c.h.bf16 %v3077_v28  ;;  %v3237_v28 = vld [vmem:[%s4026_s27 + $0x4ac] sm:$0xf] }
 0x276   : > { %v3101_v50 = vunpack.c.l.bf16 %v3078_v39  ;;  %v3157_v23 = vmul.f32 %v3127_v6, %v3093_v14  ;;  %v3158_v18 = vmul.f32 %v3128_v61, %v3094_v45  ;;  %v3159_v21 = vmul.f32 %v3129_v3, %v3095_v16 }
 0x277   : > { %v3217_v27 = vadd.f32 %v3216_v51, %v3215_v22  ;;  %v3184_v37 = vadd.f32 %v3183_v49, %v3155_v38  ;;  %v3246_v59 = vunpack.c.l.bf16 %v3230_v26  ;;  %v3247_v36 = vunpack.c.h.bf16 %v3230_v26 }
 0x278   : > { %v3280_v11 = vperm.slane %v6463_v34, 0  ;;  %v3281_v42 = vperm.slane %v6463_v34, 1  ;;  %v3160_v6 = vmul.f32 %v3130_v20, %v3096_v46  ;;  %v3161_v58 = vmul.f32 %v3131_v29, %v3097_v52 }
 0x279   : > { %v3219_v55 = vadd.f32 %v3218_v1, %v3217_v27  ;;  %v3162_v61 = vmul.f32 %v3132_v40, %v3098_v60  ;;  %v3185_v3 = vadd.f32 %v3184_v37, %v3156_v62  ;;  %v3163_v12 = vmul.f32 %v3133_v53, %v3099_v48  ;;  %v6524_v37 = vld [vmem:[%s4036_s29 + $0x12c] sm:$0xff] }
 0x27a   : > { %v3248_v33 = vunpack.c.l.bf16 %v3231_v57  ;;  %v3282_v15 = vperm.slane %v6463_v34, 2  ;;  %v6487_v20 = vmul.f32 %v3134_v41, %v3100_v47  ;;  %v6491_v29 = vmul.f32 %v3135_v0, %v3101_v50  ;;  %v3389_v47 = vld [vmem:[%s4026_s27 + $0x4b0] sm:$0xff] }
 0x27b   : > { %v3221_v5 = vadd.f32 %v3220_v8, %v3219_v55  ;;  %v3186_v40 = vadd.f32 %v3185_v3, %v3157_v23  ;;  %v3249_v54 = vunpack.c.h.bf16 %v3231_v57  ;;  %v3283_v53 = vperm.slane %v6463_v34, 3 }
 0x27c   : > { %v3310_v63 = vmul.f32 %v3280_v11, %v3246_v59  ;;  %v3311_v43 = vmul.f32 %v3281_v42, %v3247_v36  ;;  %v3250_v17 = vunpack.c.l.bf16 %v3232_v7  ;;  %v3251_v25 = vunpack.c.h.bf16 %v3232_v7 }
 0x27d   : > { %v3223_v4 = vadd.f32 %v3222_v2, %v3221_v5  ;;  %v3187_v41 = vadd.f32 %v3186_v40, %v3158_v18  ;;  %v3252_v0 = vunpack.c.l.bf16 %v3233_v24  ;;  %v3253_v1 = vunpack.c.h.bf16 %v3233_v24  ;;  %v6505_v2 = vld [vmem:[%s4036_s29 + $0x125] sm:$0xff] }
 0x27e   : > { %v3284_v32 = vperm.slane %v6463_v34, 4  ;;  %v3312_v35 = vmul.f32 %v3282_v15, %v3248_v33  ;;  %v3254_v19 = vunpack.c.l.bf16 %v3234_v44  ;;  %v3255_v9 = vunpack.c.h.bf16 %v3234_v44  ;;  %v3390_v5 = vld [vmem:[%s4026_s27 + $0x4b8] sm:$0xff] }
 0x27f   : > { %v3225_v51 = vadd.f32 %v3224_v56, %v3223_v4  ;;  %v3188_v30 = vadd.f32 %v3187_v41, %v3159_v21  ;;  %v3256_v8 = vunpack.c.l.bf16 %v3235_v31  ;;  %v3257_v14 = vunpack.c.h.bf16 %v3235_v31  ;;  %v6550_v41 = vld [vmem:[%s4026_s27 + $0x4c8] sm:$0xff] }
 0x280   : > { %v3285_v39 = vperm.slane %v6463_v34, 5  ;;  %v3313_v45 = vmul.f32 %v3283_v53, %v3249_v54  ;;  %v3340_v16 = vadd.f32 %v3311_v43, %v3310_v63  ;;  %v3258_v10 = vunpack.c.l.bf16 %v3236_v13  ;;  %v3391_v43 = vld [vmem:[%s4026_s27 + $0x4c0] sm:$0xff] }
 0x281   : > { %3226 = vadd.xlane.f32.xlu1 %v3225_v51  ;;  %v3189_v38 = vadd.f32 %v3188_v30, %v3160_v6  ;;  %v3259_v22 = vunpack.c.h.bf16 %v3236_v13  ;;  %v3286_v56 = vperm.slane %v6463_v34, 6  ;;  %v3287_v46 = vperm.slane %v6463_v34, 7  ;;  %v6562_v13 = vld [vmem:[%s4026_s27 + $0x4d0] sm:$0xff]  ;;  %v6566_v30 = vld [vmem:[%s4026_s27 + $0x4d8] sm:$0xff] }
 0x282   : > { %v3288_v52 = vperm.slane %v6505_v2, 0  ;;  %v3314_v26 = vmul.f32 %v3284_v32, %v3250_v17  ;;  %v3341_v60 = vadd.f32 %v3340_v16, %v3312_v35  ;;  %v3260_v62 = vunpack.c.l.bf16 %v3237_v28 }
 0x283   : > { %v3190_v48 = vadd.f32 %v3189_v38, %v3161_v58  ;;  %v3289_v49 = vperm.slane %v6505_v2, 1  ;;  %v3290_v27 = vperm.slane %v6505_v2, 2  ;;  %v3291_v50 = vperm.slane %v6505_v2, 3 }
 0x284   : > { %v3292_v23 = vperm.slane %v6505_v2, 4  ;;  %v3315_v18 = vmul.f32 %v3285_v39, %v3251_v25  ;;  %v3342_v21 = vadd.f32 %v3341_v60, %v3313_v45  ;;  %v3293_v59 = vperm.slane %v6505_v2, 5 }
 0x285   : > { %v3191_v57 = vadd.f32 %v3190_v48, %v3162_v61  ;;  %v7012_v55 = vperm.slane %v6505_v2, 6  ;;  %v3316_v36 = vmul.f32 %v3286_v56, %v3252_v0  ;;  %v3317_v6 = vmul.f32 %v3287_v46, %v3253_v1 }
 0x286   : > { %v3318_v58 = vmul.f32 %v3288_v52, %v3254_v19  ;;  %v3343_v3 = vadd.f32 %v3342_v21, %v3314_v26  ;;  %v3405_v7 = vunpack.c.l.bf16 %v3389_v47  ;;  %v3406_v61 = vunpack.c.h.bf16 %v3389_v47  ;;  %v3238_v21 = vld [vmem:[%s4026_s27 + $0x99c] sm:$0x11] }
 0x287   : > { %v3192_v24 = vadd.f32 %v3191_v57, %v3163_v12  ;;  %v3439_v33 = vperm.slane %v6524_v37, 0  ;;  %v3440_v40 = vperm.slane %v6524_v37, 1  ;;  %v3319_v54 = vmul.f32 %v3289_v49, %v3255_v9 }
 0x288   : > { %v3320_v4 = vmul.f32 %v3290_v27, %v3256_v8  ;;  %v3321_v44 = vmul.f32 %v3291_v50, %v3257_v14  ;;  %v3344_v31 = vadd.f32 %v3343_v3, %v3315_v18  ;;  %v6546_v12 = vmul.f32 %v3292_v23, %v3258_v10  ;;  %v6574_v14 = vld [vmem:[%s4026_s27 + $0x4e0] sm:$0xff] }
 0x289   : > { %v3193_v63 = vadd.f32 %v3192_v24, %v6487_v20  ;;  %v3407_v17 = vunpack.c.l.bf16 %v3390_v5  ;;  %v3441_v25 = vperm.slane %v6524_v37, 2  ;;  %v6555_v0 = vmul.f32 %v3293_v59, %v3259_v22 }
 0x28a   : > { %v6559_v51 = vmul.f32 %v7012_v55, %v3260_v62  ;;  %v3345_v20 = vadd.f32 %v3344_v31, %v3316_v36  ;;  %v3408_v1 = vunpack.c.h.bf16 %v3390_v5  ;;  %v3442_v19 = vperm.slane %v6524_v37, 3  ;;  %v6591_v36 = vld [vmem:[%s4036_s29 + $0x134] sm:$0xff] }
 0x28b   : > { %v3194_v35 = vadd.f32 %v3193_v63, %v6491_v29  ;;  %v3469_v9 = vmul.f32 %v3439_v33, %v3405_v7  ;;  %v3470_v8 = vmul.f32 %v3440_v40, %v3406_v61  ;;  %v3409_v45 = vunpack.c.l.bf16 %v3391_v43  ;;  %v6578_v29 = vld [vmem:[%s4026_s27 + $0x4e8] sm:$0xf] }
 0x28c   : > { %v3346_v28 = vadd.f32 %v3345_v20, %v3317_v6  ;;  %v3410_v16 = vunpack.c.h.bf16 %v3391_v43  ;;  %v3411_v38 = vunpack.c.l.bf16 %v6550_v41  ;;  %v3412_v10 = vunpack.c.h.bf16 %v6550_v41  ;;  %v3239_v7 = vld [vmem:[%s4026_s27 + $0x9a4] sm:$0x11] }
 0x28d   : > { %3195 = vadd.xlane.f32.xlu0 %v3194_v35  ;;  %v3413_v22 = vunpack.c.l.bf16 %v6562_v13  ;;  %v3443_v26 = vperm.slane %v6524_v37, 4  ;;  %v3471_v60 = vmul.f32 %v3441_v25, %v3407_v17  ;;  %v3414_v62 = vunpack.c.h.bf16 %v6562_v13  ;;  %v3240_v35 = vld [vmem:[%s4026_s27 + $0x9ac] sm:$0x11] }
 0x28e   : > { %v3347_v48 = vadd.f32 %v3346_v28, %v3318_v58  ;;  %v3415_v47 = vunpack.c.l.bf16 %v6566_v30  ;;  %v3416_v18 = vunpack.c.h.bf16 %v6566_v30  ;;  %v3417_v57 = vunpack.c.l.bf16 %v6574_v14 }
 0x28f   : > { %v3444_v6 = vperm.slane %v6524_v37, 5  ;;  %v3472_v3 = vmul.f32 %v3442_v19, %v3408_v1  ;;  %v3499_v5 = vadd.f32 %v3470_v8, %v3469_v9  ;;  %v3418_v24 = vunpack.c.h.bf16 %v6574_v14 }
 0x290   : > { %v3348_v58 = vadd.f32 %v3347_v48, %v3319_v54  ;;  %v3419_v61 = vunpack.c.l.bf16 %v6578_v29  ;;  %v3445_v31 = vperm.slane %v6524_v37, 6  ;;  %v3473_v63 = vmul.f32 %v3443_v26, %v3409_v45 }
 0x291   : > { %v3500_v43 = vadd.f32 %v3499_v5, %v3471_v60  ;;  %v3261_v41 = vunpack.c.l.bf16 %v3238_v21  ;;  %v3262_v17 = vunpack.c.h.bf16 %v3238_v21  ;;  %v3446_v13 = vperm.slane %v6524_v37, 7  ;;  %v3241_v5 = vld [vmem:[%s4026_s27 + $0x9b4] sm:$0x11] }
 0x292   : > { %v3349_v20 = vadd.f32 %v3348_v58, %v3320_v4  ;;  %v3447_v1 = vperm.slane %v6591_v36, 0  ;;  %v3263_v54 = vunpack.c.l.bf16 %v3239_v7  ;;  %v3448_v9 = vperm.slane %v6591_v36, 1 }
 0x293   : > { %v3474_v8 = vmul.f32 %v3444_v6, %v3410_v16  ;;  %v3501_v28 = vadd.f32 %v3500_v43, %v3472_v3  ;;  %v3264_v29 = vunpack.c.h.bf16 %v3239_v7  ;;  %v3449_v45 = vperm.slane %v6591_v36, 2 }
 0x294   : > { %v3350_v48 = vadd.f32 %v3349_v20, %v3321_v44  ;;  %v3450_v60 = vperm.slane %v6591_v36, 3  ;;  %v3475_v4 = vmul.f32 %v3445_v31, %v3411_v38  ;;  %v3265_v58 = vunpack.c.l.bf16 %v3240_v35 }
 0x295   : > { %v3502_v21 = vadd.f32 %v3501_v28, %v3473_v63  ;;  %v3325_v55 = vmul.f32 %v3280_v11, %v3261_v41  ;;  %v3326_v16 = vmul.f32 %v3281_v42, %v3262_v17  ;;  %v3451_v44 = vperm.slane %v6591_v36, 4 }
 0x296   : > { %v3351_v3 = vadd.f32 %v3350_v48, %v6546_v12  ;;  %v3452_v7 = vperm.slane %v6591_v36, 5  ;;  %v3327_v43 = vmul.f32 %v3282_v15, %v3263_v54  ;;  %v3476_v38 = vmul.f32 %v3446_v13, %v3412_v10  ;;  %v3242_v48 = vld [vmem:[%s4026_s27 + $0x9bc] sm:$0x11] }
 0x297   : > { %v3503_v63 = vadd.f32 %v3502_v21, %v3474_v8  ;;  %v3266_v20 = vunpack.c.h.bf16 %v3240_v35  ;;  %v3328_v11 = vmul.f32 %v3283_v53, %v3264_v29  ;;  %v3453_v42 = vperm.slane %v6591_v36, 6  ;;  %v3560_v36 = vld [vmem:[%s4026_s27 + $0xa34] sm:$0x11] }
 0x298   : > { %v3352_v41 = vadd.f32 %v3351_v3, %v6555_v0  ;;  %v3477_v12 = vmul.f32 %v3447_v1, %v3413_v22  ;;  %v3267_v17 = vunpack.c.l.bf16 %v3241_v5  ;;  %v3329_v15 = vmul.f32 %v3284_v32, %v3265_v58  ;;  %v3397_v3 = vld [vmem:[%s4026_s27 + $0x9d8] sm:$0x11] }
 0x299   : > { %v3504_v28 = vadd.f32 %v3503_v63, %v3475_v4  ;;  %v3356_v10 = vsel %vm334_vm2, %v3325_v55, 0.0  ;;  %v3357_v35 = vsel %vm334_vm2, %v3326_v16, 0.0  ;;  %v3478_v0 = vmul.f32 %v3448_v9, %v3414_v62 }
 0x29a   : > { %v3353_v53 = vadd.f32 %v3352_v41, %v6559_v51  ;;  %v3358_v54 = vadd.f32 %v3357_v35, %v3356_v10  ;;  %v3359_v22 = vsel %vm334_vm2, %v3327_v43, 0.0  ;;  %v3268_v29 = vunpack.c.h.bf16 %v3241_v5  ;;  %v3243_v5 = vld [vmem:[%s4026_s27 + $0x9c4] sm:$0x11] }
 0x29b   : > { %v3505_v8 = vadd.f32 %v3504_v28, %v3476_v38  ;;  %v3330_v4 = vmul.f32 %v3285_v39, %v3266_v20  ;;  %v3361_v32 = vsel %vm334_vm2, %v3328_v11, 0.0  ;;  %v3479_v55 = vmul.f32 %v3449_v45, %v3415_v47  ;;  %v3398_v38 = vld [vmem:[%s4026_s27 + $0x9e0] sm:$0x11]  ;;  %v3244_v20 = vld [vmem:[%s4026_s27 + $0x9cc] sm:$0x11] }
 0x29c   : > { %3354 = vadd.xlane.f32.xlu2 %v3353_v53  ;;  %v3269_v51 = vunpack.c.l.bf16 %v3242_v48  ;;  %v3360_v21 = vadd.f32 %v3359_v22, %v3358_v54  ;;  %v3480_v62 = vmul.f32 %v3450_v60, %v3416_v18  ;;  %v3331_v39 = vmul.f32 %v3286_v56, %v3267_v17 }
 0x29d   : > { %v3506_v58 = vadd.f32 %v3505_v8, %v3477_v12  ;;  %v3363_v16 = vsel %vm334_vm2, %v3329_v15, 0.0  ;;  %v3481_v47 = vmul.f32 %v3451_v44, %v3417_v57  ;;  %v3482_v43 = vmul.f32 %v3452_v7, %v3418_v24 }
 0x29e   : > { %v3483_v30 = vmul.f32 %v3453_v42, %v3419_v61  ;;  %v3362_v18 = vadd.f32 %v3361_v32, %v3360_v21  ;;  %v3270_v56 = vunpack.c.h.bf16 %v3242_v48  ;;  %v3332_v11 = vmul.f32 %v3287_v46, %v3268_v29  ;;  %v3399_v46 = vld [vmem:[%s4026_s27 + $0x9e8] sm:$0x11] }
 0x29f   : > { %v3507_v63 = vadd.f32 %v3506_v58, %v3478_v0  ;;  %v3365_v14 = vsel %vm334_vm2, %v3330_v4, 0.0  ;;  %v3271_v41 = vunpack.c.l.bf16 %v3243_v5  ;;  %v3333_v57 = vmul.f32 %v3288_v52, %v3269_v51  ;;  %v3245_v0 = vld [vmem:[%s4026_s27 + $0x9d4] sm:$0x1] }
 0x2a0   : > { %v3364_v24 = vadd.f32 %v3363_v16, %v3362_v18  ;;  %v3420_v12 = vunpack.c.l.bf16 %v3397_v3  ;;  %v3367_v61 = vsel %vm334_vm2, %v3331_v39, 0.0  ;;  %v3421_v28 = vunpack.c.h.bf16 %v3397_v3  ;;  %v3400_v51 = vld [vmem:[%s4026_s27 + $0x9f0] sm:$0x11] }
 0x2a1   : > { %v3508_v17 = vadd.f32 %v3507_v63, %v3479_v55  ;;  %v3422_v15 = vunpack.c.l.bf16 %v3398_v38  ;;  %v3272_v10 = vunpack.c.h.bf16 %v3243_v5  ;;  %v3273_v48 = vunpack.c.l.bf16 %v3244_v20 }
 0x2a2   : > { %v3274_v35 = vunpack.c.h.bf16 %v3244_v20  ;;  %v3366_v34 = vadd.f32 %v3365_v14, %v3364_v24  ;;  %v3334_v54 = vmul.f32 %v3289_v49, %v3270_v56  ;;  %v3369_v52 = vsel %vm334_vm2, %v3332_v11, 0.0  ;;  %v3401_v56 = vld [vmem:[%s4026_s27 + $0x9f8] sm:$0x11] }
 0x2a3   : > { %v3509_v53 = vadd.f32 %v3508_v17, %v3480_v62  ;;  %v3423_v22 = vunpack.c.h.bf16 %v3398_v38  ;;  %v3335_v8 = vmul.f32 %v3290_v27, %v3271_v41  ;;  %v3371_v4 = vsel %vm334_vm2, %v3333_v57, 0.0 }
 0x2a4   : > { %v3368_v29 = vadd.f32 %v3367_v61, %v3366_v34  ;;  %v3484_v32 = vmul.f32 %v3439_v33, %v3420_v12  ;;  %v3424_v21 = vunpack.c.l.bf16 %v3399_v46  ;;  %v3485_v62 = vmul.f32 %v3440_v40, %v3421_v28  ;;  %v3402_v28 = vld [vmem:[%s4026_s27 + $0xa00] sm:$0x11] }
 0x2a5   : > { %v3510_v55 = vadd.f32 %v3509_v53, %v3481_v47  ;;  %v3486_v49 = vmul.f32 %v3441_v25, %v3422_v15  ;;  %v3275_v58 = vunpack.c.l.bf16 %v3245_v0  ;;  %v3336_v5 = vmul.f32 %v3291_v50, %v3272_v10 }
 0x2a6   : > { %v3337_v27 = vmul.f32 %v3292_v23, %v3273_v48  ;;  %v3370_v39 = vadd.f32 %v3369_v52, %v3368_v29  ;;  %v3373_v33 = vsel %vm334_vm2, %v3334_v54, 0.0  ;;  %v3425_v3 = vunpack.c.h.bf16 %v3399_v46  ;;  %v3403_v48 = vld [vmem:[%s4026_s27 + $0xa08] sm:$0x11] }
 0x2a7   : > { %v3511_v16 = vadd.f32 %v3510_v55, %v3482_v43  ;;  %v3487_v47 = vmul.f32 %v3442_v19, %v3423_v22  ;;  %v3375_v18 = vsel %vm334_vm2, %v3335_v8, 0.0  ;;  %v3426_v25 = vunpack.c.l.bf16 %v3400_v51  ;;  %v3557_v8 = vld [vmem:[%s4026_s27 + $0xa1c] sm:$0x11] }
 0x2a8   : > { %v3372_v40 = vadd.f32 %v3371_v4, %v3370_v39  ;;  %v3515_v38 = vsel %vm334_vm2, %v3484_v32, 0.0  ;;  %v3488_v50 = vmul.f32 %v3443_v26, %v3424_v21  ;;  %v3516_v23 = vsel %vm334_vm2, %v3485_v62, 0.0  ;;  %v6720_v29 = vld [vmem:[%s4036_s29 + $0x13b] sm:$0xff] }
 0x2a9   : > { %v3512_v63 = vadd.f32 %v3511_v16, %v3483_v30  ;;  %v3518_v43 = vsel %vm334_vm2, %v3486_v49, 0.0  ;;  %v3427_v11 = vunpack.c.h.bf16 %v3400_v51  ;;  %v3517_v19 = vadd.f32 %v3516_v23, %v3515_v38  ;;  %v3404_v51 = vld [vmem:[%s4026_s27 + $0xa10] sm:$0x1] }
 0x2aa   : > { %v3374_v20 = vadd.f32 %v3373_v33, %v3372_v40  ;;  %v3338_v14 = vmul.f32 %v3293_v59, %v3274_v35  ;;  %v3377_v41 = vsel %vm334_vm2, %v3336_v5, 0.0  ;;  %v3489_v30 = vmul.f32 %v3444_v6, %v3425_v3  ;;  %v3558_v3 = vld [vmem:[%s4026_s27 + $0xa24] sm:$0x11] }
 0x2ab   : > { %3513 = vadd.xlane.f32.xlu1 %v3512_v63  ;;  %v3520_v26 = vsel %vm334_vm2, %v3487_v47, 0.0  ;;  %v7122_v57 = vperm.slane %v6505_v2, 6  ;;  %v3519_v17 = vadd.f32 %v3518_v43, %v3517_v19  ;;  %v3379_v61 = vsel %vm334_vm2, %v3337_v27, 0.0  ;;  %v3559_v19 = vld [vmem:[%s4026_s27 + $0xa2c] sm:$0x11] }
 0x2ac   : > { %v3376_v12 = vadd.f32 %v3375_v18, %v3374_v20  ;;  %v3428_v15 = vunpack.c.l.bf16 %v3401_v56  ;;  %v3490_v59 = vmul.f32 %v3445_v31, %v3426_v25  ;;  %v3522_v10 = vsel %vm334_vm2, %v3488_v50, 0.0  ;;  %v3556_v31 = vld [vmem:[%s4026_s27 + $0xa14] sm:$0x11] }
 0x2ad   : > { %v3339_v24 = vmul.f32 %v7122_v57, %v3275_v58  ;;  %v3429_v35 = vunpack.c.h.bf16 %v3401_v56  ;;  %v3491_v2 = vmul.f32 %v3446_v13, %v3427_v11  ;;  %v3521_v34 = vadd.f32 %v3520_v26, %v3519_v17 }
 0x2ae   : > { %v3378_v6 = vadd.f32 %v3377_v41, %v3376_v12  ;;  %v3381_v46 = vsel %vm334_vm2, %v3338_v14, 0.0  ;;  %v3524_v53 = vsel %vm334_vm2, %v3489_v30, 0.0  ;;  %v3430_v52 = vunpack.c.l.bf16 %v3402_v28 }
 0x2af   : > { %v3383_v54 = vsel %vm334_vm2, %v3339_v24, 0.0  ;;  %v3523_v22 = vadd.f32 %v3522_v10, %v3521_v34  ;;  %v3431_v4 = vunpack.c.h.bf16 %v3402_v28  ;;  %v3432_v32 = vunpack.c.l.bf16 %v3403_v48 }
 0x2b0   : > { %v3380_v0 = vadd.f32 %v3379_v61, %v3378_v6  ;;  %v3492_v37 = vmul.f32 %v3447_v1, %v3428_v15  ;;  %v3526_v13 = vsel %vm334_vm2, %v3490_v59, 0.0  ;;  %v3493_v21 = vmul.f32 %v3448_v9, %v3429_v35 }
 0x2b1   : > { %v3525_v62 = vadd.f32 %v3524_v53, %v3523_v22  ;;  %v3528_v49 = vsel %vm334_vm2, %v3491_v2, 0.0  ;;  %v3579_v58 = vunpack.c.l.bf16 %v3556_v31  ;;  %v3580_v5 = vunpack.c.h.bf16 %v3556_v31  ;;  %v6768_v2 = vld [vmem:[%s4036_s29 + $0x143] sm:$0xff] }
 0x2b2   : > { %v3382_v55 = vadd.f32 %v3381_v46, %v3380_v0  ;;  %v3581_v27 = vunpack.c.l.bf16 %v3557_v8  ;;  %v3598_v39 = vperm.slane %v6720_v29, 0  ;;  %v3599_v1 = vperm.slane %v6720_v29, 1 }
 0x2b3   : > { %v3527_v33 = vadd.f32 %v3526_v13, %v3525_v62  ;;  %v3600_v47 = vperm.slane %v6720_v29, 2  ;;  %v3433_v40 = vunpack.c.h.bf16 %v3403_v48  ;;  %v3434_v18 = vunpack.c.l.bf16 %v3404_v51 }
 0x2b4   : > { %v3384_v16 = vadd.f32 %v3383_v54, %v3382_v55  ;;  %v3494_v9 = vmul.f32 %v3449_v45, %v3430_v52  ;;  %v3530_v25 = vsel %vm334_vm2, %v3492_v37, 0.0  ;;  %v3582_v63 = vunpack.c.h.bf16 %v3557_v8  ;;  %v3561_v37 = vld [vmem:[%s4026_s27 + $0xa3c] sm:$0x11] }
 0x2b5   : > { %v3529_v38 = vadd.f32 %v3528_v49, %v3527_v33  ;;  %v3601_v50 = vperm.slane %v6720_v29, 3  ;;  %v3495_v23 = vmul.f32 %v3450_v60, %v3431_v4  ;;  %v3532_v43 = vsel %vm334_vm2, %v3493_v21, 0.0  ;;  %v3548_v4 = vld [vmem:[%s4026_s27 + $0x4ec] sm:$0xff] }
 0x2b6   : > { %3385 = vadd.xlane.f32.xlu0 %v3384_v16  ;;  %v3583_v20 = vunpack.c.l.bf16 %v3558_v3  ;;  %v3643_v56 = vmul.f32 %v3598_v39, %v3579_v58  ;;  %v3602_v45 = vperm.slane %v6720_v29, 4  ;;  %v3644_v14 = vmul.f32 %v3599_v1, %v3580_v5  ;;  %v3549_v5 = vld [vmem:[%s4026_s27 + $0x4f4] sm:$0xff]  ;;  %v3562_v16 = vld [vmem:[%s4026_s27 + $0xa44] sm:$0x11] }
 0x2b7   : > { %v3531_v11 = vadd.f32 %v3530_v25, %v3529_v38  ;;  %v3645_v41 = vmul.f32 %v3600_v47, %v3581_v27  ;;  %v3496_v60 = vmul.f32 %v3451_v44, %v3432_v32  ;;  %v3497_v30 = vmul.f32 %v3452_v7, %v3433_v40 }
 0x2b8   : > { %v3498_v26 = vmul.f32 %v3453_v42, %v3434_v18  ;;  %v3534_v57 = vsel %vm334_vm2, %v3494_v9, 0.0  ;;  %v3584_v12 = vunpack.c.h.bf16 %v3558_v3  ;;  %v3603_v17 = vperm.slane %v6720_v29, 5 }
 0x2b9   : > { %v3533_v24 = vadd.f32 %v3532_v43, %v3531_v11  ;;  %v3646_v61 = vmul.f32 %v3601_v50, %v3582_v63  ;;  %v3536_v28 = vsel %vm334_vm2, %v3495_v23, 0.0  ;;  %v3585_v15 = vunpack.c.l.bf16 %v3559_v19 }
 0x2ba   : > { %v3604_v44 = vperm.slane %v6720_v29, 6  ;;  %v3674_v7 = vsel %vm334_vm2, %v3643_v56, 0.0  ;;  %v3647_v42 = vmul.f32 %v3602_v45, %v3583_v20  ;;  %v3675_v10 = vsel %vm334_vm2, %v3644_v14, 0.0  ;;  %v3563_v56 = vld [vmem:[%s4026_s27 + $0xa4c] sm:$0x1] }
 0x2bb   : > { %v3535_v59 = vadd.f32 %v3534_v57, %v3533_v24  ;;  %v3677_v6 = vsel %vm334_vm2, %v3645_v41, 0.0  ;;  %v3538_v48 = vsel %vm334_vm2, %v3496_v60, 0.0  ;;  %v3586_v35 = vunpack.c.h.bf16 %v3559_v19  ;;  %v3550_v60 = vld [vmem:[%s4026_s27 + $0x4fc] sm:$0xff] }
 0x2bc   : > { %v3605_v34 = vperm.slane %v6720_v29, 7  ;;  %v3676_v46 = vadd.f32 %v3675_v10, %v3674_v7  ;;  %v3648_v0 = vmul.f32 %v3603_v17, %v3584_v12  ;;  %v3679_v54 = vsel %vm334_vm2, %v3646_v61, 0.0  ;;  %v493_v12 = vpop.xlane.xlu1 %492  ;;  %v333_v61 = vpop.xlane.xlu0 %332 }
 0x2bd   : > { %v3537_v53 = vadd.f32 %v3536_v28, %v3535_v59  ;;  %v3540_v52 = vsel %vm334_vm2, %v3497_v30, 0.0  ;;  %v3542_v22 = vsel %vm334_vm2, %v3498_v26, 0.0  ;;  %v3587_v31 = vunpack.c.l.bf16 %v3560_v36 }
 0x2be   : > { %v3678_v8 = vadd.f32 %v3677_v6, %v3676_v46  ;;  %v3606_v13 = vperm.slane %v6768_v2, 0  ;;  %v3649_v55 = vmul.f32 %v3604_v44, %v3585_v15  ;;  %v3681_v51 = vsel %vm334_vm2, %v3647_v42, 0.0 }
 0x2bf   : > { %v3539_v32 = vadd.f32 %v3538_v48, %v3537_v53  ;;  %v3588_v21 = vunpack.c.h.bf16 %v3560_v36  ;;  %v3607_v62 = vperm.slane %v6768_v2, 1  ;;  %v3650_v49 = vmul.f32 %v3605_v34, %v3586_v35  ;;  %v652_v36 = vpop.xlane.xlu2 %651  ;;  %v3551_v53 = vld [vmem:[%s4026_s27 + $0x504] sm:$0xff] }
 0x2c0   : > { %v3680_v58 = vadd.f32 %v3679_v54, %v3678_v8  ;;  %v3683_v33 = vsel %vm334_vm2, %v3648_v0, 0.0  ;;  %v3564_v3 = vunpack.c.l.bf16 %v3548_v4  ;;  %v3565_v40 = vunpack.c.h.bf16 %v3548_v4 }
 0x2c1   : > { %v3541_v27 = vadd.f32 %v3540_v52, %v3539_v32  ;;  %v3589_v18 = vunpack.c.l.bf16 %v3561_v37  ;;  %v3590_v9 = vunpack.c.h.bf16 %v3561_v37  ;;  %v3608_v25 = vperm.slane %v6768_v2, 2 }
 0x2c2   : > { %v3682_v38 = vadd.f32 %v3681_v51, %v3680_v58  ;;  %v3651_v23 = vmul.f32 %v3606_v13, %v3587_v31  ;;  %v3685_v43 = vsel %vm334_vm2, %v3649_v55, 0.0  ;;  %v3566_v20 = vunpack.c.l.bf16 %v3549_v5 }
 0x2c3   : > { %v3543_v63 = vadd.f32 %v3542_v22, %v3541_v27  ;;  %v3591_v11 = vunpack.c.l.bf16 %v3562_v16  ;;  %v3609_v19 = vperm.slane %v6768_v2, 3  ;;  %v3652_v14 = vmul.f32 %v3607_v62, %v3588_v21 }
 0x2c4   : > { %v3684_v41 = vadd.f32 %v3683_v33, %v3682_v38  ;;  %v3687_v30 = vsel %vm334_vm2, %v3650_v49, 0.0  ;;  %v3567_v26 = vunpack.c.h.bf16 %v3549_v5  ;;  %v3628_v57 = vmul.f32 %v3598_v39, %v3564_v3  ;;  %v3552_v49 = vld [vmem:[%s4026_s27 + $0x50c] sm:$0xff]  ;;  %v1129_v33 = vpop.xlane.xlu1 %1128  ;;  %v811_v3 = vpop.xlane.xlu0 %810 }
 0x2c5   : > { %3544 = vadd.xlane.f32.xlu2 %v3543_v63  ;;  %v3629_v24 = vmul.f32 %v3599_v1, %v3565_v40  ;;  %v3592_v28 = vunpack.c.h.bf16 %v3562_v16  ;;  %v3610_v15 = vperm.slane %v6768_v2, 4  ;;  %v3653_v7 = vmul.f32 %v3608_v25, %v3589_v18 }
 0x2c6   : > { %v3686_v59 = vadd.f32 %v3685_v43, %v3684_v41  ;;  %v3593_v42 = vunpack.c.l.bf16 %v3563_v56  ;;  %v3689_v10 = vsel %vm334_vm2, %v3651_v23, 0.0  ;;  %v3568_v6 = vunpack.c.l.bf16 %v3550_v60  ;;  %v3553_v56 = vld [vmem:[%s4026_s27 + $0x514] sm:$0xff] }
 0x2c7   : > { %v3630_v39 = vmul.f32 %v3600_v47, %v3566_v20  ;;  %v3611_v1 = vperm.slane %v6768_v2, 5  ;;  %v3654_v48 = vmul.f32 %v3609_v19, %v3590_v9  ;;  %v3691_v46 = vsel %vm334_vm2, %v3652_v14, 0.0  ;;  %v970_v9 = vpop.xlane.xlu2 %969 }
 0x2c8   : > { %v3688_v35 = vadd.f32 %v3687_v30, %v3686_v59  ;;  %v3569_v0 = vunpack.c.h.bf16 %v3550_v60  ;;  %v3631_v54 = vmul.f32 %v3601_v50, %v3567_v26  ;;  %v3658_v52 = vadd.f32 %v3629_v24, %v3628_v57 }
 0x2c9   : > { %v525_v22 = vadd.f32 %v493_v12, %v333_v61  ;;  %v3612_v31 = vperm.slane %v6768_v2, 6  ;;  %v3655_v47 = vmul.f32 %v3610_v15, %v3591_v11  ;;  %v3693_v4 = vsel %vm334_vm2, %v3653_v7, 0.0 }
 0x2ca   : > { %v3690_v8 = vadd.f32 %v3689_v10, %v3688_v35  ;;  %v3570_v32 = vunpack.c.l.bf16 %v3551_v53  ;;  %v3632_v37 = vmul.f32 %v3602_v45, %v3568_v6  ;;  %v3659_v55 = vadd.f32 %v3658_v52, %v3630_v39 }
 0x2cb   : > { %v684_v51 = vadd.f32 %v652_v36, %v525_v22  ;;  %v3656_v21 = vmul.f32 %v3611_v1, %v3592_v28  ;;  %v3695_v58 = vsel %vm334_vm2, %v3654_v48, 0.0  ;;  %v3571_v5 = vunpack.c.h.bf16 %v3551_v53  ;;  %v3554_v28 = vld [vmem:[%s4026_s27 + $0x51c] sm:$0xff] }
 0x2cc   : > { %v3692_v50 = vadd.f32 %v3691_v46, %v3690_v8  ;;  %v3633_v27 = vmul.f32 %v3603_v17, %v3569_v0  ;;  %v3660_v16 = vadd.f32 %v3659_v55, %v3631_v54  ;;  %v3657_v45 = vmul.f32 %v3612_v31, %v3593_v42  ;;  %v524_v29 = vpop.xlane.xlu1 %523 }
 0x2cd   : > { %v843_v18 = vadd.f32 %v811_v3, %v684_v51  ;;  %v3697_v38 = vsel %vm334_vm2, %v3655_v47, 0.0  ;;  %v3572_v63 = vunpack.c.l.bf16 %v3552_v49  ;;  %v3634_v23 = vmul.f32 %v3604_v44, %v3570_v32 }
 0x2ce   : > { %v3694_v40 = vadd.f32 %v3693_v4, %v3692_v50  ;;  %v3661_v43 = vadd.f32 %v3660_v16, %v3632_v37  ;;  %v3699_v11 = vsel %vm334_vm2, %v3656_v21, 0.0  ;;  %v3573_v14 = vunpack.c.h.bf16 %v3552_v49 }
 0x2cf   : > { %v1002_v17 = vadd.f32 %v970_v9, %v843_v18  ;;  %v3635_v41 = vmul.f32 %v3605_v34, %v3571_v5  ;;  %v3701_v57 = vsel %vm334_vm2, %v3657_v45, 0.0  ;;  %v3574_v24 = vunpack.c.l.bf16 %v3553_v56  ;;  %v1288_v34 = vpop.xlane.xlu0 %1287  ;;  %v1447_v6 = vpop.xlane.xlu2 %1446 }
 0x2d0   : > { %v3696_v20 = vadd.f32 %v3695_v58, %v3694_v40  ;;  %v3662_v60 = vadd.f32 %v3661_v43, %v3633_v27  ;;  %v3636_v44 = vmul.f32 %v3606_v13, %v3572_v63  ;;  %v3575_v7 = vunpack.c.h.bf16 %v3553_v56  ;;  %v3555_v13 = vld [vmem:[%s4026_s27 + $0x524] sm:$0xf] }
 0x2d1   : > { %v1161_v26 = vadd.f32 %v1129_v33, %v1002_v17  ;;  %v3637_v59 = vmul.f32 %v3607_v62, %v3573_v14  ;;  %v3576_v39 = vunpack.c.l.bf16 %v3554_v28  ;;  %v3638_v48 = vmul.f32 %v3608_v25, %v3574_v24 }
 0x2d2   : > { %v3698_v30 = vadd.f32 %v3697_v38, %v3696_v20  ;;  %v3663_v12 = vadd.f32 %v3662_v60, %v3634_v23  ;;  %v3577_v53 = vunpack.c.h.bf16 %v3554_v28  ;;  %v3639_v0 = vmul.f32 %v3609_v19, %v3575_v7 }
 0x2d3   : > { %v1320_v10 = vadd.f32 %v1288_v34, %v1161_v26  ;;  %v3578_v62 = vunpack.c.l.bf16 %v3555_v13  ;;  %v3640_v52 = vmul.f32 %v3610_v15, %v3576_v39 }
 0x2d4   : > { %v3700_v61 = vadd.f32 %v3699_v11, %v3698_v30  ;;  %v3664_v36 = vadd.f32 %v3663_v12, %v3635_v41  ;;  %v3641_v47 = vmul.f32 %v3611_v1, %v3577_v53  ;;  %v842_v4 = vpop.xlane.xlu1 %841 }
 0x2d5   : > { %v1479_v46 = vadd.f32 %v1447_v6, %v1320_v10  ;;  %v3642_v25 = vmul.f32 %v3612_v31, %v3578_v62 }
 0x2d6   : > { %v3702_v42 = vadd.f32 %v3701_v57, %v3700_v61  ;;  %v3665_v35 = vadd.f32 %v3664_v36, %v3636_v44 }
 0x2d7   : > { %v365_v37 = vpop.xlane.xlu0 %364  ;;  %v683_v21 = vpop.xlane.xlu2 %682 }
 0x2d8   : > { %3703 = vadd.xlane.f32.xlu1 %v3702_v42  ;;  %v3666_v54 = vadd.f32 %v3665_v35, %v3637_v59  ;;  %v526_v40 = vadd.f32 %v524_v29, %v365_v37 }
 0x2da   : > { %v3667_v22 = vadd.f32 %v3666_v54, %v3638_v48  ;;  %v685_v9 = vadd.f32 %v683_v21, %v526_v40 }
 0x2dc   : > { %v3668_v8 = vadd.f32 %v3667_v22, %v3639_v0  ;;  %v1319_v19 = vpop.xlane.xlu1 %1318  ;;  %v844_v63 = vadd.f32 %v842_v4, %v685_v9 }
 0x2de   : > { %v3669_v32 = vadd.f32 %v3668_v8, %v3640_v52 }
 0x2df   : > { %v1001_v50 = vpop.xlane.xlu0 %1000  ;;  %v1160_v49 = vpop.xlane.xlu2 %1159 }
 0x2e0   : > { %v3670_v55 = vadd.f32 %v3669_v32, %v3641_v47  ;;  %v1003_v43 = vadd.f32 %v1001_v50, %v844_v63  ;;  %v207_v32 = vld [vmem:[%s6908_s3 + $0x8] sm:$0x3] }
 0x2e2   : > { %v3671_v51 = vadd.f32 %v3670_v55, %v3642_v25  ;;  %v1162_v56 = vadd.f32 %v1160_v49, %v1003_v43 }
 0x2e4   : > { %3672 = vadd.xlane.f32.xlu0 %v3671_v51  ;;  %v1606_v58 = vpop.xlane.xlu1 %1605  ;;  %v1321_v11 = vadd.f32 %v1319_v19, %v1162_v56 }
 0x2e5   : > { %v1638_v59 = vadd.f32 %v1606_v58, %v1479_v46 }
 0x2e7   : > { %v1478_v15 = vpop.xlane.xlu0 %1477  ;;  %v1637_v5 = vpop.xlane.xlu2 %1636 }
 0x2e8   : > { %v1480_v41 = vadd.f32 %v1478_v15, %v1321_v11  ;;  %v206_v15 = vld [vmem:[%s6908_s3] sm:$0xff] }
 0x2ea   : > { %v1639_v30 = vadd.f32 %v1637_v5, %v1480_v41 }
 0x2ec   : > { %v1796_v27 = vpop.xlane.xlu1 %1795 }
 0x2ed   : > { %v1798_v26 = vadd.f32 %v1796_v27, %v1639_v30 }
 0x2ef   : > { %v1765_v16 = vpop.xlane.xlu0 %1764  ;;  %v1924_v1 = vpop.xlane.xlu2 %1923 }
 0x2f0   : > { %v1797_v29 = vadd.f32 %v1765_v16, %v1638_v59 }
 0x2f2   : > { %v1956_v6 = vadd.f32 %v1924_v1, %v1797_v29 }
 0x2f4   : > { %v2083_v33 = vpop.xlane.xlu1 %2082 }
 0x2f5   : > { %v2115_v35 = vadd.f32 %v2083_v33, %v1956_v6 }
 0x2f7   : > { %v1955_v3 = vpop.xlane.xlu0 %1954  ;;  %v2114_v45 = vpop.xlane.xlu2 %2113 }
 0x2f8   : > { %v1957_v24 = vadd.f32 %v1955_v3, %v1798_v26 }
 0x2fa   : > { %v2116_v12 = vadd.f32 %v2114_v45, %v1957_v24 }
 0x2fc   : > { %v2273_v2 = vpop.xlane.xlu1 %2272 }
 0x2fd   : > { %v2275_v28 = vadd.f32 %v2273_v2, %v2116_v12 }
 0x2ff   : > { %v2242_v31 = vpop.xlane.xlu0 %2241  ;;  %v2401_v18 = vpop.xlane.xlu2 %2400 }
 0x300   : > { %v2274_v13 = vadd.f32 %v2242_v31, %v2115_v35 }
 0x302   : > { %v2433_v52 = vadd.f32 %v2401_v18, %v2274_v13 }
 0x304   : > { %v2560_v38 = vpop.xlane.xlu1 %2559 }
 0x305   : > { %v2592_v47 = vadd.f32 %v2560_v38, %v2433_v52 }
 0x307   : > { %v2432_v23 = vpop.xlane.xlu0 %2431  ;;  %v2591_v20 = vpop.xlane.xlu2 %2590 }
 0x308   : > { %v2434_v7 = vadd.f32 %v2432_v23, %v2275_v28 }
 0x30a   : > { %v2593_v42 = vadd.f32 %v2591_v20, %v2434_v7 }
 0x30c   : > { %v2750_v17 = vpop.xlane.xlu1 %2749 }
 0x30d   : > { %v2752_v10 = vadd.f32 %v2750_v17, %v2593_v42 }
 0x30f   : > { %v2719_v14 = vpop.xlane.xlu0 %2718  ;;  %v2878_v60 = vpop.xlane.xlu2 %2877 }
 0x310   : > { %v2751_v4 = vadd.f32 %v2719_v14, %v2592_v47 }
 0x312   : > { %v2910_v55 = vadd.f32 %v2878_v60, %v2751_v4 }
 0x314   : > { %v3037_v57 = vpop.xlane.xlu1 %3036 }
 0x315   : > { %v3069_v21 = vadd.f32 %v3037_v57, %v2910_v55 }
 0x317   : > { %v2909_v44 = vpop.xlane.xlu0 %2908  ;;  %v3068_v61 = vpop.xlane.xlu2 %3067 }
 0x318   : > { %v2911_v48 = vadd.f32 %v2909_v44, %v2752_v10 }
 0x31a   : > { %v3070_v0 = vadd.f32 %v3068_v61, %v2911_v48 }
 0x31c   : > { %v3227_v36 = vpop.xlane.xlu1 %3226 }
 0x31d   : > { %v3229_v62 = vadd.f32 %v3227_v36, %v3070_v0 }
 0x31f   : > { %v3196_v34 = vpop.xlane.xlu0 %3195  ;;  %v3355_v39 = vpop.xlane.xlu2 %3354 }
 0x320   : > { %v3228_v19 = vadd.f32 %v3196_v34, %v3069_v21 }
 0x322   : > { %v3387_v50 = vadd.f32 %v3355_v39, %v3228_v19 }
 0x324   : > { %v3514_v53 = vpop.xlane.xlu1 %3513 }
 0x325   : > { %v3546_v49 = vadd.f32 %v3514_v53, %v3387_v50 }
 0x329   : > { %v3386_v54 = vpop.xlane.xlu0 %3385 }
 0x32a   : > { %v3388_v22 = vadd.f32 %v3386_v54, %v3229_v62 }
 0x338   : > { %v3545_v8 = vpop.xlane.xlu2 %3544 }
 0x339   : > { %v3547_v46 = vadd.f32 %v3545_v8, %v3388_v22 }
 0x34b   : > { %v3704_v25 = vpop.xlane.xlu1 %3703 }
 0x34c   : > { %v3706_v37 = vadd.f32 %v3704_v25, %v3547_v46 }
 0x34e   : > { %v3708_v51 = vadd.f32 %v3706_v37, %v207_v32 }
 0x350   : > { %3712 = vst.msk [vmem:[%s6908_s3 + $0x8] sm:$0x3] %vm3711_vm3, %v3708_v51 }
 0x357   : > { %v3673_v58 = vpop.xlane.xlu0 %3672 }
 0x358   : > { %v3705_v5 = vadd.f32 %v3673_v58, %v3546_v49  ;;  %3716 = sbr.rel (%p3819_p7) target bundleno = 933 (0x3a5), region = 44 }
 0x35a   : > { %v3707_v27 = vadd.f32 %v3705_v5, %v206_v15 }
 0x35c   : > { %3710 = vst.msk [vmem:[%s6908_s3] sm:$0xff] %vm3709_vm4, %v3707_v27 }
 0x35d   : > { %v3718_v1 = vld [vmem:[%s6908_s3 + $0x8] sm:$0x3]  ;;  %v3719_v33 = vld [vmem:[%s6907_s2] sm:$0xff] }
 0x35e   : > { %v3720_v3 = vld [vmem:[%s6907_s2 + $0x8] sm:$0x3] }
 0x35f   : > { %v3722_v2 = vadd.f32 %v3720_v3, %v3718_v1 }
 0x361   : > { %v3724_v40 = vsel %vm3711_vm3, %v3722_v2, -inf }
 0x363   : > { %v3717_v16 = vld [vmem:[%s6908_s3] sm:$0xff] }
 0x364   : > { %v3721_v45 = vadd.f32 %v3719_v33, %v3717_v16 }
 0x366   : > { %v3723_v31 = vsel %vm3709_vm4, %v3721_v45, -inf }
 0x367   : > { %v3725_v18 = vmax.f32 %v3723_v31, %v3724_v40 }
 0x369   : > { %v3726_v9 = vrot.slane %v3725_v18, 4 }
 0x36b   : > { %v3727_v38 = vmax.f32 %v3725_v18, %v3726_v9 }
 0x36d   : > { %v3728_v63 = vrot.slane %v3727_v38, 2 }
 0x36f   : > { %v3729_v23 = vmax.f32 %v3727_v38, %v3728_v63 }
 0x371   : > { %v3730_v43 = vrot.slane %v3729_v23, 1 }
 0x373   : > { %v3731_v20 = vmax.f32 %v3729_v23, %v3730_v43 }
 0x375   : > { %v3732_v56 = vsub.f32 %v3721_v45, %v3731_v20  ;;  %v3733_v17 = vsub.f32 %v3722_v2, %v3731_v20 }
 0x377   : > { %v3734_v11 = vmul.f32 1.442695, %v3732_v56  ;;  %v3736_v14 = vmul.f32 1.442695, %v3733_v17 }
 0x379   : > { %3868 = vpow2.f32 %v3734_v11 }
 0x37a   : > { %3870 = vpow2.f32 %v3736_v14 }
 0x37f   : > { %v3869_v41 = vpop.eup %3868 }
 0x380   : > { %v3871_v60 = vpop.eup %3870  ;;  %v3738_v30 = vsel %vm3709_vm4, %v3869_v41, 0.0 }
 0x381   : > { %v3739_v26 = vsel %vm3711_vm3, %v3871_v60, 0.0 }
 0x382   : > { %v3740_v57 = vadd.f32 %v3739_v26, %v3738_v30 }
 0x384   : > { %v3741_v24 = vrot.slane %v3740_v57, 4 }
 0x386   : > { %v3742_v44 = vadd.f32 %v3741_v24, %v3740_v57 }
 0x388   : > { %v3743_v12 = vrot.slane %v3742_v44, 2 }
 0x38a   : > { %v3744_v61 = vadd.f32 %v3743_v12, %v3742_v44 }
 0x38c   : > { %v3745_v28 = vrot.slane %v3744_v61, 1 }
 0x38e   : > { %v3746_v7 = vadd.f32 %v3745_v28, %v3744_v61 }
 0x390   : > { %3872 = vrcp.f32 %v3746_v7  ;;  %v3758_v29 = vand.u32 2147483648, %v3746_v7  ;;  %vm3752_vm5 = vweird.f32 %v3746_v7  ;;  %v3756_v42 = vand.u32 2147483647, %v3746_v7 }
 0x392   : > { %v3759_v6 = vor.u32 1.1754944e-38, %v3758_v29  ;;  %vm3757_vm8 = vcmp.eq.f32.partialorder %v3756_v42, 8.507059e+37 }
 0x396   : > { %v3873_v59 = vpop.eup %3872 }
 0x397   : > { %v3748_v36 = vmul.f32 %v3873_v59, %v3746_v7  ;;  %vm3753_vm6 = vweird.f32 %v3873_v59 }
 0x398   : > { %vm3754_vm7 = vmor %vm3752_vm5, %vm3753_vm6 }
 0x399   : > { %v3749_v34 = vsub.f32 1.0, %v3748_v36 }
 0x39b   : > { %v3750_v10 = vmul.f32 %v3873_v59, %v3749_v34 }
 0x39d   : > { %v3751_v39 = vadd.f32 %v3873_v59, %v3750_v10 }
 0x39f   : > { %v3755_v48 = vsel %vm3754_vm7, %v3873_v59, %v3751_v39 }
 0x3a0   : > { %v3760_v35 = vsel %vm3757_vm8, %v3759_v6, %v3755_v48 }
 0x3a1   : > { %v3761_v13 = vmul.f32 %v3869_v41, %v3760_v35  ;;  %v3762_v53 = vmul.f32 %v3871_v60, %v3760_v35 }
 0x3a3   : > { %3763 = vst.msk [vmem:[%s6908_s3] sm:$0xff] %vm3709_vm4, %v3761_v13 }
 0x3a4   : > { %3764 = vst.msk [vmem:[%s6908_s3 + $0x8] sm:$0x3] %vm3711_vm3, %v3762_v53 }
 0x3a5 PF: > { %p13_p9 = scmp.ge.s32.totalorder %s3986_s17, 4   ;;  %s7123_s12 = smov %s3930_s13 }
 0x3a6   : > { %s7124_s13 = smov %s3934_s14  ;;  %s7125_s14 = smov %s3996_s20 }
 0x3a7   : > { %s7126_s15 = smov %s3986_s17  ;;  %15 = sbr.rel (!%p13_p9) target bundleno = 3 (0x3), region = 79 }
 0x3ac   :  { %3776 = vsyncpa [#allocation3], 1 }
 0x3ad   :  { %3778 = vsyncpa [#allocation3 + $0x1], 1 }

</bundles_post_ra>
